<compile_context>
chip_gen: v6e
topology: v6e:2x2x1
jax: 0.10.0
libtpu: 0.0.40
codegen_flags: <defaults>
</compile_context>

<pallas_src>
import functools
import math

import jax
import jax.numpy as jnp
from jax import lax
from jax.experimental import pallas as pl
from jax.experimental.pallas import tpu as pltpu


# ---------------------------------------------------------------------------
# Layout helpers (XLA-side glue, ~1x activation bytes; no patch duplication)
# ---------------------------------------------------------------------------

def space_to_depth(x):
    """(N, H, W, C) -> (N, H//2, W//2, 4C), truncating odd spatial tails.

    Cell (r, g) packs pixels (2r+dr, 2g+dc) at channel offset (dr*2+dc)*C.
    Truncated rows/cols are never used by the following VALID conv +
    floor-mode pool, so this is exact.
    """
    n, h, w, c = x.shape
    h2, w2 = (h // 2) * 2, (w // 2) * 2
    x = x[:, :h2, :w2, :]
    x = x.reshape(n, h2 // 2, 2, w2 // 2, 2, c)
    x = jnp.transpose(x, (0, 1, 3, 2, 4, 5))
    return x.reshape(n, h2 // 2, w2 // 2, 4 * c)


def build_conv_matrix(w, cin_pad):
    """Pack (Cout, Cin, 3, 3) conv weights into the (16*cin_pad, 4*Cout) matrix
    used by the fused conv+pool kernel.

    K index = (2x2 cell within the 4x4 window) * 4*cin_pad
              + (pixel within the cell) * cin_pad + channel,
    column  = pooling phase (dy*2+dx) * Cout + cout.
    Rows for zero-padded channels / unused window pixels stay zero.
    """
    cout, cin = w.shape[0], w.shape[1]
    wk = jnp.zeros((16 * cin_pad, 4 * cout), jnp.float32)
    for dy in (0, 1):
        for dx in (0, 1):
            phase = dy * 2 + dx
            for ky in range(3):
                for kx in range(3):
                    a, bcol = dy + ky, dx + kx      # offsets inside the 4x4 window
                    cell = (a // 2) * 2 + (bcol // 2)
                    sub = (a % 2) * 2 + (bcol % 2)
                    row0 = cell * 4 * cin_pad + sub * cin_pad
                    wk = wk.at[row0:row0 + cin,
                               phase * cout:(phase + 1) * cout].set(
                        jnp.transpose(w[:, :, ky, kx], (1, 0)))   # (Cin, Cout)
    return wk.astype(jnp.bfloat16)


# ---------------------------------------------------------------------------
# Fused Conv3x3 + bias + ReLU + MaxPool2x2 kernel (one image per grid step)
# ---------------------------------------------------------------------------

def _conv_pool_kernel(x_ref, w_ref, b_ref, o_ref, *, hp, wp, cout):
    """x_ref: (Hh, Wh, 4*Cin) space-to-depth input (bf16)
    w_ref: (16*Cin, 4*Cout) packed weights (bf16)
    b_ref: (1, Cout) bias (f32)
    o_ref: (hp, wp, Cout) pooled output (bf16), hp = Hh-1, wp = Wh-1
    """
    bias = b_ref[...]

    def body(p, carry):
        r0 = x_ref[p]              # (Wh, 4*Cin)
        r1 = x_ref[p + 1]
        # 4x4 input window for every pooled column q: s2d cells (p..p+1, q..q+1).
        lhs = jnp.concatenate(
            [r0[:wp], r0[1:wp + 1], r1[:wp], r1[1:wp + 1]], axis=-1)
        acc = jnp.dot(lhs, w_ref[...], preferred_element_type=jnp.float32)
        # Columns hold the 4 pooling phases; max over phases, then bias + ReLU.
        m = jnp.maximum(jnp.maximum(acc[:, :cout], acc[:, cout:2 * cout]),
                        jnp.maximum(acc[:, 2 * cout:3 * cout], acc[:, 3 * cout:]))
        m = jnp.maximum(m + bias, 0.0)
        o_ref[p] = m.astype(o_ref.dtype)
        return carry

    lax.fori_loop(0, hp, body, 0)


def conv_relu_pool(xs, w, b):
    """xs: (N, Hh, Wh, 4*cin_pad) bf16 space-to-depth activation.
    w: (Cout, Cin, 3, 3) OIHW, b: (Cout,).  Returns (N, Hh-1, Wh-1, Cout) bf16."""
    n, hh, wh, c4 = xs.shape
    cin_pad = c4 // 4
    cout, cin = w.shape[0], w.shape[1]
    assert cin <= cin_pad and 4 * cin_pad == c4
    assert hh >= 2 and wh >= 2
    hp, wp = hh - 1, wh - 1

    wk = build_conv_matrix(w, cin_pad)                  # (16*cin_pad, 4*cout)
    b2 = b.reshape(1, cout).astype(jnp.float32)

    kernel = functools.partial(_conv_pool_kernel, hp=hp, wp=wp, cout=cout)
    return pl.pallas_call(
        kernel,
        out_shape=jax.ShapeDtypeStruct((n, hp, wp, cout), jnp.bfloat16),
        grid_spec=pltpu.PrefetchScalarGridSpec(
            num_scalar_prefetch=0,
            grid=(n,),                                  # one image per step
            in_specs=[
                pl.BlockSpec((None, hh, wh, c4), lambda i: (i, 0, 0, 0)),
                pl.BlockSpec((16 * cin_pad, 4 * cout), lambda i: (0, 0)),
                pl.BlockSpec((1, cout), lambda i: (0, 0)),
            ],
            out_specs=pl.BlockSpec((None, hp, wp, cout), lambda i: (i, 0, 0, 0)),
        ),
        compiler_params=pltpu.CompilerParams(
            dimension_semantics=("parallel",),          # 2 TCs on v7x: 1 image each
            vmem_limit_bytes=48 * 1024 * 1024),
    )(xs, wk, b2)


# ---------------------------------------------------------------------------
# Model forward
# ---------------------------------------------------------------------------

def simple_cnn_forward(x_nchw, params):
    x = jnp.transpose(x_nchw, (0, 2, 3, 1)).astype(jnp.bfloat16)    # NHWC, once
    cin = x.shape[-1]
    if cin < 8:                                   # lane-friendlier s2d depth
        x = jnp.pad(x, ((0, 0), (0, 0), (0, 0), (0, 8 - cin)))
    xs = space_to_depth(x)

    convs = params["convs"]
    y = None
    for li, (w, b) in enumerate(convs):
        y = conv_relu_pool(xs, w, b)
        if li + 1 < len(convs):
            xs = space_to_depth(y)                # cheap 1x-activation relayout

    # PyTorch flattens the NCHW tensor, so order features as (C, H, W).
    n = y.shape[0]
    feats = jnp.transpose(y, (0, 3, 1, 2)).reshape(n, -1)
    w_lin, b_lin = params["out"]
    # Tiny (N, 2400) @ (2400, n_classes): plain XLA dot (per perf review).
    return jnp.dot(feats.astype(jnp.float32), w_lin.T) + b_lin


# ---------------------------------------------------------------------------
# Deterministic parameter init (PyTorch-default-style uniform bounds)
# ---------------------------------------------------------------------------

def init_params(key, n_classes):
    specs = [(3, 8), (8, 16), (16, 32), (32, 64), (64, 96)]
    convs = []
    for cin, cout in specs:
        key, k1, k2 = jax.random.split(key, 3)
        bound = 1.0 / math.sqrt(cin * 9)
        w = jax.random.uniform(k1, (cout, cin, 3, 3), jnp.float32, -bound, bound)
        b = jax.random.uniform(k2, (cout,), jnp.float32, -bound, bound)
        convs.append((w, b))
    key, k1, k2 = jax.random.split(key, 3)
    fan_in = 96 * 5 * 5
    bound = 1.0 / math.sqrt(fan_in)
    w_lin = jax.random.uniform(k1, (n_classes, fan_in), jnp.float32, -bound, bound)
    b_lin = jax.random.uniform(k2, (n_classes,), jnp.float32, -bound, bound)
    return {"convs": convs, "out": (w_lin, b_lin)}


# ---------------------------------------------------------------------------
# Pure-JAX reference (same bf16-activation / f32-accumulation numerics)
# ---------------------------------------------------------------------------

def reference_forward(x_nchw, params):
    h = x_nchw
    for w, b in params["convs"]:
        h = lax.conv_general_dilated(
            h.astype(jnp.bfloat16), w.astype(jnp.bfloat16),
            window_strides=(1, 1), padding="VALID",
            dimension_numbers=("NCHW", "OIHW", "NCHW"),
            preferred_element_type=jnp.float32) + b[None, :, None, None]
        h = jnp.maximum(h, 0.0)
        n, c, hh, ww = h.shape
        he, we = (hh // 2) * 2, (ww // 2) * 2
        h = h[:, :, :he, :we].reshape(n, c, he // 2, 2, we // 2, 2).max(axis=(3, 5))
        h = h.astype(jnp.bfloat16)
    feats = h.reshape(h.shape[0], -1)
    w_lin, b_lin = params["out"]
    return jnp.dot(feats.astype(jnp.float32), w_lin.T) + b_lin


if __name__ == "__main__":
    key = jax.random.PRNGKey(0)
    kx, kp = jax.random.split(key)
    n_classes = 10
    # Spatial size 224 is implied by the 96*5*5 flatten feeding the Linear layer.
    x = jax.random.normal(kx, (2, 3, 224, 224), jnp.float32)
    params = init_params(kp, n_classes)

    fwd = jax.jit(simple_cnn_forward)
    logits = jax.block_until_ready(fwd(x, params))
    assert logits.shape == (2, n_classes), logits.shape

    ref = jax.block_until_ready(jax.jit(reference_forward)(x, params))
    rel_err = float(jnp.max(jnp.abs(logits - ref)) / (jnp.max(jnp.abs(ref)) + 1e-6))
    assert rel_err < 3e-2, f"relative error too large: {rel_err}"

    print("KERNEL_OK")
</pallas_src>

<mosaic_0001>
module attributes {stable_mosaic.version = 11 : i64} {
  func.func @_conv_pool_kernel(%arg0: i32, %arg1: memref<1x112x112x32xbf16, #tpu.memory_space<vmem>>, %arg2: memref<128x32xbf16, #tpu.memory_space<vmem>>, %arg3: memref<1x8xf32, #tpu.memory_space<vmem>>, %arg4: memref<1x111x111x8xbf16, #tpu.memory_space<vmem>>) attributes {dimension_semantics = [#tpu.dimension_semantics<parallel>], iteration_bounds = array<i64: 2>, scalar_prefetch = 0 : i64, scratch_operands = 0 : i64, tpu.core_type = #tpu.core_type<tc>, window_params = [{transform_indices = @transform_0, window_bounds = array<i64: 1, 112, 112, 32>}, {pipeline_mode = #tpu.pipeline_mode<synchronous>, transform_indices = @transform_1, window_bounds = array<i64: 128, 32>}, {pipeline_mode = #tpu.pipeline_mode<synchronous>, transform_indices = @transform_2, window_bounds = array<i64: 1, 8>}, {transform_indices = @transform_3, window_bounds = array<i64: 1, 111, 111, 8>}]} {
    %c0 = arith.constant 0 : index
    %c0_0 = arith.constant 0 : index
    %0 = vector.load %arg3[%c0, %c0_0] : memref<1x8xf32, #tpu.memory_space<vmem>>, vector<1x8xf32>
    %c0_i32 = arith.constant 0 : i32
    %c111_i32 = arith.constant 111 : i32
    %1 = arith.addi %c0_i32, %c111_i32 : i32
    %c1_i32 = arith.constant 1 : i32
    scf.for %arg5 = %c0_i32 to %1 step %c1_i32  : i32 {
      %c0_2 = arith.constant 0 : index
      %2 = arith.index_cast %arg5 : i32 to index
      %c0_3 = arith.constant 0 : index
      %c0_4 = arith.constant 0 : index
      %3 = vector.load %arg1[%c0_2, %2, %c0_3, %c0_4] : memref<1x112x112x32xbf16, #tpu.memory_space<vmem>>, vector<1x1x112x32xbf16>
      %4 = vector.shape_cast %3 : vector<1x1x112x32xbf16> to vector<112x32xbf16>
      %c1_i32_5 = arith.constant 1 : i32
      %5 = arith.addi %arg5, %c1_i32_5 : i32
      %c0_6 = arith.constant 0 : index
      %6 = arith.index_cast %5 : i32 to index
      %c0_7 = arith.constant 0 : index
      %c0_8 = arith.constant 0 : index
      %7 = vector.load %arg1[%c0_6, %6, %c0_7, %c0_8] : memref<1x112x112x32xbf16, #tpu.memory_space<vmem>>, vector<1x1x112x32xbf16>
      %8 = vector.shape_cast %7 : vector<1x1x112x32xbf16> to vector<112x32xbf16>
      %9 = vector.extract_strided_slice %4 {offsets = [0, 0], sizes = [111, 32], strides = [1, 1]} : vector<112x32xbf16> to vector<111x32xbf16>
      %10 = vector.extract_strided_slice %4 {offsets = [1, 0], sizes = [111, 32], strides = [1, 1]} : vector<112x32xbf16> to vector<111x32xbf16>
      %11 = vector.extract_strided_slice %8 {offsets = [0, 0], sizes = [111, 32], strides = [1, 1]} : vector<112x32xbf16> to vector<111x32xbf16>
      %12 = vector.extract_strided_slice %8 {offsets = [1, 0], sizes = [111, 32], strides = [1, 1]} : vector<112x32xbf16> to vector<111x32xbf16>
      %13 = tpu.concatenate %9, %10, %11, %12 in 1 : vector<111x32xbf16>, vector<111x32xbf16>, vector<111x32xbf16>, vector<111x32xbf16> -> vector<111x128xbf16>
      %c0_9 = arith.constant 0 : index
      %c0_10 = arith.constant 0 : index
      %14 = vector.load %arg2[%c0_9, %c0_10] : memref<128x32xbf16, #tpu.memory_space<vmem>>, vector<128x32xbf16>
      %cst = arith.constant dense<0.000000e+00> : vector<111x32xf32>
      %15 = tpu.matmul %13, %14, %cst {dimension_numbers = #tpu.dot_dimension_numbers<[1], [0], [0], [1], [0, 0, 1, 1], [], []>} : vector<111x128xbf16>, vector<128x32xbf16>, vector<111x32xf32> -> vector<111x32xf32>
      %16 = vector.extract_strided_slice %15 {offsets = [0, 0], sizes = [111, 8], strides = [1, 1]} : vector<111x32xf32> to vector<111x8xf32>
      %17 = vector.extract_strided_slice %15 {offsets = [0, 8], sizes = [111, 8], strides = [1, 1]} : vector<111x32xf32> to vector<111x8xf32>
      %18 = arith.maximumf %16, %17 : vector<111x8xf32>
      %19 = vector.extract_strided_slice %15 {offsets = [0, 16], sizes = [111, 8], strides = [1, 1]} : vector<111x32xf32> to vector<111x8xf32>
      %20 = vector.extract_strided_slice %15 {offsets = [0, 24], sizes = [111, 8], strides = [1, 1]} : vector<111x32xf32> to vector<111x8xf32>
      %21 = arith.maximumf %19, %20 : vector<111x8xf32>
      %22 = arith.maximumf %18, %21 : vector<111x8xf32>
      %23 = vector.broadcast %0 : vector<1x8xf32> to vector<111x8xf32>
      %24 = arith.addf %22, %23 : vector<111x8xf32>
      %cst_11 = arith.constant 0.000000e+00 : f32
      %25 = vector.broadcast %cst_11 : f32 to vector<111x8xf32>
      %26 = arith.maximumf %24, %25 : vector<111x8xf32>
      %27 = arith.truncf %26 : vector<111x8xf32> to vector<111x8xbf16>
      %c0_12 = arith.constant 0 : index
      %28 = arith.index_cast %arg5 : i32 to index
      %c0_13 = arith.constant 0 : index
      %c0_14 = arith.constant 0 : index
      %29 = vector.load %arg4[%c0_12, %28, %c0_13, %c0_14] : memref<1x111x111x8xbf16, #tpu.memory_space<vmem>>, vector<1x1x111x8xbf16>
      %30 = vector.shape_cast %29 : vector<1x1x111x8xbf16> to vector<111x8xbf16>
      %31 = vector.shape_cast %27 : vector<111x8xbf16> to vector<1x1x111x8xbf16>
      tpu.vector_store %arg4[%c0_12, %28, %c0_13, %c0_14], %31 {strides = array<i32>} : memref<1x111x111x8xbf16, #tpu.memory_space<vmem>>, vector<1x1x111x8xbf16>,
    }
    %c111_i32_1 = arith.constant 111 : i32
    return
  }
  func.func @transform_0(%arg0: i32) -> (i32, i32, i32, i32) {
    %c0_i32 = arith.constant 0 : i32
    %c0_i32_0 = arith.constant 0 : i32
    %c0_i32_1 = arith.constant 0 : i32
    %c0_i32_2 = arith.constant 0 : i32
    return %arg0, %c0_i32, %c0_i32_0, %c0_i32_1 : i32, i32, i32, i32
  }
  func.func @transform_1(%arg0: i32) -> (i32, i32) {
    %c0_i32 = arith.constant 0 : i32
    %c0_i32_0 = arith.constant 0 : i32
    %c0_i32_1 = arith.constant 0 : i32
    return %c0_i32, %c0_i32_0 : i32, i32
  }
  func.func @transform_2(%arg0: i32) -> (i32, i32) {
    %c0_i32 = arith.constant 0 : i32
    %c0_i32_0 = arith.constant 0 : i32
    %c0_i32_1 = arith.constant 0 : i32
    return %c0_i32, %c0_i32_0 : i32, i32
  }
  func.func @transform_3(%arg0: i32) -> (i32, i32, i32, i32) {
    %c0_i32 = arith.constant 0 : i32
    %c0_i32_0 = arith.constant 0 : i32
    %c0_i32_1 = arith.constant 0 : i32
    %c0_i32_2 = arith.constant 0 : i32
    return %arg0, %c0_i32, %c0_i32_0, %c0_i32_1 : i32, i32, i32, i32
  }
}

module attributes {stable_mosaic.version = 11 : i64} {
  func.func @_conv_pool_kernel(%arg0: i32, %arg1: memref<1x55x55x32xbf16, #tpu.memory_space<vmem>>, %arg2: memref<128x64xbf16, #tpu.memory_space<vmem>>, %arg3: memref<1x16xf32, #tpu.memory_space<vmem>>, %arg4: memref<1x54x54x16xbf16, #tpu.memory_space<vmem>>) attributes {dimension_semantics = [#tpu.dimension_semantics<parallel>], iteration_bounds = array<i64: 2>, scalar_prefetch = 0 : i64, scratch_operands = 0 : i64, tpu.core_type = #tpu.core_type<tc>, window_params = [{transform_indices = @transform_0, window_bounds = array<i64: 1, 55, 55, 32>}, {pipeline_mode = #tpu.pipeline_mode<synchronous>, transform_indices = @transform_1, window_bounds = array<i64: 128, 64>}, {pipeline_mode = #tpu.pipeline_mode<synchronous>, transform_indices = @transform_2, window_bounds = array<i64: 1, 16>}, {transform_indices = @transform_3, window_bounds = array<i64: 1, 54, 54, 16>}]} {
    %c0 = arith.constant 0 : index
    %c0_0 = arith.constant 0 : index
    %0 = vector.load %arg3[%c0, %c0_0] : memref<1x16xf32, #tpu.memory_space<vmem>>, vector<1x16xf32>
    %c0_i32 = arith.constant 0 : i32
    %c54_i32 = arith.constant 54 : i32
    %1 = arith.addi %c0_i32, %c54_i32 : i32
    %c1_i32 = arith.constant 1 : i32
    scf.for %arg5 = %c0_i32 to %1 step %c1_i32  : i32 {
      %c0_2 = arith.constant 0 : index
      %2 = arith.index_cast %arg5 : i32 to index
      %c0_3 = arith.constant 0 : index
      %c0_4 = arith.constant 0 : index
      %3 = vector.load %arg1[%c0_2, %2, %c0_3, %c0_4] : memref<1x55x55x32xbf16, #tpu.memory_space<vmem>>, vector<1x1x55x32xbf16>
      %4 = vector.shape_cast %3 : vector<1x1x55x32xbf16> to vector<55x32xbf16>
      %c1_i32_5 = arith.constant 1 : i32
      %5 = arith.addi %arg5, %c1_i32_5 : i32
      %c0_6 = arith.constant 0 : index
      %6 = arith.index_cast %5 : i32 to index
      %c0_7 = arith.constant 0 : index
      %c0_8 = arith.constant 0 : index
      %7 = vector.load %arg1[%c0_6, %6, %c0_7, %c0_8] : memref<1x55x55x32xbf16, #tpu.memory_space<vmem>>, vector<1x1x55x32xbf16>
      %8 = vector.shape_cast %7 : vector<1x1x55x32xbf16> to vector<55x32xbf16>
      %9 = vector.extract_strided_slice %4 {offsets = [0, 0], sizes = [54, 32], strides = [1, 1]} : vector<55x32xbf16> to vector<54x32xbf16>
      %10 = vector.extract_strided_slice %4 {offsets = [1, 0], sizes = [54, 32], strides = [1, 1]} : vector<55x32xbf16> to vector<54x32xbf16>
      %11 = vector.extract_strided_slice %8 {offsets = [0, 0], sizes = [54, 32], strides = [1, 1]} : vector<55x32xbf16> to vector<54x32xbf16>
      %12 = vector.extract_strided_slice %8 {offsets = [1, 0], sizes = [54, 32], strides = [1, 1]} : vector<55x32xbf16> to vector<54x32xbf16>
      %13 = tpu.concatenate %9, %10, %11, %12 in 1 : vector<54x32xbf16>, vector<54x32xbf16>, vector<54x32xbf16>, vector<54x32xbf16> -> vector<54x128xbf16>
      %c0_9 = arith.constant 0 : index
      %c0_10 = arith.constant 0 : index
      %14 = vector.load %arg2[%c0_9, %c0_10] : memref<128x64xbf16, #tpu.memory_space<vmem>>, vector<128x64xbf16>
      %cst = arith.constant dense<0.000000e+00> : vector<54x64xf32>
      %15 = tpu.matmul %13, %14, %cst {dimension_numbers = #tpu.dot_dimension_numbers<[1], [0], [0], [1], [0, 0, 1, 1], [], []>} : vector<54x128xbf16>, vector<128x64xbf16>, vector<54x64xf32> -> vector<54x64xf32>
      %16 = vector.extract_strided_slice %15 {offsets = [0, 0], sizes = [54, 16], strides = [1, 1]} : vector<54x64xf32> to vector<54x16xf32>
      %17 = vector.extract_strided_slice %15 {offsets = [0, 16], sizes = [54, 16], strides = [1, 1]} : vector<54x64xf32> to vector<54x16xf32>
      %18 = arith.maximumf %16, %17 : vector<54x16xf32>
      %19 = vector.extract_strided_slice %15 {offsets = [0, 32], sizes = [54, 16], strides = [1, 1]} : vector<54x64xf32> to vector<54x16xf32>
      %20 = vector.extract_strided_slice %15 {offsets = [0, 48], sizes = [54, 16], strides = [1, 1]} : vector<54x64xf32> to vector<54x16xf32>
      %21 = arith.maximumf %19, %20 : vector<54x16xf32>
      %22 = arith.maximumf %18, %21 : vector<54x16xf32>
      %23 = vector.broadcast %0 : vector<1x16xf32> to vector<54x16xf32>
      %24 = arith.addf %22, %23 : vector<54x16xf32>
      %cst_11 = arith.constant 0.000000e+00 : f32
      %25 = vector.broadcast %cst_11 : f32 to vector<54x16xf32>
      %26 = arith.maximumf %24, %25 : vector<54x16xf32>
      %27 = arith.truncf %26 : vector<54x16xf32> to vector<54x16xbf16>
      %c0_12 = arith.constant 0 : index
      %28 = arith.index_cast %arg5 : i32 to index
      %c0_13 = arith.constant 0 : index
      %c0_14 = arith.constant 0 : index
      %29 = vector.load %arg4[%c0_12, %28, %c0_13, %c0_14] : memref<1x54x54x16xbf16, #tpu.memory_space<vmem>>, vector<1x1x54x16xbf16>
      %30 = vector.shape_cast %29 : vector<1x1x54x16xbf16> to vector<54x16xbf16>
      %31 = vector.shape_cast %27 : vector<54x16xbf16> to vector<1x1x54x16xbf16>
      tpu.vector_store %arg4[%c0_12, %28, %c0_13, %c0_14], %31 {strides = array<i32>} : memref<1x54x54x16xbf16, #tpu.memory_space<vmem>>, vector<1x1x54x16xbf16>,
    }
    %c54_i32_1 = arith.constant 54 : i32
    return
  }
  func.func @transform_0(%arg0: i32) -> (i32, i32, i32, i32) {
    %c0_i32 = arith.constant 0 : i32
    %c0_i32_0 = arith.constant 0 : i32
    %c0_i32_1 = arith.constant 0 : i32
    %c0_i32_2 = arith.constant 0 : i32
    return %arg0, %c0_i32, %c0_i32_0, %c0_i32_1 : i32, i32, i32, i32
  }
  func.func @transform_1(%arg0: i32) -> (i32, i32) {
    %c0_i32 = arith.constant 0 : i32
    %c0_i32_0 = arith.constant 0 : i32
    %c0_i32_1 = arith.constant 0 : i32
    return %c0_i32, %c0_i32_0 : i32, i32
  }
  func.func @transform_2(%arg0: i32) -> (i32, i32) {
    %c0_i32 = arith.constant 0 : i32
    %c0_i32_0 = arith.constant 0 : i32
    %c0_i32_1 = arith.constant 0 : i32
    return %c0_i32, %c0_i32_0 : i32, i32
  }
  func.func @transform_3(%arg0: i32) -> (i32, i32, i32, i32) {
    %c0_i32 = arith.constant 0 : i32
    %c0_i32_0 = arith.constant 0 : i32
    %c0_i32_1 = arith.constant 0 : i32
    %c0_i32_2 = arith.constant 0 : i32
    return %arg0, %c0_i32, %c0_i32_0, %c0_i32_1 : i32, i32, i32, i32
  }
}

module attributes {stable_mosaic.version = 11 : i64} {
  func.func @_conv_pool_kernel(%arg0: i32, %arg1: memref<1x27x27x64xbf16, #tpu.memory_space<vmem>>, %arg2: memref<256x128xbf16, #tpu.memory_space<vmem>>, %arg3: memref<1x32xf32, #tpu.memory_space<vmem>>, %arg4: memref<1x26x26x32xbf16, #tpu.memory_space<vmem>>) attributes {dimension_semantics = [#tpu.dimension_semantics<parallel>], iteration_bounds = array<i64: 2>, scalar_prefetch = 0 : i64, scratch_operands = 0 : i64, tpu.core_type = #tpu.core_type<tc>, window_params = [{transform_indices = @transform_0, window_bounds = array<i64: 1, 27, 27, 64>}, {pipeline_mode = #tpu.pipeline_mode<synchronous>, transform_indices = @transform_1, window_bounds = array<i64: 256, 128>}, {pipeline_mode = #tpu.pipeline_mode<synchronous>, transform_indices = @transform_2, window_bounds = array<i64: 1, 32>}, {transform_indices = @transform_3, window_bounds = array<i64: 1, 26, 26, 32>}]} {
    %c0 = arith.constant 0 : index
    %c0_0 = arith.constant 0 : index
    %0 = vector.load %arg3[%c0, %c0_0] : memref<1x32xf32, #tpu.memory_space<vmem>>, vector<1x32xf32>
    %c0_i32 = arith.constant 0 : i32
    %c26_i32 = arith.constant 26 : i32
    %1 = arith.addi %c0_i32, %c26_i32 : i32
    %c1_i32 = arith.constant 1 : i32
    scf.for %arg5 = %c0_i32 to %1 step %c1_i32  : i32 {
      %c0_2 = arith.constant 0 : index
      %2 = arith.index_cast %arg5 : i32 to index
      %c0_3 = arith.constant 0 : index
      %c0_4 = arith.constant 0 : index
      %3 = vector.load %arg1[%c0_2, %2, %c0_3, %c0_4] : memref<1x27x27x64xbf16, #tpu.memory_space<vmem>>, vector<1x1x27x64xbf16>
      %4 = vector.shape_cast %3 : vector<1x1x27x64xbf16> to vector<27x64xbf16>
      %c1_i32_5 = arith.constant 1 : i32
      %5 = arith.addi %arg5, %c1_i32_5 : i32
      %c0_6 = arith.constant 0 : index
      %6 = arith.index_cast %5 : i32 to index
      %c0_7 = arith.constant 0 : index
      %c0_8 = arith.constant 0 : index
      %7 = vector.load %arg1[%c0_6, %6, %c0_7, %c0_8] : memref<1x27x27x64xbf16, #tpu.memory_space<vmem>>, vector<1x1x27x64xbf16>
      %8 = vector.shape_cast %7 : vector<1x1x27x64xbf16> to vector<27x64xbf16>
      %9 = vector.extract_strided_slice %4 {offsets = [0, 0], sizes = [26, 64], strides = [1, 1]} : vector<27x64xbf16> to vector<26x64xbf16>
      %10 = vector.extract_strided_slice %4 {offsets = [1, 0], sizes = [26, 64], strides = [1, 1]} : vector<27x64xbf16> to vector<26x64xbf16>
      %11 = vector.extract_strided_slice %8 {offsets = [0, 0], sizes = [26, 64], strides = [1, 1]} : vector<27x64xbf16> to vector<26x64xbf16>
      %12 = vector.extract_strided_slice %8 {offsets = [1, 0], sizes = [26, 64], strides = [1, 1]} : vector<27x64xbf16> to vector<26x64xbf16>
      %13 = tpu.concatenate %9, %10, %11, %12 in 1 : vector<26x64xbf16>, vector<26x64xbf16>, vector<26x64xbf16>, vector<26x64xbf16> -> vector<26x256xbf16>
      %c0_9 = arith.constant 0 : index
      %c0_10 = arith.constant 0 : index
      %14 = vector.load %arg2[%c0_9, %c0_10] : memref<256x128xbf16, #tpu.memory_space<vmem>>, vector<256x128xbf16>
      %cst = arith.constant dense<0.000000e+00> : vector<26x128xf32>
      %15 = tpu.matmul %13, %14, %cst {dimension_numbers = #tpu.dot_dimension_numbers<[1], [0], [0], [1], [0, 0, 1, 1], [], []>} : vector<26x256xbf16>, vector<256x128xbf16>, vector<26x128xf32> -> vector<26x128xf32>
      %16 = vector.extract_strided_slice %15 {offsets = [0, 0], sizes = [26, 32], strides = [1, 1]} : vector<26x128xf32> to vector<26x32xf32>
      %17 = vector.extract_strided_slice %15 {offsets = [0, 32], sizes = [26, 32], strides = [1, 1]} : vector<26x128xf32> to vector<26x32xf32>
      %18 = arith.maximumf %16, %17 : vector<26x32xf32>
      %19 = vector.extract_strided_slice %15 {offsets = [0, 64], sizes = [26, 32], strides = [1, 1]} : vector<26x128xf32> to vector<26x32xf32>
      %20 = vector.extract_strided_slice %15 {offsets = [0, 96], sizes = [26, 32], strides = [1, 1]} : vector<26x128xf32> to vector<26x32xf32>
      %21 = arith.maximumf %19, %20 : vector<26x32xf32>
      %22 = arith.maximumf %18, %21 : vector<26x32xf32>
      %23 = vector.broadcast %0 : vector<1x32xf32> to vector<26x32xf32>
      %24 = arith.addf %22, %23 : vector<26x32xf32>
      %cst_11 = arith.constant 0.000000e+00 : f32
      %25 = vector.broadcast %cst_11 : f32 to vector<26x32xf32>
      %26 = arith.maximumf %24, %25 : vector<26x32xf32>
      %27 = arith.truncf %26 : vector<26x32xf32> to vector<26x32xbf16>
      %c0_12 = arith.constant 0 : index
      %28 = arith.index_cast %arg5 : i32 to index
      %c0_13 = arith.constant 0 : index
      %c0_14 = arith.constant 0 : index
      %29 = vector.load %arg4[%c0_12, %28, %c0_13, %c0_14] : memref<1x26x26x32xbf16, #tpu.memory_space<vmem>>, vector<1x1x26x32xbf16>
      %30 = vector.shape_cast %29 : vector<1x1x26x32xbf16> to vector<26x32xbf16>
      %31 = vector.shape_cast %27 : vector<26x32xbf16> to vector<1x1x26x32xbf16>
      tpu.vector_store %arg4[%c0_12, %28, %c0_13, %c0_14], %31 {strides = array<i32>} : memref<1x26x26x32xbf16, #tpu.memory_space<vmem>>, vector<1x1x26x32xbf16>,
    }
    %c26_i32_1 = arith.constant 26 : i32
    return
  }
  func.func @transform_0(%arg0: i32) -> (i32, i32, i32, i32) {
    %c0_i32 = arith.constant 0 : i32
    %c0_i32_0 = arith.constant 0 : i32
    %c0_i32_1 = arith.constant 0 : i32
    %c0_i32_2 = arith.constant 0 : i32
    return %arg0, %c0_i32, %c0_i32_0, %c0_i32_1 : i32, i32, i32, i32
  }
  func.func @transform_1(%arg0: i32) -> (i32, i32) {
    %c0_i32 = arith.constant 0 : i32
    %c0_i32_0 = arith.constant 0 : i32
    %c0_i32_1 = arith.constant 0 : i32
    return %c0_i32, %c0_i32_0 : i32, i32
  }
  func.func @transform_2(%arg0: i32) -> (i32, i32) {
    %c0_i32 = arith.constant 0 : i32
    %c0_i32_0 = arith.constant 0 : i32
    %c0_i32_1 = arith.constant 0 : i32
    return %c0_i32, %c0_i32_0 : i32, i32
  }
  func.func @transform_3(%arg0: i32) -> (i32, i32, i32, i32) {
    %c0_i32 = arith.constant 0 : i32
    %c0_i32_0 = arith.constant 0 : i32
    %c0_i32_1 = arith.constant 0 : i32
    %c0_i32_2 = arith.constant 0 : i32
    return %arg0, %c0_i32, %c0_i32_0, %c0_i32_1 : i32, i32, i32, i32
  }
}

module attributes {stable_mosaic.version = 11 : i64} {
  func.func @_conv_pool_kernel(%arg0: i32, %arg1: memref<1x13x13x128xbf16, #tpu.memory_space<vmem>>, %arg2: memref<512x256xbf16, #tpu.memory_space<vmem>>, %arg3: memref<1x64xf32, #tpu.memory_space<vmem>>, %arg4: memref<1x12x12x64xbf16, #tpu.memory_space<vmem>>) attributes {dimension_semantics = [#tpu.dimension_semantics<parallel>], iteration_bounds = array<i64: 2>, scalar_prefetch = 0 : i64, scratch_operands = 0 : i64, tpu.core_type = #tpu.core_type<tc>, window_params = [{transform_indices = @transform_0, window_bounds = array<i64: 1, 13, 13, 128>}, {pipeline_mode = #tpu.pipeline_mode<synchronous>, transform_indices = @transform_1, window_bounds = array<i64: 512, 256>}, {pipeline_mode = #tpu.pipeline_mode<synchronous>, transform_indices = @transform_2, window_bounds = array<i64: 1, 64>}, {transform_indices = @transform_3, window_bounds = array<i64: 1, 12, 12, 64>}]} {
    %c0 = arith.constant 0 : index
    %c0_0 = arith.constant 0 : index
    %0 = vector.load %arg3[%c0, %c0_0] : memref<1x64xf32, #tpu.memory_space<vmem>>, vector<1x64xf32>
    %c0_i32 = arith.constant 0 : i32
    %c12_i32 = arith.constant 12 : i32
    %1 = arith.addi %c0_i32, %c12_i32 : i32
    %c1_i32 = arith.constant 1 : i32
    scf.for %arg5 = %c0_i32 to %1 step %c1_i32  : i32 {
      %c0_2 = arith.constant 0 : index
      %2 = arith.index_cast %arg5 : i32 to index
      %c0_3 = arith.constant 0 : index
      %c0_4 = arith.constant 0 : index
      %3 = vector.load %arg1[%c0_2, %2, %c0_3, %c0_4] : memref<1x13x13x128xbf16, #tpu.memory_space<vmem>>, vector<1x1x13x128xbf16>
      %4 = vector.shape_cast %3 : vector<1x1x13x128xbf16> to vector<13x128xbf16>
      %c1_i32_5 = arith.constant 1 : i32
      %5 = arith.addi %arg5, %c1_i32_5 : i32
      %c0_6 = arith.constant 0 : index
      %6 = arith.index_cast %5 : i32 to index
      %c0_7 = arith.constant 0 : index
      %c0_8 = arith.constant 0 : index
      %7 = vector.load %arg1[%c0_6, %6, %c0_7, %c0_8] : memref<1x13x13x128xbf16, #tpu.memory_space<vmem>>, vector<1x1x13x128xbf16>
      %8 = vector.shape_cast %7 : vector<1x1x13x128xbf16> to vector<13x128xbf16>
      %9 = vector.extract_strided_slice %4 {offsets = [0, 0], sizes = [12, 128], strides = [1, 1]} : vector<13x128xbf16> to vector<12x128xbf16>
      %10 = vector.extract_strided_slice %4 {offsets = [1, 0], sizes = [12, 128], strides = [1, 1]} : vector<13x128xbf16> to vector<12x128xbf16>
      %11 = vector.extract_strided_slice %8 {offsets = [0, 0], sizes = [12, 128], strides = [1, 1]} : vector<13x128xbf16> to vector<12x128xbf16>
      %12 = vector.extract_strided_slice %8 {offsets = [1, 0], sizes = [12, 128], strides = [1, 1]} : vector<13x128xbf16> to vector<12x128xbf16>
      %13 = tpu.concatenate %9, %10, %11, %12 in 1 : vector<12x128xbf16>, vector<12x128xbf16>, vector<12x128xbf16>, vector<12x128xbf16> -> vector<12x512xbf16>
      %c0_9 = arith.constant 0 : index
      %c0_10 = arith.constant 0 : index
      %14 = vector.load %arg2[%c0_9, %c0_10] : memref<512x256xbf16, #tpu.memory_space<vmem>>, vector<512x256xbf16>
      %cst = arith.constant dense<0.000000e+00> : vector<12x256xf32>
      %15 = tpu.matmul %13, %14, %cst {dimension_numbers = #tpu.dot_dimension_numbers<[1], [0], [0], [1], [0, 0, 1, 1], [], []>} : vector<12x512xbf16>, vector<512x256xbf16>, vector<12x256xf32> -> vector<12x256xf32>
      %16 = vector.extract_strided_slice %15 {offsets = [0, 0], sizes = [12, 64], strides = [1, 1]} : vector<12x256xf32> to vector<12x64xf32>
      %17 = vector.extract_strided_slice %15 {offsets = [0, 64], sizes = [12, 64], strides = [1, 1]} : vector<12x256xf32> to vector<12x64xf32>
      %18 = arith.maximumf %16, %17 : vector<12x64xf32>
      %19 = vector.extract_strided_slice %15 {offsets = [0, 128], sizes = [12, 64], strides = [1, 1]} : vector<12x256xf32> to vector<12x64xf32>
      %20 = vector.extract_strided_slice %15 {offsets = [0, 192], sizes = [12, 64], strides = [1, 1]} : vector<12x256xf32> to vector<12x64xf32>
      %21 = arith.maximumf %19, %20 : vector<12x64xf32>
      %22 = arith.maximumf %18, %21 : vector<12x64xf32>
      %23 = vector.broadcast %0 : vector<1x64xf32> to vector<12x64xf32>
      %24 = arith.addf %22, %23 : vector<12x64xf32>
      %cst_11 = arith.constant 0.000000e+00 : f32
      %25 = vector.broadcast %cst_11 : f32 to vector<12x64xf32>
      %26 = arith.maximumf %24, %25 : vector<12x64xf32>
      %27 = arith.truncf %26 : vector<12x64xf32> to vector<12x64xbf16>
      %c0_12 = arith.constant 0 : index
      %28 = arith.index_cast %arg5 : i32 to index
      %c0_13 = arith.constant 0 : index
      %c0_14 = arith.constant 0 : index
      %29 = vector.load %arg4[%c0_12, %28, %c0_13, %c0_14] : memref<1x12x12x64xbf16, #tpu.memory_space<vmem>>, vector<1x1x12x64xbf16>
      %30 = vector.shape_cast %29 : vector<1x1x12x64xbf16> to vector<12x64xbf16>
      %31 = vector.shape_cast %27 : vector<12x64xbf16> to vector<1x1x12x64xbf16>
      tpu.vector_store %arg4[%c0_12, %28, %c0_13, %c0_14], %31 {strides = array<i32>} : memref<1x12x12x64xbf16, #tpu.memory_space<vmem>>, vector<1x1x12x64xbf16>,
    }
    %c12_i32_1 = arith.constant 12 : i32
    return
  }
  func.func @transform_0(%arg0: i32) -> (i32, i32, i32, i32) {
    %c0_i32 = arith.constant 0 : i32
    %c0_i32_0 = arith.constant 0 : i32
    %c0_i32_1 = arith.constant 0 : i32
    %c0_i32_2 = arith.constant 0 : i32
    return %arg0, %c0_i32, %c0_i32_0, %c0_i32_1 : i32, i32, i32, i32
  }
  func.func @transform_1(%arg0: i32) -> (i32, i32) {
    %c0_i32 = arith.constant 0 : i32
    %c0_i32_0 = arith.constant 0 : i32
    %c0_i32_1 = arith.constant 0 : i32
    return %c0_i32, %c0_i32_0 : i32, i32
  }
  func.func @transform_2(%arg0: i32) -> (i32, i32) {
    %c0_i32 = arith.constant 0 : i32
    %c0_i32_0 = arith.constant 0 : i32
    %c0_i32_1 = arith.constant 0 : i32
    return %c0_i32, %c0_i32_0 : i32, i32
  }
  func.func @transform_3(%arg0: i32) -> (i32, i32, i32, i32) {
    %c0_i32 = arith.constant 0 : i32
    %c0_i32_0 = arith.constant 0 : i32
    %c0_i32_1 = arith.constant 0 : i32
    %c0_i32_2 = arith.constant 0 : i32
    return %arg0, %c0_i32, %c0_i32_0, %c0_i32_1 : i32, i32, i32, i32
  }
}

module attributes {stable_mosaic.version = 11 : i64} {
  func.func @_conv_pool_kernel(%arg0: i32, %arg1: memref<1x6x6x256xbf16, #tpu.memory_space<vmem>>, %arg2: memref<1024x384xbf16, #tpu.memory_space<vmem>>, %arg3: memref<1x96xf32, #tpu.memory_space<vmem>>, %arg4: memref<1x5x5x96xbf16, #tpu.memory_space<vmem>>) attributes {dimension_semantics = [#tpu.dimension_semantics<parallel>], iteration_bounds = array<i64: 2>, scalar_prefetch = 0 : i64, scratch_operands = 0 : i64, tpu.core_type = #tpu.core_type<tc>, window_params = [{transform_indices = @transform_0, window_bounds = array<i64: 1, 6, 6, 256>}, {pipeline_mode = #tpu.pipeline_mode<synchronous>, transform_indices = @transform_1, window_bounds = array<i64: 1024, 384>}, {pipeline_mode = #tpu.pipeline_mode<synchronous>, transform_indices = @transform_2, window_bounds = array<i64: 1, 96>}, {transform_indices = @transform_3, window_bounds = array<i64: 1, 5, 5, 96>}]} {
    %c0 = arith.constant 0 : index
    %c0_0 = arith.constant 0 : index
    %0 = vector.load %arg3[%c0, %c0_0] : memref<1x96xf32, #tpu.memory_space<vmem>>, vector<1x96xf32>
    %c0_i32 = arith.constant 0 : i32
    %c5_i32 = arith.constant 5 : i32
    %1 = arith.addi %c0_i32, %c5_i32 : i32
    %c1_i32 = arith.constant 1 : i32
    scf.for %arg5 = %c0_i32 to %1 step %c1_i32  : i32 {
      %c0_2 = arith.constant 0 : index
      %2 = arith.index_cast %arg5 : i32 to index
      %c0_3 = arith.constant 0 : index
      %c0_4 = arith.constant 0 : index
      %3 = vector.load %arg1[%c0_2, %2, %c0_3, %c0_4] : memref<1x6x6x256xbf16, #tpu.memory_space<vmem>>, vector<1x1x6x256xbf16>
      %4 = vector.shape_cast %3 : vector<1x1x6x256xbf16> to vector<6x256xbf16>
      %c1_i32_5 = arith.constant 1 : i32
      %5 = arith.addi %arg5, %c1_i32_5 : i32
      %c0_6 = arith.constant 0 : index
      %6 = arith.index_cast %5 : i32 to index
      %c0_7 = arith.constant 0 : index
      %c0_8 = arith.constant 0 : index
      %7 = vector.load %arg1[%c0_6, %6, %c0_7, %c0_8] : memref<1x6x6x256xbf16, #tpu.memory_space<vmem>>, vector<1x1x6x256xbf16>
      %8 = vector.shape_cast %7 : vector<1x1x6x256xbf16> to vector<6x256xbf16>
      %9 = vector.extract_strided_slice %4 {offsets = [0, 0], sizes = [5, 256], strides = [1, 1]} : vector<6x256xbf16> to vector<5x256xbf16>
      %10 = vector.extract_strided_slice %4 {offsets = [1, 0], sizes = [5, 256], strides = [1, 1]} : vector<6x256xbf16> to vector<5x256xbf16>
      %11 = vector.extract_strided_slice %8 {offsets = [0, 0], sizes = [5, 256], strides = [1, 1]} : vector<6x256xbf16> to vector<5x256xbf16>
      %12 = vector.extract_strided_slice %8 {offsets = [1, 0], sizes = [5, 256], strides = [1, 1]} : vector<6x256xbf16> to vector<5x256xbf16>
      %13 = tpu.concatenate %9, %10, %11, %12 in 1 : vector<5x256xbf16>, vector<5x256xbf16>, vector<5x256xbf16>, vector<5x256xbf16> -> vector<5x1024xbf16>
      %c0_9 = arith.constant 0 : index
      %c0_10 = arith.constant 0 : index
      %14 = vector.load %arg2[%c0_9, %c0_10] : memref<1024x384xbf16, #tpu.memory_space<vmem>>, vector<1024x384xbf16>
      %cst = arith.constant dense<0.000000e+00> : vector<5x384xf32>
      %15 = tpu.matmul %13, %14, %cst {dimension_numbers = #tpu.dot_dimension_numbers<[1], [0], [0], [1], [0, 0, 1, 1], [], []>} : vector<5x1024xbf16>, vector<1024x384xbf16>, vector<5x384xf32> -> vector<5x384xf32>
      %16 = vector.extract_strided_slice %15 {offsets = [0, 0], sizes = [5, 96], strides = [1, 1]} : vector<5x384xf32> to vector<5x96xf32>
      %17 = vector.extract_strided_slice %15 {offsets = [0, 96], sizes = [5, 96], strides = [1, 1]} : vector<5x384xf32> to vector<5x96xf32>
      %18 = arith.maximumf %16, %17 : vector<5x96xf32>
      %19 = vector.extract_strided_slice %15 {offsets = [0, 192], sizes = [5, 96], strides = [1, 1]} : vector<5x384xf32> to vector<5x96xf32>
      %20 = vector.extract_strided_slice %15 {offsets = [0, 288], sizes = [5, 96], strides = [1, 1]} : vector<5x384xf32> to vector<5x96xf32>
      %21 = arith.maximumf %19, %20 : vector<5x96xf32>
      %22 = arith.maximumf %18, %21 : vector<5x96xf32>
      %23 = vector.broadcast %0 : vector<1x96xf32> to vector<5x96xf32>
      %24 = arith.addf %22, %23 : vector<5x96xf32>
      %cst_11 = arith.constant 0.000000e+00 : f32
      %25 = vector.broadcast %cst_11 : f32 to vector<5x96xf32>
      %26 = arith.maximumf %24, %25 : vector<5x96xf32>
      %27 = arith.truncf %26 : vector<5x96xf32> to vector<5x96xbf16>
      %c0_12 = arith.constant 0 : index
      %28 = arith.index_cast %arg5 : i32 to index
      %c0_13 = arith.constant 0 : index
      %c0_14 = arith.constant 0 : index
      %29 = vector.load %arg4[%c0_12, %28, %c0_13, %c0_14] : memref<1x5x5x96xbf16, #tpu.memory_space<vmem>>, vector<1x1x5x96xbf16>
      %30 = vector.shape_cast %29 : vector<1x1x5x96xbf16> to vector<5x96xbf16>
      %31 = vector.shape_cast %27 : vector<5x96xbf16> to vector<1x1x5x96xbf16>
      tpu.vector_store %arg4[%c0_12, %28, %c0_13, %c0_14], %31 {strides = array<i32>} : memref<1x5x5x96xbf16, #tpu.memory_space<vmem>>, vector<1x1x5x96xbf16>,
    }
    %c5_i32_1 = arith.constant 5 : i32
    return
  }
  func.func @transform_0(%arg0: i32) -> (i32, i32, i32, i32) {
    %c0_i32 = arith.constant 0 : i32
    %c0_i32_0 = arith.constant 0 : i32
    %c0_i32_1 = arith.constant 0 : i32
    %c0_i32_2 = arith.constant 0 : i32
    return %arg0, %c0_i32, %c0_i32_0, %c0_i32_1 : i32, i32, i32, i32
  }
  func.func @transform_1(%arg0: i32) -> (i32, i32) {
    %c0_i32 = arith.constant 0 : i32
    %c0_i32_0 = arith.constant 0 : i32
    %c0_i32_1 = arith.constant 0 : i32
    return %c0_i32, %c0_i32_0 : i32, i32
  }
  func.func @transform_2(%arg0: i32) -> (i32, i32) {
    %c0_i32 = arith.constant 0 : i32
    %c0_i32_0 = arith.constant 0 : i32
    %c0_i32_1 = arith.constant 0 : i32
    return %c0_i32, %c0_i32_0 : i32, i32
  }
  func.func @transform_3(%arg0: i32) -> (i32, i32, i32, i32) {
    %c0_i32 = arith.constant 0 : i32
    %c0_i32_0 = arith.constant 0 : i32
    %c0_i32_1 = arith.constant 0 : i32
    %c0_i32_2 = arith.constant 0 : i32
    return %arg0, %c0_i32, %c0_i32_0, %c0_i32_1 : i32, i32, i32, i32
  }
}

</mosaic_0001>

<bundles_post_ra>
// kernel: simple_cnn_forward.5
= control target key start
LH: loop header
LB: loop body
LE: loop exit
PB: predicated region body
PF: predicated region fallthrough
CT: control target
= control target key end

     0   :  { %s1204_s12 = smov 0   ;;  %s1528_s0 = inlined_call_operand.vmem [shape: bf16[2,112,112,32], index: 0, kind: input, shape index: {}]   ;;  %s1529_s1 = inlined_call_operand.vmem [shape: bf16[128,32], index: 1, kind: input, shape index: {}]   ;;  %s1530_s2 = inlined_call_operand.vmem [shape: f32[1,8], index: 2, kind: input, shape index: {}]   ;;  %s1531_s3 = inlined_call_operand.vmem [shape: bf16[2,111,111,8], index: 3, kind: output, shape index: {}]  }
   0x1 LB: > { %s961_s13 = sadd.s32 4294967295, %s1171_s12   ;;  %p965_p0 = scmp.ge.s32.totalorder %s1171_s12, 1  ;;  %s1171_s12 = sphi %s1204_s12, %s13_s12  }
   0x2   : > { %p137_p1 = scmp.lt.s32.totalorder %s1171_s12, 3 }
   0x4   : > { %p138_p2 = pnand %p965_p0, %p137_p1 }
   0x5   : > { %p161_p3 = scmp.lt.s32.totalorder (!%p138_p2), %s961_s13, 1  ;;  %s1227_s24 = smov (!%p138_p2), 0  }
   0x6   : > { %141 = sbr.rel (%p138_p2) target bundleno = 626 (0x272), region = 32 }
   0xb   : > { %v1215_v0 = vld [vmem:[%s1530_s2] ss:$0 sm:$0xff]  ;;  %s1533_s13 = smov (!%p161_p3, %s961_s13), 1 }
   0xc   : > { %s1114_s16 = smul.u32 6272, %s1533_s13 }
   0xd   : > { %s1115_s17 = smul.u32 6216, %s1533_s13 }
   0xe   : > { %s1220_s20 = scalar_lea.vmem %s1528_s0, %s1114_s16 }
   0xf   : > { %s1225_s23 = scalar_lea.vmem %s1531_s3, %s1115_s17 }
  0x10 LB: >> { %v1177_v1 = vmov 0.0   ;;  %v1153_v2 = vld [vmem:[%s1529_s1 + $0x38] sm:$0xff]   ;;  %s1023_s27 = smul.u32 56, %s1175_s24  ;;  %vm249_vm0 = vsmask.f32 7424  ;;  %v1154_v3 = vld [vmem:[%s1529_s1 + $0x30] sm:$0xff]   ;;  %s1175_s24 = sphi %s1227_s24, %s178_s24  }
  0x11   : >> { %1054 = vmatprep.subr.bf16.mxu0 %v1177_v1  ;;  %1098 = vmatprep.subr.bf16.mxu1 %v1177_v1  ;;  %v1155_v5 = vld [vmem:[%s1529_s1 + $0x28] sm:$0xff]   ;;  %s1178_s6 = smov 64   ;;  %v1156_v13 = vld [vmem:[%s1529_s1 + $0x20] sm:$0xff]   ;;  %vm1179_vm1 = vmmov 0   ;;  %s1180_s9 = smov 96   ;;  %v1157_v62 = vld [vmem:[%s1529_s1 + $0x18] sm:$0xff]  }
  0x12   : >> { %1055 = vmatpush3.bf16.msra.mxu0 %v1153_v2  ;;  %1106 = vmatpush3.bf16.msra.mxu1 %v1153_v2  ;;  %s1244_s30 = scalar_lea.vmem %s1220_s20, %s1023_s27  ;;  %s1181_s10 = smov 32   ;;  %vm437_vm2 = vcmask 261120   ;;  %vm452_vm3 = vcmask 523264   ;;  %vm467_vm4 = vcmask 785408   ;;  %vm874_vm5 = vcmask 60416  }
  0x13   : >> { %1056 = vmatprep.subr.bf16.mxu0 %v1177_v1  ;;  %1099 = vmatprep.subr.bf16.mxu1 %v1177_v1  ;;  %v1139_v4 = vld [vmem:[%s1244_s30 + $0x38] sm:$0xff]   ;;  %v1255_v8 = vld [vmem:[%s1244_s30 + $0x40] sm:$0xff]   ;;  %v1269_v15 = vld [vmem:[%s1244_s30 + $0x8] sm:$0xff]   ;;  %s1182_s21 = smov 120   ;;  %s1183_s22 = smov 112  }
  0x14   : >> { %v1140_v6 = vld [vmem:[%s1244_s30 + $0x58] sm:$0xff]   ;;  %354 = vrot.lane.b32.xlu0 %v1139_v4, %s1178_s6  ;;  %v371_v7 = vshll.u32 %v1139_v4, 16  ;;  %v369_v10 = vshrl.u32 %v1139_v4, 16  ;;  %v376_v12 = vshll.u32 %v1255_v8, 16  ;;  %1070 = vmatprep.mubr.msk.bf16.mxu0 %vm1179_vm1, %v1177_v1  ;;  %v1266_v14 = vld [vmem:[%s1244_s30] sm:$0xff]   ;;  %v258_v23 = vshll.u32 %v1269_v15, 16  ;;  %s1471_s25 = scalar_lea.vmem %s1225_s23, %s1023_s27 }
  0x15   : >> { %362 = vrot.lane.b32.xlu1 %v1140_v6, %s1178_s6  ;;  %v400_v9 = vshll.u32 %v1140_v6, 16  ;;  %v404_v17 = vshrl.u32 %v1140_v6, 16  ;;  %1086 = vmatprep.mubr.msk.bf16.mxu1 %vm1179_vm1, %v1177_v1  ;;  %v1279_v20 = vld [vmem:[%s1244_s30 + $0x20] sm:$0xff]   ;;  %v251_v21 = vshrl.u32 %v1266_v14, 16  ;;  %v253_v22 = vshll.u32 %v1266_v14, 16  ;;  %v1285_v24 = vld [vmem:[%s1244_s30 + $0x28] sm:$0xff]  }
  0x16   : >> { %1057 = vmatpush3.bf16.msra.mxu0 %v1154_v3  ;;  %v373_v11 = vrot.slane %v371_v7, 1  ;;  %1107 = vmatpush3.bf16.msra.mxu1 %v1154_v3  ;;  %v378_v19 = vrot.slane %v376_v12, 1  ;;  %v282_v26 = vshll.u32 %v1279_v20, 16  ;;  %v286_v27 = vshrl.u32 %v1279_v20, 16  ;;  %v1294_v31 = vld [vmem:[%s1244_s30 + $0x10] sm:$0xff]   ;;  %v1298_v33 = vld [vmem:[%s1244_s30 + $0x60] sm:$0xff]  }
  0x17   : >> { %1058 = vmatprep.subr.bf16.mxu0 %v1177_v1  ;;  %v1271_v16 = vrot.slane %v400_v9, 1  ;;  %1100 = vmatprep.subr.bf16.mxu1 %v1177_v1  ;;  %v255_v28 = vrot.slane %v253_v22, 1  ;;  %v260_v29 = vrot.slane %v258_v23, 1  ;;  %v290_v30 = vshll.u32 %v1285_v24, 16  ;;  %v1305_v36 = vld [vmem:[%s1244_s30 + $0x48] sm:$0xff]   ;;  %v1314_v45 = vld [vmem:[%s1244_s30 + $0x30] sm:$0xff]  }
  0x18   : >> { %356 = vrot.lane.b32.xlu0 %v1255_v8, %s1178_s6  ;;  %v374_v18 = vor.u32 %v373_v11, %v369_v10  ;;  %v262_v32 = vshrl.u32 %v1269_v15, 16  ;;  %v1301_v34 = vrot.slane %v282_v26, 1  ;;  %v266_v40 = vshll.u32 %v1294_v31, 16  ;;  %v1322_v52 = vld [vmem:[%s1244_s30 + $0x18] sm:$0xff]   ;;  %v1151_v60 = vld [vmem:[%s1244_s30 + $0x68] sm:$0xff]   ;;  %s178_s24 = sadd.s32 1, %s1175_s24  }
  0x19   : >> { %v406_v35 = vor.u32 %v404_v17, %v1271_v16  ;;  %v256_v37 = vor.u32 %v255_v28, %v251_v21  ;;  %v292_v38 = vrot.slane %v290_v30, 1  ;;  %v408_v42 = vshll.u32 %v1298_v33, 16  ;;  %v1159_v17 = vld [vmem:[%s1529_s1 + $0x8] sm:$0xff]   ;;  %p175_p4 = scmp.ge.s32.totalorder %s178_s24, 111  }
  0x1a   : >> { %1059 = vmatpush3.bf16.msra.mxu0 %v1155_v5  ;;  %v379_v25 = vsel %vm249_vm0, %v374_v18, %v378_v19  ;;  %1108 = vmatpush3.bf16.msra.mxu1 %v1155_v5  ;;  %v264_v39 = vor.u32 %v262_v32, %v260_v29  ;;  %v288_v41 = vor.u32 %v286_v27, %v1301_v34  ;;  %v380_v43 = vshrl.u32 %v1255_v8, 16  ;;  %v1152_v5 = vld [vmem:[%s1244_s30 + $0x50] sm:$0xff]  }
  0x1b   : >> { %1060 = vmatprep.subr.bf16.mxu0 %v1177_v1  ;;  %423 = vrot.lane.b32.xlu1 %v379_v25, %s1180_s9  ;;  %v384_v44 = vshll.u32 %v1305_v36, 16  ;;  %v261_v46 = vsel %vm249_vm0, %v256_v37, %v260_v29  ;;  %v268_v47 = vrot.slane %v266_v40, 1  ;;  %v294_v48 = vshrl.u32 %v1285_v24, 16  ;;  %v1158_v8 = vld [vmem:[%s1529_s1 + $0x10] sm:$0xff]   ;;  %v1160_v25 = vld [vmem:[%s1529_s1] sm:$0xff]  }
  0x1c   : >> { %1101 = vmatprep.subr.bf16.mxu1 %v1177_v1  ;;  %305 = vrot.lane.b32.xlu0 %v261_v46, %s1181_s10  ;;  %v293_v49 = vsel %vm249_vm0, %v288_v41, %v292_v38  ;;  %v410_v50 = vrot.slane %v408_v42, 1  ;;  %v382_v54 = vor.u32 %v380_v43, %v378_v19  ;;  %v298_v55 = vshll.u32 %v1314_v45, 16 }
  0x1d   : >> { %v386_v51 = vrot.slane %v384_v44, 1  ;;  %v269_v53 = vsel %vm249_vm0, %v264_v39, %v268_v47  ;;  %v270_v56 = vshrl.u32 %v1294_v31, 16  ;;  %v296_v58 = vor.u32 %v294_v48, %v292_v38 }
  0x1e   : >> { %1061 = vmatpush3.bf16.msra.mxu0 %v1156_v13  ;;  %1109 = vmatpush3.bf16.msra.mxu1 %v1156_v13  ;;  %v411_v57 = vsel %vm249_vm0, %v406_v35, %v410_v50  ;;  %v274_v59 = vshll.u32 %v1322_v52, 16  ;;  %v300_v61 = vrot.slane %v298_v55, 1  ;;  %v412_v4 = vshrl.u32 %v1298_v33, 16 }
  0x1f   : >> { %1062 = vmatprep.subr.bf16.mxu0 %v1177_v1  ;;  %1102 = vmatprep.subr.bf16.mxu1 %v1177_v1  ;;  %v387_v63 = vsel %vm249_vm0, %v382_v54, %v386_v51  ;;  %v272_v2 = vor.u32 %v270_v56, %v268_v47  ;;  %v416_v7 = vshll.u32 %v1151_v60, 16  ;;  %v388_v10 = vshrl.u32 %v1305_v36, 16 }
  0x20   : >> { %313 = vrot.lane.b32.xlu1 %v293_v49, %s1181_s10  ;;  %307 = vrot.lane.b32.xlu0 %v269_v53, %s1181_s10  ;;  %v276_v3 = vrot.slane %v274_v59, 1  ;;  %v301_v6 = vsel %vm249_vm0, %v296_v58, %v300_v61  ;;  %v392_v11 = vshll.u32 %v1152_v5, 16  ;;  %v414_v12 = vor.u32 %v412_v4, %v410_v50 }
  0x21   : >> { %v418_v13 = vrot.slane %v416_v7, 1  ;;  %v390_v18 = vor.u32 %v388_v10, %v386_v51  ;;  %v302_v21 = vshrl.u32 %v1314_v45, 16  ;;  %v278_v22 = vshrl.u32 %v1322_v52, 16 }
  0x22   : >> { %1063 = vmatpush3.bf16.msra.mxu0 %v1157_v62  ;;  %1110 = vmatpush3.bf16.msra.mxu1 %v1157_v62  ;;  %v277_v9 = vsel %vm249_vm0, %v272_v2, %v276_v3  ;;  %v394_v19 = vrot.slane %v392_v11, 1  ;;  %v420_v30 = vshrl.u32 %v1151_v60, 16  ;;  %v396_v32 = vshrl.u32 %v1152_v5, 16 }
  0x23   : >> { %1064 = vmatprep.subr.bf16.mxu0 %v1177_v1  ;;  %1103 = vmatprep.subr.bf16.mxu1 %v1177_v1  ;;  %v419_v23 = vsel %vm249_vm0, %v414_v12, %v418_v13  ;;  %v304_v27 = vor.u32 %v302_v21, %v300_v61  ;;  %v280_v28 = vor.u32 %v278_v22, %v276_v3  ;;  %vm889_vm6 = vsmask.f32 3328 }
  0x24   : >> { %431 = vrot.lane.b32.xlu1 %v411_v57, %s1180_s9  ;;  %425 = vrot.lane.b32.xlu0 %v387_v63, %s1180_s9  ;;  %v395_v26 = vsel %vm249_vm0, %v390_v18, %v394_v19  ;;  %v398_v35 = vor.u32 %v396_v32, %v394_v19  ;;  %vm890_vm7 = vmand %vm874_vm5, %vm889_vm6 }
  0x25   : >> { %v285_v29 = vsel %vm249_vm0, %v280_v28, %v1301_v34 }
  0x26   : >> { %1065 = vmatpush3.bf16.msra.mxu0 %v1158_v8  ;;  %1111 = vmatpush3.bf16.msra.mxu1 %v1158_v8 }
  0x27   : >> { %1066 = vmatprep.subr.bf16.mxu0 %v1177_v1  ;;  %1104 = vmatprep.subr.bf16.mxu1 %v1177_v1 }
  0x28   : >> { %315 = vrot.lane.b32.xlu1 %v301_v6, %s1181_s10  ;;  %309 = vrot.lane.b32.xlu0 %v277_v9, %s1181_s10 }
  0x2a   : >> { %1067 = vmatpush3.bf16.msra.mxu0 %v1159_v17  ;;  %1112 = vmatpush3.bf16.msra.mxu1 %v1159_v17 }
  0x2b   : >> { %1068 = vmatprep.subr.bf16.mxu0 %v1177_v1  ;;  %1105 = vmatprep.subr.bf16.mxu1 %v1177_v1 }
  0x2c   : >> { %364 = vrot.lane.b32.xlu1 %v1298_v33, %s1178_s6  ;;  %358 = vrot.lane.b32.xlu0 %v1305_v36, %s1178_s6  ;;  %v422_v33 = vor.u32 %v420_v30, %v418_v13  ;;  %v403_v36 = vsel %vm249_vm0, %v398_v35, %v1271_v16 }
  0x2e   : >> { %1069 = vmatpush3.bf16.msra.mxu0 %v1160_v25  ;;  %1113 = vmatpush3.bf16.msra.mxu1 %v1160_v25 }
  0x30   : >> { %433 = vrot.lane.b32.xlu1 %v419_v23, %s1180_s9  ;;  %427 = vrot.lane.b32.xlu0 %v395_v26, %s1180_s9 }
  0x34   : >> { %317 = vrot.lane.b32.xlu1 %v304_v27, %s1181_s10  ;;  %311 = vrot.lane.b32.xlu0 %v285_v29, %s1181_s10 }
  0x38   : >> { %366 = vrot.lane.b32.xlu1 %v1151_v60, %s1178_s6  ;;  %360 = vrot.lane.b32.xlu0 %v1152_v5, %s1178_s6 }
  0x3c   : >> { %435 = vrot.lane.b32.xlu1 %v422_v33, %s1180_s9  ;;  %429 = vrot.lane.b32.xlu0 %v403_v36, %s1180_s9 }
  0x86   : >> { %v355_v37 = vpop.permute.xlu0 %354 }
  0x87   : >> { %v363_v38 = vpop.permute.xlu1 %362 }
  0x8a   : >> { %v357_v34 = vpop.permute.xlu0 %356 }
  0x8d   : >> { %v424_v39 = vpop.permute.xlu1 %423 }
  0x8e   : >> { %v306_v40 = vpop.permute.xlu0 %305 }
  0x8f   : >> { %v439_v41 = vsel %vm437_vm2, %v1266_v14, %v306_v40 }
  0x90   : >> { %v454_v44 = vsel %vm452_vm3, %v439_v41, %v355_v37 }
  0x91   : >> { %v469_v16 = vsel %vm467_vm4, %v454_v44, %v424_v39 }
  0x92   : >> { %v314_v42 = vpop.permute.xlu1 %313  ;;  %1071 = vmatmul.mubr.bf16.vlgmr.msra.gmra.mxu0 %v469_v16  ;;  %v308_v46 = vpop.permute.xlu0 %307 }
  0x93   : >> { %v447_v43 = vsel %vm437_vm2, %v1279_v20, %v314_v42  ;;  %1074 = vmatprep.mubr.msk.bf16.mxu0 %vm1179_vm1, %v1177_v1  ;;  %v441_v14 = vsel %vm437_vm2, %v1269_v15, %v308_v46 }
  0x94   : >> { %v462_v48 = vsel %vm452_vm3, %v447_v43, %v363_v38  ;;  %v456_v51 = vsel %vm452_vm3, %v441_v14, %v357_v34 }
  0x96   : >> { %v432_v47 = vpop.permute.xlu1 %431  ;;  %v426_v50 = vpop.permute.xlu0 %425 }
  0x97   : >> { %v481_v49 = vsel %vm467_vm4, %v462_v48, %v432_v47  ;;  %v472_v53 = vsel %vm467_vm4, %v456_v51, %v426_v50 }
  0x98   : >> { %1087 = vmatmul.mubr.bf16.vlgmr.msra.gmra.mxu1 %v481_v49 }
  0x99   : >> { %1090 = vmatprep.mubr.msk.bf16.mxu1 %vm1179_vm1, %v1177_v1 }
  0x9a   : >> { %v316_v20 = vpop.permute.xlu1 %315  ;;  %1075 = vmatmul.mubr.bf16.gmra.mxu0 %v472_v53  ;;  %v310_v54 = vpop.permute.xlu0 %309 }
  0x9b   : >> { %1078 = vmatprep.mubr.msk.bf16.mxu0 %vm1179_vm1, %v1177_v1  ;;  %v443_v56 = vsel %vm437_vm2, %v1294_v31, %v310_v54  ;;  %v449_v15 = vsel %vm437_vm2, %v1285_v24, %v316_v20 }
  0x9e   : >> { %v365_v55 = vpop.permute.xlu1 %364  ;;  %v359_v57 = vpop.permute.xlu0 %358 }
  0x9f   : >> { %v464_v58 = vsel %vm452_vm3, %v449_v15, %v365_v55  ;;  %v458_v60 = vsel %vm452_vm3, %v443_v56, %v359_v57 }
  0xa2   : >> { %v434_v59 = vpop.permute.xlu1 %433  ;;  %v428_v62 = vpop.permute.xlu0 %427 }
  0xa3   : >> { %v484_v61 = vsel %vm467_vm4, %v464_v58, %v434_v59  ;;  %v475_v63 = vsel %vm467_vm4, %v458_v60, %v428_v62 }
  0xa4   : >> { %1091 = vmatmul.mubr.bf16.gmra.mxu1 %v484_v61  ;;  %1079 = vmatmul.mubr.bf16.gmra.mxu0 %v475_v63 }
  0xa5   : >> { %1094 = vmatprep.mubr.msk.bf16.mxu1 %vm1179_vm1, %v1177_v1  ;;  %1082 = vmatprep.mubr.msk.bf16.mxu0 %vm1179_vm1, %v1177_v1 }
  0xa6   : >> { %v318_v2 = vpop.permute.xlu1 %317  ;;  %v312_v24 = vpop.permute.xlu0 %311 }
  0xa7   : >> { %v445_v3 = vsel %vm437_vm2, %v1322_v52, %v312_v24  ;;  %v451_v4 = vsel %vm437_vm2, %v1314_v45, %v318_v2 }
  0xaa   : >> { %v367_v31 = vpop.permute.xlu1 %366  ;;  %v361_v5 = vpop.permute.xlu0 %360 }
  0xab   : >> { %v466_v6 = vsel %vm452_vm3, %v451_v4, %v367_v31  ;;  %v460_v8 = vsel %vm452_vm3, %v445_v3, %v361_v5 }
  0xae   : >> { %v436_v7 = vpop.permute.xlu1 %435  ;;  %v430_v10 = vpop.permute.xlu0 %429 }
  0xaf   : >> { %v487_v9 = vsel %vm467_vm4, %v466_v6, %v436_v7  ;;  %v478_v1 = vsel %vm467_vm4, %v460_v8, %v430_v10 }
  0xb0   : >> { %1095 = vmatmul.mubr.bf16.gmra.mxu1 %v487_v9  ;;  %1083 = vmatmul.mubr.bf16.gmra.mxu0 %v478_v1 }
 0x152   : >> { %v587_v11 = vpop.f32.mrf.mxu0 }
 0x153   : >> { %656 = vrot.lane.b32.xlu0 %v587_v11, %s1182_s21 }
 0x154   : >> { %v1072_v52 = vpop.f32.mrf.mxu0 }
 0x156   : >> { %v590_v45 = vpop.f32.mrf.mxu0 }
 0x157   : >> { %658 = vrot.lane.b32.xlu1 %v590_v45, %s1182_s21 }
 0x158   : >> { %v619_v12 = vpop.f32.mrf.mxu1  ;;  %v1073_v17 = vpop.f32.mrf.mxu0 }
 0x159   : >> { %672 = vrot.lane.b32.xlu0 %v619_v12, %s1182_s21 }
 0x15a   : >> { %v1088_v13 = vpop.f32.mrf.mxu1  ;;  %v595_v19 = vpop.f32.mrf.mxu0 }
 0x15c   : >> { %v622_v18 = vpop.f32.mrf.mxu1  ;;  %v1076_v22 = vpop.f32.mrf.mxu0 }
 0x15d   : >> { %674 = vrot.lane.b32.xlu1 %v622_v18, %s1182_s21  ;;  %660 = vrot.lane.b32.xlu0 %v595_v19, %s1182_s21 }
 0x15e   : >> { %v1089_v21 = vpop.f32.mrf.mxu1  ;;  %v598_v23 = vpop.f32.mrf.mxu0 }
 0x160   : >> { %v1077_v25 = vpop.f32.mrf.mxu0 }
 0x161   : >> { %662 = vrot.lane.b32.xlu1 %v598_v23, %s1182_s21 }
 0x164   : >> { %v627_v26 = vpop.f32.mrf.mxu1  ;;  %v603_v28 = vpop.f32.mrf.mxu0 }
 0x165   : >> { %676 = vrot.lane.b32.xlu0 %v627_v26, %s1182_s21 }
 0x166   : >> { %v1092_v27 = vpop.f32.mrf.mxu1  ;;  %v1080_v30 = vpop.f32.mrf.mxu0 }
 0x168   : >> { %v630_v29 = vpop.f32.mrf.mxu1  ;;  %v606_v33 = vpop.f32.mrf.mxu0 }
 0x169   : >> { %664 = vrot.lane.b32.xlu0 %v603_v28, %s1182_s21 }
 0x16a   : >> { %v1093_v32 = vpop.f32.mrf.mxu1  ;;  %v1081_v35 = vpop.f32.mrf.mxu0 }
 0x170   : >> { %v635_v36 = vpop.f32.mrf.mxu1  ;;  %v611_v38 = vpop.f32.mrf.mxu0 }
 0x171   : >> { %668 = vrot.lane.b32.xlu0 %v611_v38, %s1182_s21 }
 0x172   : >> { %v1096_v37 = vpop.f32.mrf.mxu1  ;;  %v1084_v39 = vpop.f32.mrf.mxu0 }
 0x174   : >> { %v638_v34 = vpop.f32.mrf.mxu1  ;;  %v614_v41 = vpop.f32.mrf.mxu0 }
 0x175   : >> { %682 = vrot.lane.b32.xlu1 %v638_v34, %s1182_s21  ;;  %680 = vrot.lane.b32.xlu0 %v635_v36, %s1182_s21 }
 0x176   : >> { %v1097_v40 = vpop.f32.mrf.mxu1  ;;  %v1085_v42 = vpop.f32.mrf.mxu0 }
 0x179   : >> { %666 = vrot.lane.b32.xlu1 %v606_v33, %s1182_s21 }
 0x17d   : >> { %670 = vrot.lane.b32.xlu1 %v614_v41, %s1182_s21 }
 0x181   : >> { %678 = vrot.lane.b32.xlu1 %v630_v29, %s1182_s21 }
 0x1c5   : >> { %v657_v43 = vpop.permute.xlu0 %656 }
 0x1c6   : >> { %v698_v44 = vmax.f32 %v587_v11, %v657_v43 }
 0x1c8   : >> { %726 = vrot.lane.b32.xlu0 %v698_v44, %s1183_s22 }
 0x1c9   : >> { %v659_v16 = vpop.permute.xlu1 %658 }
 0x1ca   : >> { %v699_v47 = vmax.f32 %v590_v45, %v659_v16 }
 0x1cb   : >> { %v673_v46 = vpop.permute.xlu0 %672 }
 0x1cc   : >> { %v706_v48 = vmax.f32 %v619_v12, %v673_v46  ;;  %728 = vrot.lane.b32.xlu1 %v699_v47, %s1183_s22 }
 0x1ce   : >> { %742 = vrot.lane.b32.xlu0 %v706_v48, %s1183_s22 }
 0x1cf   : >> { %v675_v49 = vpop.permute.xlu1 %674  ;;  %v661_v14 = vpop.permute.xlu0 %660 }
 0x1d0   : >> { %v707_v50 = vmax.f32 %v622_v18, %v675_v49  ;;  %v700_v20 = vmax.f32 %v595_v19, %v661_v14 }
 0x1d2   : >> { %744 = vrot.lane.b32.xlu1 %v707_v50, %s1183_s22  ;;  %730 = vrot.lane.b32.xlu0 %v700_v20, %s1183_s22 }
 0x1d3   : >> { %v663_v51 = vpop.permute.xlu1 %662 }
 0x1d4   : >> { %v701_v53 = vmax.f32 %v598_v23, %v663_v51 }
 0x1d6   : >> { %732 = vrot.lane.b32.xlu1 %v701_v53, %s1183_s22 }
 0x1d7   : >> { %v677_v54 = vpop.permute.xlu0 %676 }
 0x1d8   : >> { %v708_v55 = vmax.f32 %v627_v26, %v677_v54 }
 0x1da   : >> { %746 = vrot.lane.b32.xlu0 %v708_v55, %s1183_s22 }
 0x1db   : >> { %v665_v56 = vpop.permute.xlu0 %664 }
 0x1dc   : >> { %v1439_v15 = vmax.f32 %v603_v28, %v665_v56 }
 0x1de   : >> { %734 = vrot.lane.b32.xlu0 %v1439_v15, %s1183_s22 }
 0x1e3   : >> { %v669_v57 = vpop.permute.xlu0 %668 }
 0x1e4   : >> { %v1443_v58 = vmax.f32 %v611_v38, %v669_v57 }
 0x1e6   : >> { %738 = vrot.lane.b32.xlu0 %v1443_v58, %s1183_s22 }
 0x1e7   : >> { %v683_v59 = vpop.permute.xlu1 %682  ;;  %v681_v61 = vpop.permute.xlu0 %680 }
 0x1e8   : >> { %v1445_v60 = vmax.f32 %v638_v34, %v683_v59  ;;  %v1451_v62 = vmax.f32 %v635_v36, %v681_v61 }
 0x1ea   : >> { %752 = vrot.lane.b32.xlu1 %v1445_v60, %s1183_s22  ;;  %750 = vrot.lane.b32.xlu0 %v1451_v62, %s1183_s22 }
 0x1eb   : >> { %v667_v63 = vpop.permute.xlu1 %666 }
 0x1ec   : >> { %v1453_v2 = vmax.f32 %v606_v33, %v667_v63 }
 0x1ee   : >> { %736 = vrot.lane.b32.xlu1 %v1453_v2, %s1183_s22 }
 0x1ef   : >> { %v671_v24 = vpop.permute.xlu1 %670 }
 0x1f0   : >> { %v1459_v31 = vmax.f32 %v614_v41, %v671_v24 }
 0x1f2   : >> { %740 = vrot.lane.b32.xlu1 %v1459_v31, %s1183_s22 }
 0x1f3   : >> { %v679_v3 = vpop.permute.xlu1 %678 }
 0x1f4   : >> { %v1463_v4 = vmax.f32 %v630_v29, %v679_v3 }
 0x1f6   : >> { %748 = vrot.lane.b32.xlu1 %v1463_v4, %s1183_s22 }
 0x23a   : >> { %v727_v5 = vpop.permute.xlu0 %726 }
 0x23b   : >> { %v768_v6 = vmax.f32 %v698_v44, %v727_v5 }
 0x23d   : >> { %v788_v7 = vadd.f32 %v1215_v0, %v768_v6 }
 0x23e   : >> { %v729_v8 = vpop.permute.xlu1 %728 }
 0x23f   : >> { %v802_v10 = vmax.f32 %v788_v7, 0.0  ;;  %v769_v1 = vmax.f32 %v699_v47, %v729_v8 }
 0x240   : >> { %v743_v9 = vpop.permute.xlu0 %742 }
 0x241   : >> { %v776_v11 = vmax.f32 %v706_v48, %v743_v9  ;;  %v1024_v52 = vpack.c.bf16 %v802_v10, %v802_v10  ;;  %v789_v12 = vadd.f32 %v1215_v0, %v769_v1 }
 0x243   : >> { %v796_v45 = vadd.f32 %v1215_v0, %v776_v11  ;;  %875 = vst.msk [vmem:[%s1471_s25] sm:$0xf] %vm874_vm5, %v1024_v52  ;;  %v803_v18 = vmax.f32 %v789_v12, 0.0 }
 0x244   : >> { %v745_v13 = vpop.permute.xlu1 %744  ;;  %v731_v17 = vpop.permute.xlu0 %730 }
 0x245   : >> { %v810_v19 = vmax.f32 %v796_v45, 0.0  ;;  %v777_v21 = vmax.f32 %v707_v50, %v745_v13  ;;  %v770_v22 = vmax.f32 %v700_v20, %v731_v17  ;;  %v1025_v23 = vpack.c.bf16 %v803_v18, %v803_v18 }
 0x247   : >> { %v1032_v25 = vpack.c.bf16 %v810_v19, %v810_v19  ;;  %v797_v26 = vadd.f32 %v1215_v0, %v777_v21  ;;  %v790_v27 = vadd.f32 %v1215_v0, %v770_v22  ;;  %876 = vst.msk [vmem:[%s1471_s25 + $0x4] sm:$0xf] %vm874_vm5, %v1025_v23 }
 0x248   : >> { %v733_v28 = vpop.permute.xlu1 %732 }
 0x249   : >> { %883 = vst.msk [vmem:[%s1471_s25 + $0x20] sm:$0xf] %vm874_vm5, %v1032_v25  ;;  %v811_v29 = vmax.f32 %v797_v26, 0.0  ;;  %v804_v30 = vmax.f32 %v790_v27, 0.0  ;;  %v771_v32 = vmax.f32 %v701_v53, %v733_v28 }
 0x24b   : >> { %v1033_v33 = vpack.c.bf16 %v811_v29, %v811_v29  ;;  %v1026_v35 = vpack.c.bf16 %v804_v30, %v804_v30  ;;  %v791_v36 = vadd.f32 %v1215_v0, %v771_v32 }
 0x24c   : >> { %v747_v37 = vpop.permute.xlu0 %746 }
 0x24d   : >> { %v778_v38 = vmax.f32 %v708_v55, %v747_v37  ;;  %884 = vst.msk [vmem:[%s1471_s25 + $0x24] sm:$0xf] %vm874_vm5, %v1033_v33  ;;  %877 = vst.msk [vmem:[%s1471_s25 + $0x8] sm:$0xf] %vm874_vm5, %v1026_v35  ;;  %v805_v34 = vmax.f32 %v791_v36, 0.0 }
 0x24f   : >> { %v798_v39 = vadd.f32 %v1215_v0, %v778_v38  ;;  %v1027_v40 = vpack.c.bf16 %v805_v34, %v805_v34 }
 0x250   : >> { %v735_v41 = vpop.permute.xlu0 %734 }
 0x251   : >> { %v812_v42 = vmax.f32 %v798_v39, 0.0  ;;  %v772_v43 = vmax.f32 %v1439_v15, %v735_v41  ;;  %878 = vst.msk [vmem:[%s1471_s25 + $0xc] sm:$0xf] %vm874_vm5, %v1027_v40 }
 0x253   : >> { %v1034_v44 = vpack.c.bf16 %v812_v42, %v812_v42  ;;  %v792_v16 = vadd.f32 %v1215_v0, %v772_v43 }
 0x255   : >> { %885 = vst.msk [vmem:[%s1471_s25 + $0x28] sm:$0xf] %vm874_vm5, %v1034_v44  ;;  %v806_v46 = vmax.f32 %v792_v16, 0.0 }
 0x257   : >> { %v1028_v47 = vpack.c.bf16 %v806_v46, %v806_v46 }
 0x258   : >> { %v739_v48 = vpop.permute.xlu0 %738 }
 0x259   : >> { %879 = vst.msk [vmem:[%s1471_s25 + $0x10] sm:$0xf] %vm874_vm5, %v1028_v47  ;;  %v774_v49 = vmax.f32 %v1443_v58, %v739_v48  ;;  %v891_v58 = vld [vmem:[%s1471_s25 + $0x34] sm:$0xf] }
 0x25b   : >> { %v794_v20 = vadd.f32 %v1215_v0, %v774_v49 }
 0x25c   : >> { %v753_v14 = vpop.permute.xlu1 %752  ;;  %v751_v53 = vpop.permute.xlu0 %750 }
 0x25d   : >> { %v781_v50 = vmax.f32 %v1445_v60, %v753_v14  ;;  %v808_v54 = vmax.f32 %v794_v20, 0.0  ;;  %v780_v55 = vmax.f32 %v1451_v62, %v751_v53 }
 0x25f   : >> { %v801_v51 = vadd.f32 %v1215_v0, %v781_v50  ;;  %v1030_v59 = vpack.c.bf16 %v808_v54, %v808_v54  ;;  %v800_v60 = vadd.f32 %v1215_v0, %v780_v55 }
 0x260   : >> { %v737_v56 = vpop.permute.xlu1 %736 }
 0x261   : >> { %v815_v15 = vmax.f32 %v801_v51, 0.0  ;;  %v773_v57 = vmax.f32 %v1453_v2, %v737_v56  ;;  %881 = vst.msk [vmem:[%s1471_s25 + $0x18] sm:$0xf] %vm874_vm5, %v1030_v59  ;;  %v814_v24 = vmax.f32 %v800_v60, 0.0 }
 0x263   : >> { %v1037_v61 = vpack.c.bf16 %v815_v15, %v815_v15  ;;  %v793_v63 = vadd.f32 %v1215_v0, %v773_v57  ;;  %v1036_v6 = vpack.c.bf16 %v814_v24, %v814_v24 }
 0x264   : >> { %v741_v62 = vpop.permute.xlu1 %740 }
 0x265   : >> { %v892_v3 = vsel %vm890_vm7, %v1037_v61, %v891_v58  ;;  %v807_v5 = vmax.f32 %v793_v63, 0.0  ;;  %v775_v2 = vmax.f32 %v1459_v31, %v741_v62  ;;  %887 = vst.msk [vmem:[%s1471_s25 + $0x30] sm:$0xf] %vm874_vm5, %v1036_v6 }
 0x266   : >> { %893 = vst [vmem:[%s1471_s25 + $0x34] sm:$0xf] %v892_v3 }
 0x267   : >> { %v1029_v7 = vpack.c.bf16 %v807_v5, %v807_v5  ;;  %v795_v8 = vadd.f32 %v1215_v0, %v775_v2 }
 0x268   : >> { %v749_v9 = vpop.permute.xlu1 %748 }
 0x269   : >> { %880 = vst.msk [vmem:[%s1471_s25 + $0x14] sm:$0xf] %vm874_vm5, %v1029_v7  ;;  %v809_v10 = vmax.f32 %v795_v8, 0.0  ;;  %v779_v1 = vmax.f32 %v1463_v4, %v749_v9 }
 0x26b   : >> { %v1031_v11 = vpack.c.bf16 %v809_v10, %v809_v10  ;;  %v799_v52 = vadd.f32 %v1215_v0, %v779_v1 }
 0x26d   : >> { %882 = vst.msk [vmem:[%s1471_s25 + $0x1c] sm:$0xf] %vm874_vm5, %v1031_v11  ;;  %v813_v12 = vmax.f32 %v799_v52, 0.0  ;;  %177 = sbr.rel (!%p175_p4) target bundleno = 16 (0x10), region = 72 }
 0x26f   : >> { %v1035_v31 = vpack.c.bf16 %v813_v12, %v813_v12 }
 0x271   : >> { %886 = vst.msk [vmem:[%s1471_s25 + $0x2c] sm:$0xf] %vm874_vm5, %v1035_v31 }
 0x272 PF: > { %s13_s12 = sadd.s32 1, %s1171_s12  }
 0x273   : > { %p10_p5 = scmp.ge.s32.totalorder %s13_s12, 4  }
 0x275   :  { %12 = sbr.rel (!%p10_p5) target bundleno = 1 (0x1), region = 83 }

// kernel: simple_cnn_forward.6
= control target key start
LH: loop header
LB: loop body
LE: loop exit
PB: predicated region body
PF: predicated region fallthrough
CT: control target
= control target key end

     0   :  { %s860_s12 = smov 0   ;;  %s998_s0 = inlined_call_operand.vmem [shape: bf16[2,55,55,32], index: 0, kind: input, shape index: {}]   ;;  %s999_s1 = inlined_call_operand.vmem [shape: bf16[128,64], index: 1, kind: input, shape index: {}]   ;;  %s1000_s2 = inlined_call_operand.vmem [shape: f32[1,16], index: 2, kind: input, shape index: {}]   ;;  %s1001_s3 = inlined_call_operand.vmem [shape: bf16[2,54,54,16], index: 3, kind: output, shape index: {}]  }
   0x1 LB: > { %s679_s13 = sadd.s32 4294967295, %s830_s12   ;;  %p683_p0 = scmp.ge.s32.totalorder %s830_s12, 1  ;;  %s830_s12 = sphi %s860_s12, %s13_s12  }
   0x2   : > { %p137_p1 = scmp.lt.s32.totalorder %s830_s12, 3 }
   0x4   : > { %p138_p2 = pnand %p683_p0, %p137_p1 }
   0x5   : > { %p161_p3 = scmp.lt.s32.totalorder (!%p138_p2), %s679_s13, 1  ;;  %s883_s24 = smov (!%p138_p2), 0  }
   0x6   : > { %141 = sbr.rel (%p138_p2) target bundleno = 604 (0x25c), region = 32 }
   0xb   : > { %v871_v0 = vld [vmem:[%s1000_s2] ss:$0 sm:$0xff]  ;;  %s1003_s13 = smov (!%p161_p3, %s679_s13), 1 }
   0xc   : > { %s782_s16 = smul.u32 1540, %s1003_s13 }
   0xd   : > { %s783_s17 = smul.u32 1512, %s1003_s13 }
   0xe   : > { %s876_s20 = scalar_lea.vmem %s998_s0, %s782_s16 }
   0xf   : > { %s881_s23 = scalar_lea.vmem %s1001_s3, %s783_s17 }
  0x10 LB: >> { %v812_v1 = vld [vmem:[%s999_s1 + $0x38] sm:$0xff]   ;;  %v813_v2 = vld [vmem:[%s999_s1 + $0x30] sm:$0xff]   ;;  %s721_s29 = smul.u32 28, %s834_s24  ;;  %v814_v3 = vld [vmem:[%s999_s1 + $0x28] sm:$0xff]   ;;  %vm218_vm0 = vsmask.f32 7424  ;;  %s834_s24 = sphi %s883_s24, %s178_s24  }
  0x11   : >> { %742 = vmatprep.subr.bf16.mxu0 %v812_v1  ;;  %766 = vmatprep.subr.bf16.mxu1 %v812_v1  ;;  %s836_s6 = smov 64   ;;  %v815_v9 = vld [vmem:[%s999_s1 + $0x20] sm:$0xff]   ;;  %v816_v28 = vld [vmem:[%s999_s1 + $0x18] sm:$0xff]   ;;  %v817_v36 = vld [vmem:[%s999_s1 + $0x10] sm:$0xff]   ;;  %s837_s14 = smov 32   ;;  %vm323_vm1 = vcmask 261120  }
  0x12   : >> { %743 = vmatpush3.bf16.msra.mxu0 %v812_v1  ;;  %774 = vmatpush3.bf16.msra.mxu1 %v812_v1  ;;  %s181_s30 = scalar_lea.vmem %s876_s20, %s721_s29  ;;  %v818_v47 = vld [vmem:[%s999_s1 + $0x8] sm:$0xff]   ;;  %v819_v52 = vld [vmem:[%s999_s1] sm:$0xff]   ;;  %s838_s19 = smov 96   ;;  %vm332_vm2 = vcmask 523264   ;;  %vm341_vm3 = vcmask 785408   ;;  %vm603_vm4 = vcmask 125952  }
  0x13   : >> { %744 = vmatprep.subr.bf16.mxu0 %v813_v2  ;;  %767 = vmatprep.subr.bf16.mxu1 %v813_v2  ;;  %v804_v4 = vld [vmem:[%s181_s30 + $0x2c] sm:$0xff]   ;;  %v805_v5 = vld [vmem:[%s181_s30 + $0x1c] sm:$0xff]   ;;  %v901_v7 = vld [vmem:[%s181_s30 + $0x34] ss:$0 sps:$4 sm:$0xff]   ;;  %s839_s21 = smov 112   ;;  %s971_s22 = scalar_lea.vmem %s881_s23, %s721_s29  ;;  %vm610_vm5 = vcmask 124928  }
  0x14   : >> { %280 = vrot.lane.b32.xlu1 %v804_v4, %s836_s6  ;;  %v300_v6 = vshll.u32 %v804_v4, 16  ;;  %v903_v8 = vld [vmem:[%s181_s30 + $0x24] sm:$0xff]   ;;  %276 = vrot.lane.b32.xlu0 %v805_v5, %s836_s6  ;;  %v287_v10 = vshll.u32 %v805_v5, 16  ;;  %v910_v12 = vld [vmem:[%s181_s30 + $0x18] ss:$0 sps:$4 sm:$0xff]   ;;  %v304_v20 = vshrl.u32 %v804_v4, 16 }
  0x15   : >> { %v908_v11 = vld [vmem:[%s181_s30] sm:$0xff]   ;;  %v243_v13 = vshll.u32 %v910_v12, 16  ;;  %v247_v14 = vshrl.u32 %v910_v12, 16  ;;  %v915_v15 = vld [vmem:[%s181_s30 + $0x8] sm:$0xff]   ;;  %v919_v18 = vld [vmem:[%s181_s30 + $0x10] sm:$0xff]   ;;  %v308_v27 = vshll.u32 %v901_v7, 16 }
  0x16   : >> { %745 = vmatpush3.bf16.msra.mxu0 %v813_v2  ;;  %775 = vmatpush3.bf16.msra.mxu1 %v813_v2  ;;  %v220_v16 = vshrl.u32 %v908_v11, 16  ;;  %v222_v17 = vshll.u32 %v908_v11, 16  ;;  %v302_v19 = vrot.slane %v300_v6, 1  ;;  %v227_v23 = vshll.u32 %v915_v15, 16  ;;  %s178_s24 = sadd.s32 1, %s834_s24  }
  0x17   : >> { %746 = vmatprep.subr.bf16.mxu0 %v814_v3  ;;  %768 = vmatprep.subr.bf16.mxu1 %v814_v3  ;;  %v245_v21 = vrot.slane %v243_v13, 1  ;;  %v231_v24 = vshrl.u32 %v915_v15, 16  ;;  %v235_v25 = vshll.u32 %v919_v18, 16  ;;  %v239_v26 = vshrl.u32 %v919_v18, 16  ;;  %p175_p4 = scmp.ge.s32.totalorder %s178_s24, 54  }
  0x18   : >> { %282 = vrot.lane.b32.xlu1 %v901_v7, %s836_s6  ;;  %278 = vrot.lane.b32.xlu0 %v903_v8, %s836_s6  ;;  %v224_v22 = vrot.slane %v222_v17, 1  ;;  %v229_v31 = vrot.slane %v227_v23, 1  ;;  %v285_v32 = vshrl.u32 %v805_v5, 16  ;;  %v289_v34 = vrot.slane %v287_v10, 1 }
  0x19   : >> { %v249_v29 = vor.u32 %v247_v14, %v245_v21  ;;  %v237_v33 = vrot.slane %v235_v25, 1  ;;  %v292_v35 = vshll.u32 %v903_v8, 16  ;;  %v306_v40 = vor.u32 %v304_v20, %v302_v19 }
  0x1a   : >> { %747 = vmatpush3.bf16.msra.mxu0 %v814_v3  ;;  %776 = vmatpush3.bf16.msra.mxu1 %v814_v3  ;;  %v225_v30 = vor.u32 %v224_v22, %v220_v16  ;;  %v233_v38 = vor.u32 %v231_v24, %v229_v31  ;;  %v310_v41 = vrot.slane %v308_v27, 1  ;;  %v290_v43 = vor.u32 %v289_v34, %v285_v32 }
  0x1b   : >> { %748 = vmatprep.subr.bf16.mxu0 %v815_v9  ;;  %769 = vmatprep.subr.bf16.mxu1 %v815_v9  ;;  %v241_v39 = vor.u32 %v239_v26, %v237_v33  ;;  %v294_v44 = vrot.slane %v292_v35, 1  ;;  %v296_v45 = vshrl.u32 %v903_v8, 16  ;;  %v312_v48 = vshrl.u32 %v901_v7, 16 }
  0x1c   : >> { %256 = vrot.lane.b32.xlu1 %v249_v29, %s837_s14  ;;  %v230_v37 = vsel %vm218_vm0, %v225_v30, %v229_v31  ;;  %v238_v42 = vsel %vm218_vm0, %v233_v38, %v237_v33  ;;  %v311_v49 = vsel %vm218_vm0, %v306_v40, %v310_v41 }
  0x1d   : >> { %250 = vrot.lane.b32.xlu0 %v230_v37, %s837_s14  ;;  %v246_v46 = vsel %vm218_vm0, %v241_v39, %v245_v21  ;;  %v295_v50 = vsel %vm218_vm0, %v290_v43, %v294_v44  ;;  %v298_v51 = vor.u32 %v296_v45, %v294_v44  ;;  %v314_v53 = vor.u32 %v312_v48, %v310_v41 }
  0x1e   : >> { %749 = vmatpush3.bf16.msra.mxu0 %v815_v9  ;;  %777 = vmatpush3.bf16.msra.mxu1 %v815_v9 }
  0x1f   : >> { %750 = vmatprep.subr.bf16.mxu0 %v816_v28  ;;  %770 = vmatprep.subr.bf16.mxu1 %v816_v28  ;;  %v303_v54 = vsel %vm218_vm0, %v298_v51, %v302_v19 }
  0x20   : >> { %252 = vrot.lane.b32.xlu1 %v238_v42, %s837_s14 }
  0x21   : >> { %254 = vrot.lane.b32.xlu0 %v246_v46, %s837_s14 }
  0x22   : >> { %751 = vmatpush3.bf16.msra.mxu0 %v816_v28  ;;  %778 = vmatpush3.bf16.msra.mxu1 %v816_v28 }
  0x23   : >> { %752 = vmatprep.subr.bf16.mxu0 %v817_v36  ;;  %771 = vmatprep.subr.bf16.mxu1 %v817_v36 }
  0x24   : >> { %319 = vrot.lane.b32.xlu1 %v311_v49, %s838_s19 }
  0x25   : >> { %315 = vrot.lane.b32.xlu0 %v295_v50, %s838_s19 }
  0x26   : >> { %753 = vmatpush3.bf16.msra.mxu0 %v817_v36  ;;  %779 = vmatpush3.bf16.msra.mxu1 %v817_v36 }
  0x27   : >> { %754 = vmatprep.subr.bf16.mxu0 %v818_v47  ;;  %772 = vmatprep.subr.bf16.mxu1 %v818_v47 }
  0x28   : >> { %321 = vrot.lane.b32.xlu1 %v314_v53, %s838_s19 }
  0x29   : >> { %317 = vrot.lane.b32.xlu0 %v303_v54, %s838_s19 }
  0x2a   : >> { %755 = vmatpush3.bf16.msra.mxu0 %v818_v47  ;;  %780 = vmatpush3.bf16.msra.mxu1 %v818_v47 }
  0x2b   : >> { %756 = vmatprep.subr.bf16.mxu0 %v819_v52  ;;  %773 = vmatprep.subr.bf16.mxu1 %v819_v52 }
  0x2e   : >> { %757 = vmatpush3.bf16.msra.mxu0 %v819_v52  ;;  %781 = vmatpush3.bf16.msra.mxu1 %v819_v52 }
  0x86   : >> { %v281_v55 = vpop.permute.xlu1 %280  ;;  %v277_v56 = vpop.permute.xlu0 %276 }
  0x8a   : >> { %v283_v57 = vpop.permute.xlu1 %282  ;;  %v279_v58 = vpop.permute.xlu0 %278 }
  0x8e   : >> { %v257_v59 = vpop.permute.xlu1 %256 }
  0x8f   : >> { %v251_v60 = vpop.permute.xlu0 %250  ;;  %v331_v4 = vsel %vm323_vm1, %v910_v12, %v257_v59 }
  0x90   : >> { %v325_v63 = vsel %vm323_vm1, %v908_v11, %v251_v60  ;;  %v340_v11 = vsel %vm332_vm2, %v331_v4, %v283_v57 }
  0x91   : >> { %v334_v6 = vsel %vm332_vm2, %v325_v63, %v277_v56 }
  0x92   : >> { %v253_v61 = vpop.permute.xlu1 %252 }
  0x93   : >> { %v255_v62 = vpop.permute.xlu0 %254  ;;  %v327_v8 = vsel %vm323_vm1, %v915_v15, %v253_v61 }
  0x94   : >> { %v329_v1 = vsel %vm323_vm1, %v919_v18, %v255_v62  ;;  %v336_v14 = vsel %vm332_vm2, %v327_v8, %v279_v58 }
  0x95   : >> { %v338_v3 = vsel %vm332_vm2, %v329_v1, %v281_v55 }
  0x96   : >> { %v320_v2 = vpop.permute.xlu1 %319 }
  0x97   : >> { %v316_v5 = vpop.permute.xlu0 %315  ;;  %v349_v7 = vsel %vm341_vm3, %v338_v3, %v320_v2 }
  0x98   : >> { %v343_v9 = vsel %vm341_vm3, %v334_v6, %v316_v5  ;;  %762 = vmatprep.mubr.bf16.mxu1 %v349_v7 }
  0x99   : >> { %758 = vmatprep.mubr.bf16.mxu0 %v343_v9 }
  0x9a   : >> { %v322_v10 = vpop.permute.xlu1 %321 }
  0x9b   : >> { %v318_v13 = vpop.permute.xlu0 %317  ;;  %v352_v16 = vsel %vm341_vm3, %v340_v11, %v322_v10 }
  0x9c   : >> { %v346_v17 = vsel %vm341_vm3, %v336_v14, %v318_v13  ;;  %763 = vmatmul.mubr.bf16.vlgmr.msra.gmra.mxu1 %v352_v16 }
  0x9d   : >> { %759 = vmatmul.mubr.bf16.vlgmr.msra.gmra.mxu0 %v346_v17 }
 0x15c   : >> { %v764_v12 = vpop.f32.mrf.mxu1 }
 0x15d   : >> { %v760_v18 = vpop.f32.mrf.mxu0 }
 0x15e   : >> { %493 = vrot.lane.b32.xlu0 %v760_v18, %s839_s21  ;;  %v468_v19 = vpop.f32.mrf.mxu1 }
 0x15f   : >> { %v452_v15 = vpop.f32.mrf.mxu0 }
 0x160   : >> { %v765_v20 = vpop.f32.mrf.mxu1 }
 0x161   : >> { %v761_v21 = vpop.f32.mrf.mxu0 }
 0x162   : >> { %489 = vrot.lane.b32.xlu0 %v452_v15, %s839_s21  ;;  %495 = vrot.lane.b32.xlu1 %v761_v21, %s839_s21  ;;  %v471_v23 = vpop.f32.mrf.mxu1 }
 0x163   : >> { %v455_v22 = vpop.f32.mrf.mxu0 }
 0x166   : >> { %497 = vrot.lane.b32.xlu0 %v468_v19, %s839_s21  ;;  %491 = vrot.lane.b32.xlu1 %v455_v22, %s839_s21 }
 0x16a   : >> { %501 = vrot.lane.b32.xlu0 %v764_v12, %s839_s21  ;;  %499 = vrot.lane.b32.xlu1 %v471_v23, %s839_s21 }
 0x1d0   : >> { %v494_v24 = vpop.permute.xlu0 %493 }
 0x1d1   : >> { %v512_v25 = vmax.f32 %v760_v18, %v494_v24 }
 0x1d3   : >> { %528 = vrot.lane.b32.xlu1 %v512_v25, %s838_s19 }
 0x1d4   : >> { %v490_v26 = vpop.permute.xlu0 %489  ;;  %v496_v27 = vpop.permute.xlu1 %495 }
 0x1d5   : >> { %v510_v28 = vmax.f32 %v452_v15, %v490_v26  ;;  %v513_v29 = vmax.f32 %v761_v21, %v496_v27 }
 0x1d7   : >> { %530 = vrot.lane.b32.xlu0 %v513_v29, %s838_s19  ;;  %524 = vrot.lane.b32.xlu1 %v510_v28, %s838_s19 }
 0x1d8   : >> { %v498_v30 = vpop.permute.xlu0 %497  ;;  %v492_v31 = vpop.permute.xlu1 %491 }
 0x1d9   : >> { %v514_v32 = vmax.f32 %v468_v19, %v498_v30  ;;  %v511_v33 = vmax.f32 %v455_v22, %v492_v31 }
 0x1db   : >> { %532 = vrot.lane.b32.xlu1 %v514_v32, %s838_s19  ;;  %526 = vrot.lane.b32.xlu0 %v511_v33, %s838_s19 }
 0x1dc   : >> { %v502_v34 = vpop.permute.xlu0 %501  ;;  %v500_v35 = vpop.permute.xlu1 %499 }
 0x1dd   : >> { %v516_v36 = vmax.f32 %v764_v12, %v502_v34  ;;  %v515_v37 = vmax.f32 %v471_v23, %v500_v35 }
 0x1df   : >> { %536 = vrot.lane.b32.xlu1 %v516_v36, %s838_s19  ;;  %534 = vrot.lane.b32.xlu0 %v515_v37, %s838_s19 }
 0x245   : >> { %v529_v38 = vpop.permute.xlu1 %528 }
 0x246   : >> { %v547_v39 = vmax.f32 %v512_v25, %v529_v38 }
 0x248   : >> { %v560_v40 = vadd.f32 %v871_v0, %v547_v39 }
 0x249   : >> { %v531_v41 = vpop.permute.xlu0 %530  ;;  %v525_v42 = vpop.permute.xlu1 %524 }
 0x24a   : >> { %v567_v43 = vmax.f32 %v560_v40, 0.0  ;;  %v548_v44 = vmax.f32 %v513_v29, %v531_v41  ;;  %v545_v45 = vmax.f32 %v510_v28, %v525_v42 }
 0x24c   : >> { %v724_v46 = vpack.c.bf16 %v567_v43, %v567_v43  ;;  %v561_v47 = vadd.f32 %v871_v0, %v548_v44  ;;  %v558_v48 = vadd.f32 %v871_v0, %v545_v45 }
 0x24d   : >> { %v527_v49 = vpop.permute.xlu0 %526  ;;  %v533_v50 = vpop.permute.xlu1 %532 }
 0x24e   : >> { %606 = vst.msk [vmem:[%s971_s22 + $0x8] sm:$0xf] %vm603_vm4, %v724_v46  ;;  %v568_v51 = vmax.f32 %v561_v47, 0.0  ;;  %v565_v52 = vmax.f32 %v558_v48, 0.0  ;;  %v546_v53 = vmax.f32 %v511_v33, %v527_v49  ;;  %v549_v54 = vmax.f32 %v514_v32, %v533_v50 }
 0x250   : >> { %v725_v55 = vpack.c.bf16 %v568_v51, %v568_v51  ;;  %v722_v56 = vpack.c.bf16 %v565_v52, %v565_v52  ;;  %v559_v57 = vadd.f32 %v871_v0, %v546_v53  ;;  %v562_v58 = vadd.f32 %v871_v0, %v549_v54 }
 0x251   : >> { %v535_v59 = vpop.permute.xlu0 %534  ;;  %v537_v60 = vpop.permute.xlu1 %536 }
 0x252   : >> { %607 = vst.msk [vmem:[%s971_s22 + $0xc] sm:$0xf] %vm603_vm4, %v725_v55  ;;  %604 = vst.msk [vmem:[%s971_s22] sm:$0xf] %vm603_vm4, %v722_v56  ;;  %v566_v61 = vmax.f32 %v559_v57, 0.0  ;;  %v569_v62 = vmax.f32 %v562_v58, 0.0  ;;  %v550_v63 = vmax.f32 %v515_v37, %v535_v59  ;;  %v551_v1 = vmax.f32 %v516_v36, %v537_v60 }
 0x254   : >> { %v723_v2 = vpack.c.bf16 %v566_v61, %v566_v61  ;;  %v726_v3 = vpack.c.bf16 %v569_v62, %v569_v62  ;;  %v563_v4 = vadd.f32 %v871_v0, %v550_v63  ;;  %v564_v5 = vadd.f32 %v871_v0, %v551_v1 }
 0x256   : >> { %605 = vst.msk [vmem:[%s971_s22 + $0x4] sm:$0xf] %vm603_vm4, %v723_v2  ;;  %608 = vst.msk [vmem:[%s971_s22 + $0x10] sm:$0xf] %vm603_vm4, %v726_v3  ;;  %v570_v6 = vmax.f32 %v563_v4, 0.0  ;;  %v571_v7 = vmax.f32 %v564_v5, 0.0 }
 0x257   : > { %177 = sbr.rel (!%p175_p4) target bundleno = 16 (0x10), region = 72 }
 0x258   : >> { %v727_v8 = vpack.c.bf16 %v570_v6, %v570_v6  ;;  %v728_v9 = vpack.c.bf16 %v571_v7, %v571_v7 }
 0x25a   : >> { %609 = vst.msk [vmem:[%s971_s22 + $0x14] sm:$0xf] %vm603_vm4, %v727_v8 }
 0x25b   : >> { %611 = vst.msk [vmem:[%s971_s22 + $0x18] sm:$0x7] %vm610_vm5, %v728_v9 }
 0x25c PF: > { %s13_s12 = sadd.s32 1, %s830_s12  }
 0x25d   : > { %p10_p5 = scmp.ge.s32.totalorder %s13_s12, 4  }
 0x25f   :  { %12 = sbr.rel (!%p10_p5) target bundleno = 1 (0x1), region = 83 }

// kernel: simple_cnn_forward.7
= control target key start
LH: loop header
LB: loop body
LE: loop exit
PB: predicated region body
PF: predicated region fallthrough
CT: control target
= control target key end

     0   :  { %s758_s12 = smov 0   ;;  %s881_s0 = inlined_call_operand.vmem [shape: bf16[2,27,27,64], index: 0, kind: input, shape index: {}]   ;;  %s882_s1 = inlined_call_operand.vmem [shape: bf16[256,128], index: 1, kind: input, shape index: {}]   ;;  %s883_s2 = inlined_call_operand.vmem [shape: f32[1,32], index: 2, kind: input, shape index: {}]   ;;  %s884_s3 = inlined_call_operand.vmem [shape: bf16[2,26,26,32], index: 3, kind: output, shape index: {}]  }
   0x1 LB: > { %s588_s13 = sadd.s32 4294967295, %s730_s12   ;;  %p592_p0 = scmp.ge.s32.totalorder %s730_s12, 1  ;;  %s730_s12 = sphi %s758_s12, %s13_s12  }
   0x2   : > { %p137_p1 = scmp.lt.s32.totalorder %s730_s12, 3 }
   0x4   : > { %p138_p2 = pnand %p592_p0, %p137_p1 }
   0x5   : > { %p161_p3 = scmp.lt.s32.totalorder (!%p138_p2), %s588_s13, 1  ;;  %s781_s24 = smov (!%p138_p2), 0  }
   0x6   : > { %141 = sbr.rel (%p138_p2) target bundleno = 590 (0x24e), region = 32 }
   0xb   : > { %v769_v0 = vld [vmem:[%s883_s2] ss:$0 sm:$0xff]  ;;  %s886_s13 = smov (!%p161_p3, %s588_s13), 1 }
   0xc   : > { %s680_s16 = smul.u32 432, %s886_s13 }
   0xd   : > { %s681_s17 = smul.u32 416, %s886_s13 }
   0xe   : > { %s774_s20 = scalar_lea.vmem %s881_s0, %s680_s16 }
   0xf   : > { %s779_s23 = scalar_lea.vmem %s884_s3, %s681_s17 }
  0x10 LB: >> { %v704_v1 = vld [vmem:[%s882_s1 + $0x78] sm:$0xff]   ;;  %s630_s27 = sshll.u32 %s734_s24, 4  ;;  %vm204_vm0 = vsmask.f32 7424  ;;  %v706_v3 = vld [vmem:[%s882_s1 + $0x70] sm:$0xff]   ;;  %v708_v18 = vld [vmem:[%s882_s1 + $0x68] sm:$0xff]   ;;  %s734_s24 = sphi %s781_s24, %s178_s24  }
  0x11   : >> { %636 = vmatprep.subr.bf16.mxu0 %v704_v1  ;;  %v705_v2 = vld [vmem:[%s882_s1 + $0x38] sm:$0xff]   ;;  %664 = vmatprep.subr.bf16.mxu1 %v704_v1  ;;  %s181_s30 = scalar_lea.vmem %s774_s20, %s630_s27  ;;  %v707_v11 = vld [vmem:[%s882_s1 + $0x30] sm:$0xff]   ;;  %v709_v19 = vld [vmem:[%s882_s1 + $0x28] sm:$0xff]   ;;  %s736_s15 = smov 64   ;;  %vm253_vm1 = vcmask 523264   ;;  %vm515_vm2 = vcmask 257024  }
  0x12   : >> { %637 = vmatpush3.bf16.msra.mxu0 %v705_v2  ;;  %672 = vmatpush3.bf16.msra.mxu1 %v705_v2  ;;  %v799_v4 = vld [vmem:[%s181_s30 + $0x10] sm:$0xff]   ;;  %v801_v5 = vld [vmem:[%s181_s30 + $0x18] sm:$0x3f]   ;;  %v806_v9 = vld [vmem:[%s181_s30] sm:$0xff]   ;;  %s737_s11 = smov 96   ;;  %s514_s13 = scalar_lea.vmem %s779_s23, %s630_s27  ;;  %vm519_vm3 = vcmask 253952  }
  0x13   : >> { %638 = vmatprep.subr.bf16.mxu0 %v706_v3  ;;  %665 = vmatprep.subr.bf16.mxu1 %v706_v3  ;;  %v235_v6 = vshrl.u32 %v799_v4, 16  ;;  %v237_v7 = vshll.u32 %v799_v4, 16  ;;  %v242_v8 = vshll.u32 %v801_v5, 16  ;;  %v808_v10 = vld [vmem:[%s181_s30 + $0x8] sm:$0x3f]   ;;  %v206_v14 = vshrl.u32 %v806_v9, 16 }
  0x14   : >> { %v208_v15 = vshll.u32 %v806_v9, 16  ;;  %v213_v16 = vshll.u32 %v808_v10, 16  ;;  %v246_v17 = vshrl.u32 %v801_v5, 16  ;;  %v710_v22 = vld [vmem:[%s882_s1 + $0x60] sm:$0xff]   ;;  %v217_v24 = vshrl.u32 %v808_v10, 16  ;;  %v712_v30 = vld [vmem:[%s882_s1 + $0x58] sm:$0xff]  }
  0x15   : >> { %v239_v12 = vrot.slane %v237_v7, 1  ;;  %v244_v13 = vrot.slane %v242_v8, 1  ;;  %v711_v28 = vld [vmem:[%s882_s1 + $0x20] sm:$0xff]   ;;  %v713_v32 = vld [vmem:[%s882_s1 + $0x18] sm:$0xff]   ;;  %v714_v33 = vld [vmem:[%s882_s1 + $0x50] sm:$0xff]   ;;  %s178_s24 = sadd.s32 1, %s734_s24  }
  0x16   : >> { %639 = vmatpush3.bf16.msra.mxu0 %v707_v11  ;;  %673 = vmatpush3.bf16.msra.mxu1 %v707_v11  ;;  %v210_v21 = vrot.slane %v208_v15, 1  ;;  %v215_v23 = vrot.slane %v213_v16, 1  ;;  %v715_v34 = vld [vmem:[%s882_s1 + $0x10] sm:$0xff]   ;;  %v716_v35 = vld [vmem:[%s882_s1 + $0x48] sm:$0xff]   ;;  %v718_v37 = vld [vmem:[%s882_s1 + $0x40] sm:$0xff]   ;;  %p175_p4 = scmp.ge.s32.totalorder %s178_s24, 26  }
  0x17   : >> { %v240_v20 = vor.u32 %v239_v12, %v235_v6  ;;  %640 = vmatprep.subr.bf16.mxu0 %v708_v18  ;;  %666 = vmatprep.subr.bf16.mxu1 %v708_v18  ;;  %v248_v27 = vor.u32 %v246_v17, %v244_v13  ;;  %v717_v36 = vld [vmem:[%s882_s1 + $0x8] sm:$0xff]   ;;  %v719_v38 = vld [vmem:[%s882_s1] sm:$0xff]  }
  0x18   : >> { %v211_v26 = vor.u32 %v210_v21, %v206_v14  ;;  %v219_v31 = vor.u32 %v217_v24, %v215_v23 }
  0x19   : >> { %v245_v25 = vsel %vm204_vm0, %v240_v20, %v244_v13 }
  0x1a   : >> { %249 = vrot.lane.b32.xlu0 %v245_v25, %s736_s15  ;;  %641 = vmatpush3.bf16.msra.mxu0 %v709_v19  ;;  %v216_v29 = vsel %vm204_vm0, %v211_v26, %v215_v23 }
  0x1b   : >> { %642 = vmatprep.subr.bf16.mxu0 %v710_v22  ;;  %674 = vmatpush3.bf16.msra.mxu1 %v709_v19 }
  0x1c   : >> { %220 = vrot.lane.b32.xlu1 %v216_v29, %s736_s15  ;;  %667 = vmatprep.subr.bf16.mxu1 %v710_v22 }
  0x1e   : >> { %251 = vrot.lane.b32.xlu0 %v248_v27, %s736_s15  ;;  %643 = vmatpush3.bf16.msra.mxu0 %v711_v28 }
  0x1f   : >> { %644 = vmatprep.subr.bf16.mxu0 %v712_v30  ;;  %675 = vmatpush3.bf16.msra.mxu1 %v711_v28 }
  0x20   : >> { %222 = vrot.lane.b32.xlu1 %v219_v31, %s736_s15  ;;  %668 = vmatprep.subr.bf16.mxu1 %v712_v30 }
  0x22   : >> { %645 = vmatpush3.bf16.msra.mxu0 %v713_v32 }
  0x23   : >> { %646 = vmatprep.subr.bf16.mxu0 %v714_v33  ;;  %676 = vmatpush3.bf16.msra.mxu1 %v713_v32 }
  0x24   : >> { %669 = vmatprep.subr.bf16.mxu1 %v714_v33 }
  0x26   : >> { %647 = vmatpush3.bf16.msra.mxu0 %v715_v34 }
  0x27   : >> { %648 = vmatprep.subr.bf16.mxu0 %v716_v35  ;;  %677 = vmatpush3.bf16.msra.mxu1 %v715_v34 }
  0x28   : >> { %670 = vmatprep.subr.bf16.mxu1 %v716_v35 }
  0x2a   : >> { %649 = vmatpush3.bf16.msra.mxu0 %v717_v36 }
  0x2b   : >> { %650 = vmatprep.subr.bf16.mxu0 %v718_v37  ;;  %678 = vmatpush3.bf16.msra.mxu1 %v717_v36 }
  0x2c   : >> { %671 = vmatprep.subr.bf16.mxu1 %v718_v37 }
  0x2e   : >> { %651 = vmatpush3.bf16.msra.mxu0 %v719_v38 }
  0x2f   : >> { %679 = vmatpush3.bf16.msra.mxu1 %v719_v38 }
  0x8c   : >> { %v250_v39 = vpop.permute.xlu0 %249 }
  0x8d   : >> { %v261_v40 = vsel %vm253_vm1, %v799_v4, %v250_v39 }
  0x8e   : >> { %v221_v41 = vpop.permute.xlu1 %220  ;;  %426 = vmatprep.mubr.bf16.mxu0 %v261_v40 }
  0x8f   : >> { %v255_v42 = vsel %vm253_vm1, %v806_v9, %v221_v41 }
  0x90   : >> { %427 = vmatmul.mubr.bf16.vlgmr.msra.gmra.mxu0 %v255_v42  ;;  %v252_v43 = vpop.permute.xlu0 %251 }
  0x91   : >> { %v264_v44 = vsel %vm253_vm1, %v801_v5, %v252_v43 }
  0x92   : >> { %v223_v45 = vpop.permute.xlu1 %222  ;;  %434 = vmatprep.mubr.bf16.mxu1 %v264_v44 }
  0x93   : >> { %v258_v46 = vsel %vm253_vm1, %v808_v10, %v223_v45 }
  0x94   : >> { %435 = vmatmul.mubr.bf16.vlgmr.msra.gmra.mxu1 %v258_v46 }
 0x150   : >> { %v652_v47 = vpop.f32.mrf.mxu0 }
 0x152   : >> { %v653_v48 = vpop.f32.mrf.mxu0 }
 0x153   : >> { %v654_v49 = vadd.f32 %v653_v48, %v652_v47 }
 0x154   : >> { %v655_v50 = vpop.f32.mrf.mxu0  ;;  %v658_v51 = vpop.f32.mrf.mxu1 }
 0x155   : >> { %447 = vrot.lane.b32.xlu0 %v654_v49, %s737_s11 }
 0x156   : >> { %v656_v52 = vpop.f32.mrf.mxu0  ;;  %v659_v53 = vpop.f32.mrf.mxu1 }
 0x157   : >> { %v657_v54 = vadd.f32 %v656_v52, %v655_v50  ;;  %v660_v55 = vadd.f32 %v659_v53, %v658_v51 }
 0x158   : >> { %v661_v56 = vpop.f32.mrf.mxu1 }
 0x159   : >> { %449 = vrot.lane.b32.xlu1 %v657_v54, %s737_s11  ;;  %451 = vrot.lane.b32.xlu0 %v660_v55, %s737_s11 }
 0x15a   : >> { %v662_v57 = vpop.f32.mrf.mxu1 }
 0x15b   : >> { %v663_v58 = vadd.f32 %v662_v57, %v661_v56 }
 0x15d   : >> { %453 = vrot.lane.b32.xlu1 %v663_v58, %s737_s11 }
 0x1c7   : >> { %v448_v59 = vpop.permute.xlu0 %447 }
 0x1c8   : >> { %v459_v60 = vmax.f32 %v654_v49, %v448_v59 }
 0x1ca   : >> { %467 = vrot.lane.b32.xlu0 %v459_v60, %s736_s15 }
 0x1cb   : >> { %v452_v61 = vpop.permute.xlu0 %451  ;;  %v450_v62 = vpop.permute.xlu1 %449 }
 0x1cc   : >> { %v461_v63 = vmax.f32 %v660_v55, %v452_v61  ;;  %v460_v1 = vmax.f32 %v657_v54, %v450_v62 }
 0x1ce   : >> { %471 = vrot.lane.b32.xlu0 %v461_v63, %s736_s15  ;;  %469 = vrot.lane.b32.xlu1 %v460_v1, %s736_s15 }
 0x1cf   : >> { %v454_v2 = vpop.permute.xlu1 %453 }
 0x1d0   : >> { %v462_v3 = vmax.f32 %v663_v58, %v454_v2 }
 0x1d2   : >> { %473 = vrot.lane.b32.xlu1 %v462_v3, %s736_s15 }
 0x23c   : >> { %v468_v4 = vpop.permute.xlu0 %467 }
 0x23d   : >> { %v479_v5 = vmax.f32 %v459_v60, %v468_v4 }
 0x23f   : >> { %v489_v6 = vadd.f32 %v769_v0, %v479_v5 }
 0x240   : >> { %v472_v7 = vpop.permute.xlu0 %471  ;;  %v470_v8 = vpop.permute.xlu1 %469 }
 0x241   : >> { %v493_v9 = vmax.f32 %v489_v6, 0.0  ;;  %v481_v10 = vmax.f32 %v461_v63, %v472_v7  ;;  %v480_v11 = vmax.f32 %v460_v1, %v470_v8 }
 0x243   : >> { %v631_v12 = vpack.c.bf16 %v493_v9, %v493_v9  ;;  %v491_v13 = vadd.f32 %v769_v0, %v481_v10  ;;  %v490_v14 = vadd.f32 %v769_v0, %v480_v11 }
 0x244   : >> { %v474_v15 = vpop.permute.xlu1 %473 }
 0x245   : >> { %516 = vst.msk [vmem:[%s514_s13] sm:$0xf] %vm515_vm2, %v631_v12  ;;  %v495_v16 = vmax.f32 %v491_v13, 0.0  ;;  %v494_v17 = vmax.f32 %v490_v14, 0.0  ;;  %v482_v18 = vmax.f32 %v462_v3, %v474_v15 }
 0x247   : >> { %v633_v19 = vpack.c.bf16 %v495_v16, %v495_v16  ;;  %v632_v20 = vpack.c.bf16 %v494_v17, %v494_v17  ;;  %v492_v21 = vadd.f32 %v769_v0, %v482_v18 }
 0x249   : >> { %518 = vst.msk [vmem:[%s514_s13 + $0x8] sm:$0xf] %vm515_vm2, %v633_v19  ;;  %517 = vst.msk [vmem:[%s514_s13 + $0x4] sm:$0xf] %vm515_vm2, %v632_v20  ;;  %v496_v22 = vmax.f32 %v492_v21, 0.0  ;;  %177 = sbr.rel (!%p175_p4) target bundleno = 16 (0x10), region = 72 }
 0x24b   : >> { %v634_v23 = vpack.c.bf16 %v496_v22, %v496_v22 }
 0x24d   : >> { %520 = vst.msk [vmem:[%s514_s13 + $0xc] sm:$0x1] %vm519_vm3, %v634_v23 }
 0x24e PF: > { %s13_s12 = sadd.s32 1, %s730_s12  }
 0x24f   : > { %p10_p5 = scmp.ge.s32.totalorder %s13_s12, 4  }
 0x251   :  { %12 = sbr.rel (!%p10_p5) target bundleno = 1 (0x1), region = 83 }

// kernel: simple_cnn_forward.8
= control target key start
LH: loop header
LB: loop body
LE: loop exit
PB: predicated region body
PF: predicated region fallthrough
CT: control target
= control target key end

     0   :  { %s1042_s12 = smov 0   ;;  %s1277_s0 = inlined_call_operand.vmem [shape: bf16[2,13,13,128], index: 0, kind: input, shape index: {}]   ;;  %s1278_s1 = inlined_call_operand.vmem [shape: bf16[512,256], index: 1, kind: input, shape index: {}]   ;;  %s1279_s2 = inlined_call_operand.vmem [shape: f32[1,64], index: 2, kind: input, shape index: {}]   ;;  %s1280_s3 = inlined_call_operand.vmem [shape: bf16[2,12,12,64], index: 3, kind: output, shape index: {}]  }
   0x1 LB: > { %s800_s13 = sadd.s32 4294967295, %s1015_s12   ;;  %p804_p0 = scmp.ge.s32.totalorder %s1015_s12, 1  ;;  %s1015_s12 = sphi %s1042_s12, %s13_s12  }
   0x2   : > { %p137_p1 = scmp.lt.s32.totalorder %s1015_s12, 3 }
   0x4   : > { %p138_p2 = pnand %p804_p0, %p137_p1 }
   0x5   : > { %p161_p3 = scmp.lt.s32.totalorder (!%p138_p2), %s800_s13, 1  ;;  %s1065_s24 = smov (!%p138_p2), 0  }
   0x6   : > { %141 = sbr.rel (%p138_p2) target bundleno = 409 (0x199), region = 32 }
   0xb   : > { %v1053_v0 = vld [vmem:[%s1279_s2] ss:$0 sm:$0xff]  ;;  %s1282_s13 = smov (!%p161_p3, %s800_s13), 1 }
   0xc   : > { %s888_s16 = smul.u32 104, %s1282_s13 }
   0xd   : > { %s889_s17 = smul.u32 96, %s1282_s13 }
   0xe   : > { %s1058_s20 = scalar_lea.vmem %s1277_s0, %s888_s16 }
   0xf   : > { %s1063_s23 = scalar_lea.vmem %s1280_s3, %s889_s17 }
  0x10 LB: >> { %v907_v1 = vld [vmem:[%s1278_s1 + $0x74] ss:$8 sps:$4 sm:$0xff]   ;;  %v911_v3 = vld [vmem:[%s1278_s1 + $0x70] ss:$8 sps:$4 sm:$0xff]   ;;  %v913_v5 = vld [vmem:[%s1278_s1 + $0x64] ss:$8 sps:$4 sm:$0xff]   ;;  %s1019_s24 = sphi %s1065_s24, %s177_s24  }
  0x11   : >> { %v909_v2 = vld [vmem:[%s1278_s1 + $0x174] ss:$8 sps:$4 sm:$0xff]   ;;  %601 = vmatprep.subr.bf16.mxu0 %v907_v1  ;;  %v912_v4 = vld [vmem:[%s1278_s1 + $0x170] ss:$8 sps:$4 sm:$0xff]   ;;  %v915_v6 = vld [vmem:[%s1278_s1 + $0x164] ss:$8 sps:$4 sm:$0xff]  }
  0x12   : >> { %644 = vmatprep.subr.bf16.mxu1 %v909_v2  ;;  %602 = vmatpush1.bf16.msra.mxu0 %v911_v3  ;;  %v917_v7 = vld [vmem:[%s1278_s1 + $0x60] ss:$8 sps:$4 sm:$0xff]   ;;  %v919_v9 = vld [vmem:[%s1278_s1 + $0x54] ss:$8 sps:$4 sm:$0xff]   ;;  %v923_v11 = vld [vmem:[%s1278_s1 + $0x50] ss:$8 sps:$4 sm:$0xff]  }
  0x13   : >> { %645 = vmatpush1.bf16.msra.mxu1 %v912_v4  ;;  %603 = vmatprep.subr.bf16.mxu0 %v913_v5  ;;  %v918_v8 = vld [vmem:[%s1278_s1 + $0x160] ss:$8 sps:$4 sm:$0xff]   ;;  %v921_v10 = vld [vmem:[%s1278_s1 + $0x154] ss:$8 sps:$4 sm:$0xff]   ;;  %v924_v12 = vld [vmem:[%s1278_s1 + $0x150] ss:$8 sps:$4 sm:$0xff]  }
  0x14   : >> { %646 = vmatprep.subr.bf16.mxu1 %v915_v6  ;;  %v925_v13 = vld [vmem:[%s1278_s1 + $0x44] ss:$8 sps:$4 sm:$0xff]   ;;  %v929_v15 = vld [vmem:[%s1278_s1 + $0x40] ss:$8 sps:$4 sm:$0xff]   ;;  %v931_v17 = vld [vmem:[%s1278_s1 + $0x34] ss:$8 sps:$4 sm:$0xff]  }
  0x15   : >> { %v927_v14 = vld [vmem:[%s1278_s1 + $0x144] ss:$8 sps:$4 sm:$0xff]   ;;  %v930_v16 = vld [vmem:[%s1278_s1 + $0x140] ss:$8 sps:$4 sm:$0xff]   ;;  %v933_v18 = vld [vmem:[%s1278_s1 + $0x134] ss:$8 sps:$4 sm:$0xff]  }
  0x16   : >> { %604 = vmatpush1.bf16.msra.mxu0 %v917_v7  ;;  %v935_v19 = vld [vmem:[%s1278_s1 + $0x30] ss:$8 sps:$4 sm:$0xff]   ;;  %v937_v21 = vld [vmem:[%s1278_s1 + $0x24] ss:$8 sps:$4 sm:$0xff]   ;;  %v941_v23 = vld [vmem:[%s1278_s1 + $0x20] ss:$8 sps:$4 sm:$0xff]  }
  0x17   : >> { %647 = vmatpush1.bf16.msra.mxu1 %v918_v8  ;;  %605 = vmatprep.subr.bf16.mxu0 %v919_v9  ;;  %v936_v20 = vld [vmem:[%s1278_s1 + $0x130] ss:$8 sps:$4 sm:$0xff]   ;;  %v939_v22 = vld [vmem:[%s1278_s1 + $0x124] ss:$8 sps:$4 sm:$0xff]   ;;  %v942_v24 = vld [vmem:[%s1278_s1 + $0x120] ss:$8 sps:$4 sm:$0xff]  }
  0x18   : >> { %648 = vmatprep.subr.bf16.mxu1 %v921_v10  ;;  %v943_v25 = vld [vmem:[%s1278_s1 + $0x14] ss:$8 sps:$4 sm:$0xff]   ;;  %v947_v27 = vld [vmem:[%s1278_s1 + $0x10] ss:$8 sps:$4 sm:$0xff]   ;;  %v949_v29 = vld [vmem:[%s1278_s1 + $0x4] ss:$8 sps:$4 sm:$0xff]  }
  0x19   : >> { %v945_v26 = vld [vmem:[%s1278_s1 + $0x114] ss:$8 sps:$4 sm:$0xff]   ;;  %v948_v28 = vld [vmem:[%s1278_s1 + $0x110] ss:$8 sps:$4 sm:$0xff]   ;;  %v951_v30 = vld [vmem:[%s1278_s1 + $0x104] ss:$8 sps:$4 sm:$0xff]  }
  0x1a   : >> { %606 = vmatpush1.bf16.msra.mxu0 %v923_v11  ;;  %v953_v31 = vld [vmem:[%s1278_s1] ss:$8 sps:$4 sm:$0xff]   ;;  %v955_v33 = vld [vmem:[%s1278_s1 + $0xf4] ss:$8 sps:$4 sm:$0xff]   ;;  %v959_v35 = vld [vmem:[%s1278_s1 + $0xf0] ss:$8 sps:$4 sm:$0xff]  }
  0x1b   : >> { %649 = vmatpush1.bf16.msra.mxu1 %v924_v12  ;;  %607 = vmatprep.subr.bf16.mxu0 %v925_v13  ;;  %v954_v32 = vld [vmem:[%s1278_s1 + $0x100] ss:$8 sps:$4 sm:$0xff]   ;;  %v957_v34 = vld [vmem:[%s1278_s1 + $0x1f4] ss:$8 sps:$4 sm:$0xff]   ;;  %v960_v36 = vld [vmem:[%s1278_s1 + $0x1f0] ss:$8 sps:$4 sm:$0xff]  }
  0x1c   : >> { %650 = vmatprep.subr.bf16.mxu1 %v927_v14  ;;  %v961_v37 = vld [vmem:[%s1278_s1 + $0xe4] ss:$8 sps:$4 sm:$0xff]   ;;  %v965_v39 = vld [vmem:[%s1278_s1 + $0xe0] ss:$8 sps:$4 sm:$0xff]   ;;  %v967_v41 = vld [vmem:[%s1278_s1 + $0xd4] ss:$8 sps:$4 sm:$0xff]  }
  0x1d   : >> { %v963_v38 = vld [vmem:[%s1278_s1 + $0x1e4] ss:$8 sps:$4 sm:$0xff]   ;;  %v966_v40 = vld [vmem:[%s1278_s1 + $0x1e0] ss:$8 sps:$4 sm:$0xff]   ;;  %v969_v42 = vld [vmem:[%s1278_s1 + $0x1d4] ss:$8 sps:$4 sm:$0xff]  }
  0x1e   : >> { %608 = vmatpush1.bf16.msra.mxu0 %v929_v15  ;;  %s884_s14 = sshll.u32 %s1019_s24, 3  ;;  %v971_v43 = vld [vmem:[%s1278_s1 + $0xd0] ss:$8 sps:$4 sm:$0xff]   ;;  %v973_v45 = vld [vmem:[%s1278_s1 + $0xc4] ss:$8 sps:$4 sm:$0xff]   ;;  %s1021_s16 = smov 64  }
  0x1f   : >> { %651 = vmatpush1.bf16.msra.mxu1 %v930_v16  ;;  %609 = vmatprep.subr.bf16.mxu0 %v931_v17  ;;  %v972_v44 = vld [vmem:[%s1278_s1 + $0x1d0] ss:$8 sps:$4 sm:$0xff]   ;;  %s180_s22 = scalar_lea.vmem %s1058_s20, %s884_s14  ;;  %v975_v46 = vld [vmem:[%s1278_s1 + $0x1c4] ss:$8 sps:$4 sm:$0xff]   ;;  %v977_v47 = vld [vmem:[%s1278_s1 + $0xc0] ss:$8 sps:$4 sm:$0xff]   ;;  %s728_s17 = scalar_lea.vmem %s1063_s23, %s884_s14 }
  0x20   : >> { %652 = vmatprep.subr.bf16.mxu1 %v933_v18  ;;  %v1003_v48 = vld [vmem:[%s180_s22] sm:$0x7f]   ;;  %v1004_v50 = vld [vmem:[%s180_s22 + $0x8] sm:$0x7f]   ;;  %v979_v51 = vld [vmem:[%s1278_s1 + $0xb4] ss:$8 sps:$4 sm:$0xff]  }
  0x21   : >> { %v978_v49 = vld [vmem:[%s1278_s1 + $0x1c0] ss:$8 sps:$4 sm:$0xff]   ;;  %v981_v52 = vld [vmem:[%s1278_s1 + $0x1b4] ss:$8 sps:$4 sm:$0xff]   ;;  %v196_v53 = vshrl.u32 %v1003_v48, 16  ;;  %v198_v54 = vshll.u32 %v1003_v48, 16 }
  0x22   : >> { %610 = vmatpush1.bf16.msra.mxu0 %v935_v19  ;;  %v210_v55 = vshrl.u32 %v1004_v50, 16  ;;  %v212_v56 = vshll.u32 %v1004_v50, 16  ;;  %v983_v58 = vld [vmem:[%s1278_s1 + $0xb0] ss:$8 sps:$4 sm:$0xff]   ;;  %v985_v61 = vld [vmem:[%s1278_s1 + $0xa4] ss:$8 sps:$4 sm:$0xff]  }
  0x23   : >> { %653 = vmatpush1.bf16.msra.mxu1 %v936_v20  ;;  %611 = vmatprep.subr.bf16.mxu0 %v937_v21  ;;  %v200_v57 = vrot.slane %v198_v54, 1  ;;  %v984_v59 = vld [vmem:[%s1278_s1 + $0x1b0] ss:$8 sps:$4 sm:$0xff]   ;;  %v987_v62 = vld [vmem:[%s1278_s1 + $0x1a4] ss:$8 sps:$4 sm:$0xff]   ;;  %vm729_vm0 = vcmask 519168  }
  0x24   : >> { %654 = vmatprep.subr.bf16.mxu1 %v939_v22  ;;  %v214_v60 = vrot.slane %v212_v56, 1  ;;  %v989_v2 = vld [vmem:[%s1278_s1 + $0xa0] ss:$8 sps:$4 sm:$0xff]   ;;  %v991_v4 = vld [vmem:[%s1278_s1 + $0x94] ss:$8 sps:$4 sm:$0xff]   ;;  %vm731_vm1 = vcmask 517120  }
  0x25   : >> { %v201_v63 = vor.u32 %v200_v57, %v196_v53  ;;  %v990_v3 = vld [vmem:[%s1278_s1 + $0x1a0] ss:$8 sps:$4 sm:$0xff]   ;;  %v993_v5 = vld [vmem:[%s1278_s1 + $0x194] ss:$8 sps:$4 sm:$0xff]   ;;  %v995_v6 = vld [vmem:[%s1278_s1 + $0x90] ss:$8 sps:$4 sm:$0xff]  }
  0x26   : >> { %612 = vmatpush1.bf16.msra.mxu0 %v941_v23  ;;  %v215_v1 = vor.u32 %v214_v60, %v210_v55  ;;  %v996_v7 = vld [vmem:[%s1278_s1 + $0x190] ss:$8 sps:$4 sm:$0xff]   ;;  %v997_v8 = vld [vmem:[%s1278_s1 + $0x84] ss:$8 sps:$4 sm:$0xff]   ;;  %v1001_v10 = vld [vmem:[%s1278_s1 + $0x80] ss:$8 sps:$4 sm:$0xff]  }
  0x27   : >> { %655 = vmatpush1.bf16.msra.mxu1 %v942_v24  ;;  %613 = vmatprep.subr.bf16.mxu0 %v943_v25  ;;  %v999_v9 = vld [vmem:[%s1278_s1 + $0x184] ss:$8 sps:$4 sm:$0xff]   ;;  %v1002_v11 = vld [vmem:[%s1278_s1 + $0x180] ss:$8 sps:$4 sm:$0xff]   ;;  %s177_s24 = sadd.s32 1, %s1019_s24  }
  0x28   : >> { %656 = vmatprep.subr.bf16.mxu1 %v945_v26  ;;  %633 = vmatprep.mubr.bf16.mxu0 %v201_v63  ;;  %p174_p4 = scmp.ge.s32.totalorder %s177_s24, 12  }
  0x29   : >> { %676 = vmatprep.mubr.bf16.mxu1 %v215_v1 }
  0x2a   : >> { %614 = vmatpush1.bf16.msra.mxu0 %v947_v27 }
  0x2b   : >> { %657 = vmatpush1.bf16.msra.mxu1 %v948_v28  ;;  %615 = vmatprep.subr.bf16.mxu0 %v949_v29 }
  0x2c   : >> { %658 = vmatprep.subr.bf16.mxu1 %v951_v30 }
  0x2e   : >> { %616 = vmatpush1.bf16.msra.mxu0 %v953_v31 }
  0x2f   : >> { %659 = vmatpush1.bf16.msra.mxu1 %v954_v32  ;;  %617 = vmatprep.subr.bf16.mxu0 %v955_v33 }
  0x30   : >> { %660 = vmatprep.subr.bf16.mxu1 %v957_v34 }
  0x32   : >> { %618 = vmatpush2.bf16.msra.mxu0 %v959_v35 }
  0x33   : >> { %661 = vmatpush2.bf16.msra.mxu1 %v960_v36  ;;  %619 = vmatprep.subr.bf16.mxu0 %v961_v37 }
  0x34   : >> { %662 = vmatprep.subr.bf16.mxu1 %v963_v38 }
  0x36   : >> { %620 = vmatpush2.bf16.msra.mxu0 %v965_v39 }
  0x37   : >> { %663 = vmatpush2.bf16.msra.mxu1 %v966_v40  ;;  %621 = vmatprep.subr.bf16.mxu0 %v967_v41 }
  0x38   : >> { %664 = vmatprep.subr.bf16.mxu1 %v969_v42 }
  0x3a   : >> { %622 = vmatpush2.bf16.msra.mxu0 %v971_v43 }
  0x3b   : >> { %665 = vmatpush2.bf16.msra.mxu1 %v972_v44  ;;  %623 = vmatprep.subr.bf16.mxu0 %v973_v45 }
  0x3c   : >> { %666 = vmatprep.subr.bf16.mxu1 %v975_v46 }
  0x3e   : >> { %624 = vmatpush2.bf16.msra.mxu0 %v977_v47 }
  0x3f   : >> { %667 = vmatpush2.bf16.msra.mxu1 %v978_v49  ;;  %625 = vmatprep.subr.bf16.mxu0 %v979_v51 }
  0x40   : >> { %668 = vmatprep.subr.bf16.mxu1 %v981_v52 }
  0x42   : >> { %626 = vmatpush2.bf16.msra.mxu0 %v983_v58 }
  0x43   : >> { %669 = vmatpush2.bf16.msra.mxu1 %v984_v59  ;;  %627 = vmatprep.subr.bf16.mxu0 %v985_v61 }
  0x44   : >> { %670 = vmatprep.subr.bf16.mxu1 %v987_v62 }
  0x46   : >> { %628 = vmatpush2.bf16.msra.mxu0 %v989_v2 }
  0x47   : >> { %671 = vmatpush2.bf16.msra.mxu1 %v990_v3  ;;  %629 = vmatprep.subr.bf16.mxu0 %v991_v4 }
  0x48   : >> { %672 = vmatprep.subr.bf16.mxu1 %v993_v5 }
  0x4a   : >> { %630 = vmatpush2.bf16.msra.mxu0 %v995_v6 }
  0x4b   : >> { %673 = vmatpush2.bf16.msra.mxu1 %v996_v7  ;;  %631 = vmatprep.subr.bf16.mxu0 %v997_v8 }
  0x4c   : >> { %674 = vmatprep.subr.bf16.mxu1 %v999_v9 }
  0x4e   : >> { %632 = vmatpush2.bf16.msra.mxu0 %v1001_v10 }
  0x4f   : >> { %675 = vmatpush2.bf16.msra.mxu1 %v1002_v11 }
  0x51   : >> { %634 = vmatmul.mubr.bf16.vlgmr.msra.gmra.mxu0 %v1003_v48 }
  0x52   : >> { %677 = vmatmul.mubr.bf16.vlgmr.msra.gmra.mxu1 %v1004_v50 }
 0x111   : >> { %v635_v12 = vpop.f32.mrf.mxu0 }
 0x112   : >> { %v678_v13 = vpop.f32.mrf.mxu1 }
 0x113   : >> { %v679_v14 = vadd.f32 %v678_v13, %v635_v12  ;;  %v637_v15 = vpop.f32.mrf.mxu0 }
 0x114   : >> { %v680_v16 = vpop.f32.mrf.mxu1 }
 0x115   : >> { %v681_v17 = vadd.f32 %v680_v16, %v637_v15  ;;  %689 = vrot.lane.b32.xlu0 %v679_v14, %s1021_s16  ;;  %v639_v18 = vpop.f32.mrf.mxu0 }
 0x116   : >> { %v682_v19 = vpop.f32.mrf.mxu1 }
 0x117   : >> { %v683_v20 = vadd.f32 %v682_v19, %v639_v18  ;;  %699 = vrot.lane.b32.xlu1 %v681_v17, %s1021_s16  ;;  %v641_v21 = vpop.f32.mrf.mxu0 }
 0x118   : >> { %v684_v22 = vpop.f32.mrf.mxu1 }
 0x119   : >> { %v685_v23 = vadd.f32 %v684_v22, %v641_v21  ;;  %691 = vrot.lane.b32.xlu0 %v683_v20, %s1021_s16 }
 0x11b   : >> { %701 = vrot.lane.b32.xlu1 %v685_v23, %s1021_s16 }
 0x187   : >> { %v690_v24 = vpop.permute.xlu0 %689 }
 0x188   : >> { %v695_v26 = vmax.f32 %v679_v14, %v690_v24 }
 0x189   : >> { %v700_v25 = vpop.permute.xlu1 %699 }
 0x18a   : >> { %v705_v27 = vmax.f32 %v681_v17, %v700_v25 }
 0x18b   : >> { %v692_v28 = vpop.permute.xlu0 %691 }
 0x18c   : >> { %v707_v29 = vmax.f32 %v695_v26, %v705_v27  ;;  %v696_v32 = vmax.f32 %v683_v20, %v692_v28 }
 0x18d   : >> { %v702_v30 = vpop.permute.xlu1 %701 }
 0x18e   : >> { %v715_v31 = vadd.f32 %v1053_v0, %v707_v29  ;;  %v706_v33 = vmax.f32 %v685_v23, %v702_v30 }
 0x190   : >> { %v717_v34 = vmax.f32 %v715_v31, 0.0  ;;  %v708_v35 = vmax.f32 %v696_v32, %v706_v33 }
 0x192   : >> { %v885_v36 = vpack.c.bf16 %v717_v34, %v717_v34  ;;  %v716_v37 = vadd.f32 %v1053_v0, %v708_v35 }
 0x194   : >> { %730 = vst.msk [vmem:[%s728_s17] sm:$0xf] %vm729_vm0, %v885_v36  ;;  %v718_v38 = vmax.f32 %v716_v37, 0.0  ;;  %176 = sbr.rel (!%p174_p4) target bundleno = 16 (0x10), region = 72 }
 0x196   : >> { %v886_v39 = vpack.c.bf16 %v718_v38, %v718_v38 }
 0x198   : >> { %732 = vst.msk [vmem:[%s728_s17 + $0x4] sm:$0x3] %vm731_vm1, %v886_v39 }
 0x199 PF: > { %s13_s12 = sadd.s32 1, %s1015_s12  }
 0x19a   : > { %p10_p5 = scmp.ge.s32.totalorder %s13_s12, 4  }
 0x19c   :  { %12 = sbr.rel (!%p10_p5) target bundleno = 1 (0x1), region = 83 }

// kernel: simple_cnn_forward.9
= control target key start
LH: loop header
LB: loop body
LE: loop exit
PB: predicated region body
PF: predicated region fallthrough
CT: control target
= control target key end

     0   :  { %s2566_s12 = smov 0   ;;  %s3231_s0 = inlined_call_operand.vmem [shape: bf16[2,6,6,256], index: 0, kind: input, shape index: {}]   ;;  %s3232_s1 = inlined_call_operand.vmem [shape: bf16[1024,384], index: 1, kind: input, shape index: {}]   ;;  %s3233_s2 = inlined_call_operand.vmem [shape: f32[1,96], index: 2, kind: input, shape index: {}]   ;;  %s3234_s3 = inlined_call_operand.vmem [shape: bf16[2,5,5,96], index: 3, kind: output, shape index: {}]  }
   0x1 LB: > { %s1948_s13 = sadd.s32 4294967295, %s2538_s12   ;;  %p1952_p0 = scmp.ge.s32.totalorder %s2538_s12, 1  ;;  %s2538_s12 = sphi %s2566_s12, %s13_s12  }
   0x2   : > { %p137_p1 = scmp.lt.s32.totalorder %s2538_s12, 3 }
   0x4   : > { %p138_p2 = pnand %p1952_p0, %p137_p1 }
   0x5   : > { %p161_p3 = scmp.lt.s32.totalorder (!%p138_p2), %s1948_s13, 1  ;;  %s2589_s24 = smov (!%p138_p2), 0  }
   0x6   : > { %141 = sbr.rel (%p138_p2) target bundleno = 653 (0x28d), region = 32 }
   0xb   : > { %v2577_v0 = vld [vmem:[%s3233_s2] ss:$0 sm:$0xff]  ;;  %s3236_s13 = smov (!%p161_p3, %s1948_s13), 1 }
   0xc   : > { %s2248_s16 = smul.u32 48, %s3236_s13 }
   0xd   : > { %s2249_s17 = smul.u32 20, %s3236_s13 }
   0xe   : > { %s2582_s20 = scalar_lea.vmem %s3231_s0, %s2248_s16 }
   0xf   : > { %s2587_s23 = scalar_lea.vmem %s3234_s3, %s2249_s17 }
  0x10 LB: >> { %v2268_v1 = vld [vmem:[%s3232_s1 + $0xac] ss:$12 sps:$4 sm:$0xff]   ;;  %v2272_v3 = vld [vmem:[%s3232_s1 + $0xa8] ss:$12 sps:$4 sm:$0xff]   ;;  %v2278_v7 = vld [vmem:[%s3232_s1 + $0x90] ss:$12 sps:$4 sm:$0xff]   ;;  %s2542_s24 = sphi %s2589_s24, %s178_s24  }
  0x11   : >> { %v2270_v2 = vld [vmem:[%s3232_s1 + $0x22c] ss:$12 sps:$4 sm:$0xff]   ;;  %1514 = vmatprep.subr.bf16.mxu0 %v2268_v1  ;;  %v2273_v4 = vld [vmem:[%s3232_s1 + $0x228] ss:$12 sps:$4 sm:$0xff]   ;;  %v2279_v8 = vld [vmem:[%s3232_s1 + $0x210] ss:$12 sps:$4 sm:$0xff]  }
  0x12   : >> { %1555 = vmatprep.subr.bf16.mxu1 %v2270_v2  ;;  %v2274_v5 = vld [vmem:[%s3232_s1 + $0x94] ss:$12 sps:$4 sm:$0xff]   ;;  %1515 = vmatpush1.bf16.msra.mxu0 %v2272_v3  ;;  %v2280_v9 = vld [vmem:[%s3232_s1 + $0x7c] ss:$12 sps:$4 sm:$0xff]   ;;  %v2284_v11 = vld [vmem:[%s3232_s1 + $0x78] ss:$12 sps:$4 sm:$0xff]  }
  0x13   : >> { %1556 = vmatpush1.bf16.msra.mxu1 %v2273_v4  ;;  %v2276_v6 = vld [vmem:[%s3232_s1 + $0x214] ss:$12 sps:$4 sm:$0xff]   ;;  %1516 = vmatprep.subr.bf16.mxu0 %v2274_v5  ;;  %v2282_v10 = vld [vmem:[%s3232_s1 + $0x1fc] ss:$12 sps:$4 sm:$0xff]   ;;  %v2285_v12 = vld [vmem:[%s3232_s1 + $0x1f8] ss:$12 sps:$4 sm:$0xff]  }
  0x14   : >> { %1557 = vmatprep.subr.bf16.mxu1 %v2276_v6  ;;  %v2286_v13 = vld [vmem:[%s3232_s1 + $0x64] ss:$12 sps:$4 sm:$0xff]   ;;  %v2290_v15 = vld [vmem:[%s3232_s1 + $0x60] ss:$12 sps:$4 sm:$0xff]   ;;  %v2296_v19 = vld [vmem:[%s3232_s1 + $0x48] ss:$12 sps:$4 sm:$0xff]  }
  0x15   : >> { %v2288_v14 = vld [vmem:[%s3232_s1 + $0x1e4] ss:$12 sps:$4 sm:$0xff]   ;;  %v2291_v16 = vld [vmem:[%s3232_s1 + $0x1e0] ss:$12 sps:$4 sm:$0xff]   ;;  %v2297_v20 = vld [vmem:[%s3232_s1 + $0x1c8] ss:$12 sps:$4 sm:$0xff]  }
  0x16   : >> { %1517 = vmatpush1.bf16.msra.mxu0 %v2278_v7  ;;  %v2292_v17 = vld [vmem:[%s3232_s1 + $0x4c] ss:$12 sps:$4 sm:$0xff]   ;;  %v2298_v21 = vld [vmem:[%s3232_s1 + $0x34] ss:$12 sps:$4 sm:$0xff]   ;;  %v2302_v23 = vld [vmem:[%s3232_s1 + $0x30] ss:$12 sps:$4 sm:$0xff]  }
  0x17   : >> { %1558 = vmatpush1.bf16.msra.mxu1 %v2279_v8  ;;  %1518 = vmatprep.subr.bf16.mxu0 %v2280_v9  ;;  %v2294_v18 = vld [vmem:[%s3232_s1 + $0x1cc] ss:$12 sps:$4 sm:$0xff]   ;;  %v2300_v22 = vld [vmem:[%s3232_s1 + $0x1b4] ss:$12 sps:$4 sm:$0xff]   ;;  %v2303_v24 = vld [vmem:[%s3232_s1 + $0x1b0] ss:$12 sps:$4 sm:$0xff]  }
  0x18   : >> { %1559 = vmatprep.subr.bf16.mxu1 %v2282_v10  ;;  %v2304_v25 = vld [vmem:[%s3232_s1 + $0x1c] ss:$12 sps:$4 sm:$0xff]   ;;  %v2308_v27 = vld [vmem:[%s3232_s1 + $0x18] ss:$12 sps:$4 sm:$0xff]   ;;  %v2314_v31 = vld [vmem:[%s3232_s1] ss:$12 sps:$4 sm:$0xff]  }
  0x19   : >> { %v2306_v26 = vld [vmem:[%s3232_s1 + $0x19c] ss:$12 sps:$4 sm:$0xff]   ;;  %v2309_v28 = vld [vmem:[%s3232_s1 + $0x198] ss:$12 sps:$4 sm:$0xff]   ;;  %v2315_v32 = vld [vmem:[%s3232_s1 + $0x180] ss:$12 sps:$4 sm:$0xff]  }
  0x1a   : >> { %1519 = vmatpush1.bf16.msra.mxu0 %v2284_v11  ;;  %v2310_v29 = vld [vmem:[%s3232_s1 + $0x4] ss:$12 sps:$4 sm:$0xff]   ;;  %v2316_v33 = vld [vmem:[%s3232_s1 + $0x16c] ss:$12 sps:$4 sm:$0xff]   ;;  %v2320_v35 = vld [vmem:[%s3232_s1 + $0x168] ss:$12 sps:$4 sm:$0xff]  }
  0x1b   : >> { %1560 = vmatpush1.bf16.msra.mxu1 %v2285_v12  ;;  %1520 = vmatprep.subr.bf16.mxu0 %v2286_v13  ;;  %v2312_v30 = vld [vmem:[%s3232_s1 + $0x184] ss:$12 sps:$4 sm:$0xff]   ;;  %v2318_v34 = vld [vmem:[%s3232_s1 + $0x2ec] ss:$12 sps:$4 sm:$0xff]   ;;  %v2321_v36 = vld [vmem:[%s3232_s1 + $0x2e8] ss:$12 sps:$4 sm:$0xff]  }
  0x1c   : >> { %1561 = vmatprep.subr.bf16.mxu1 %v2288_v14  ;;  %v2322_v37 = vld [vmem:[%s3232_s1 + $0x154] ss:$12 sps:$4 sm:$0xff]   ;;  %v2326_v39 = vld [vmem:[%s3232_s1 + $0x150] ss:$12 sps:$4 sm:$0xff]   ;;  %s2159_s11 = sshll.u32 %s2542_s24, 3  ;;  %s2544_s22 = smov 32  }
  0x1d   : >> { %v2324_v38 = vld [vmem:[%s3232_s1 + $0x2d4] ss:$12 sps:$4 sm:$0xff]   ;;  %v2327_v40 = vld [vmem:[%s3232_s1 + $0x2d0] ss:$12 sps:$4 sm:$0xff]   ;;  %v2332_v43 = vld [vmem:[%s3232_s1 + $0x138] ss:$12 sps:$4 sm:$0xff]   ;;  %s2728_s19 = scalar_lea.vmem %s2582_s20, %s2159_s11 }
  0x1e   : >> { %1521 = vmatpush1.bf16.msra.mxu0 %v2290_v15  ;;  %v2328_v41 = vld [vmem:[%s3232_s1 + $0x13c] ss:$12 sps:$4 sm:$0xff]   ;;  %v2333_v44 = vld [vmem:[%s3232_s1 + $0x2b8] ss:$12 sps:$4 sm:$0xff]   ;;  %v2338_v48 = vld [vmem:[%s3232_s1 + $0x120] ss:$12 sps:$4 sm:$0xff]  }
  0x1f   : >> { %1562 = vmatpush1.bf16.msra.mxu1 %v2291_v16  ;;  %1522 = vmatprep.subr.bf16.mxu0 %v2292_v17  ;;  %v2330_v42 = vld [vmem:[%s3232_s1 + $0x2bc] ss:$12 sps:$4 sm:$0xff]   ;;  %v2334_v45 = vld [vmem:[%s3232_s1 + $0x124] ss:$12 sps:$4 sm:$0xff]   ;;  %v2339_v50 = vld [vmem:[%s3232_s1 + $0x2a0] ss:$12 sps:$4 sm:$0xff]  }
  0x20   : >> { %1563 = vmatprep.subr.bf16.mxu1 %v2294_v18  ;;  %v2336_v46 = vld [vmem:[%s3232_s1 + $0x2a4] ss:$12 sps:$4 sm:$0xff]   ;;  %v2340_v51 = vld [vmem:[%s3232_s1 + $0x10c] ss:$12 sps:$4 sm:$0xff]   ;;  %v2344_v55 = vld [vmem:[%s3232_s1 + $0x108] ss:$12 sps:$4 sm:$0xff]  }
  0x21   : >> { %v182_v47 = vld [vmem:[%s2728_s19] sm:$0x77]  ;;  %v2342_v52 = vld [vmem:[%s3232_s1 + $0x28c] ss:$12 sps:$4 sm:$0xff]   ;;  %v2345_v56 = vld [vmem:[%s3232_s1 + $0x288] ss:$12 sps:$4 sm:$0xff]  }
  0x22   : >> { %1523 = vmatpush1.bf16.msra.mxu0 %v2296_v19  ;;  %v2740_v49 = vcombine.high %v182_v47, %v182_v47  ;;  %v2346_v58 = vld [vmem:[%s3232_s1 + $0xf4] ss:$12 sps:$4 sm:$0xff]   ;;  %v2350_v61 = vld [vmem:[%s3232_s1 + $0xf0] ss:$12 sps:$4 sm:$0xff]   ;;  %v2775_v63 = vcombine.low %v182_v47, %v182_v47  ;;  %v2356_v3 = vld [vmem:[%s3232_s1 + $0xd8] ss:$12 sps:$4 sm:$0xff]  }
  0x23   : >> { %1564 = vmatpush1.bf16.msra.mxu1 %v2297_v20  ;;  %1524 = vmatprep.subr.bf16.mxu0 %v2298_v21  ;;  %v2348_v59 = vld [vmem:[%s3232_s1 + $0x274] ss:$12 sps:$4 sm:$0xff]   ;;  %v2351_v62 = vld [vmem:[%s3232_s1 + $0x270] ss:$12 sps:$4 sm:$0xff]   ;;  %v2357_v4 = vld [vmem:[%s3232_s1 + $0x258] ss:$12 sps:$4 sm:$0xff]  }
  0x24   : >> { %1565 = vmatprep.subr.bf16.mxu1 %v2300_v22  ;;  %v203_v53 = vshrl.u32 %v2740_v49, 16  ;;  %v205_v54 = vshll.u32 %v2740_v49, 16  ;;  %1546 = vmatprep.mubr.bf16.mxu0 %v2740_v49  ;;  %v2352_v1 = vld [vmem:[%s3232_s1 + $0xdc] ss:$12 sps:$4 sm:$0xff]   ;;  %v198_v5 = vshll.u32 %v2775_v63, 16  ;;  %v196_v10 = vshrl.u32 %v2775_v63, 16 }
  0x25   : >> { %v2354_v2 = vld [vmem:[%s3232_s1 + $0x25c] ss:$12 sps:$4 sm:$0xff]   ;;  %v2358_v6 = vld [vmem:[%s3232_s1 + $0xc4] ss:$12 sps:$4 sm:$0xff]   ;;  %v2362_v8 = vld [vmem:[%s3232_s1 + $0xc0] ss:$12 sps:$4 sm:$0xff]  }
  0x26   : >> { %1525 = vmatpush1.bf16.msra.mxu0 %v2302_v23  ;;  %v207_v57 = vrot.slane %v205_v54, 1  ;;  %v2360_v7 = vld [vmem:[%s3232_s1 + $0x244] ss:$12 sps:$4 sm:$0xff]   ;;  %v2363_v9 = vld [vmem:[%s3232_s1 + $0x240] ss:$12 sps:$4 sm:$0xff]   ;;  %v200_v11 = vrot.slane %v198_v5, 1 }
  0x27   : >> { %1566 = vmatpush1.bf16.msra.mxu1 %v2303_v24  ;;  %1526 = vmatprep.subr.bf16.mxu0 %v2304_v25  ;;  %v2368_v12 = vld [vmem:[%s3232_s1 + $0x3ac] ss:$12 sps:$4 sm:$0xff]   ;;  %v2366_v15 = vld [vmem:[%s3232_s1 + $0x3a8] ss:$12 sps:$4 sm:$0xff]   ;;  %v2372_v19 = vld [vmem:[%s3232_s1 + $0x390] ss:$12 sps:$4 sm:$0xff]  }
  0x28   : >> { %1567 = vmatprep.subr.bf16.mxu1 %v2306_v26  ;;  %v2766_v60 = vor.u32 %v207_v57, %v203_v53  ;;  %v2371_v13 = vld [vmem:[%s3232_s1 + $0x52c] ss:$12 sps:$4 sm:$0xff]   ;;  %v2809_v14 = vor.u32 %v200_v11, %v196_v10  ;;  %v2369_v16 = vld [vmem:[%s3232_s1 + $0x528] ss:$12 sps:$4 sm:$0xff]   ;;  %v2375_v20 = vld [vmem:[%s3232_s1 + $0x510] ss:$12 sps:$4 sm:$0xff]  }
  0x29   : >> { %v2374_v17 = vld [vmem:[%s3232_s1 + $0x394] ss:$12 sps:$4 sm:$0xff]   ;;  %v2380_v21 = vld [vmem:[%s3232_s1 + $0x37c] ss:$12 sps:$4 sm:$0xff]   ;;  %v2378_v23 = vld [vmem:[%s3232_s1 + $0x378] ss:$12 sps:$4 sm:$0xff]  }
  0x2a   : >> { %1527 = vmatpush1.bf16.msra.mxu0 %v2308_v27  ;;  %1587 = vmatprep.mubr.bf16.mxu1 %v2766_v60  ;;  %v2377_v18 = vld [vmem:[%s3232_s1 + $0x514] ss:$12 sps:$4 sm:$0xff]   ;;  %v2383_v22 = vld [vmem:[%s3232_s1 + $0x4fc] ss:$12 sps:$4 sm:$0xff]   ;;  %v2381_v24 = vld [vmem:[%s3232_s1 + $0x4f8] ss:$12 sps:$4 sm:$0xff]  }
  0x2b   : >> { %1568 = vmatpush1.bf16.msra.mxu1 %v2309_v28  ;;  %1528 = vmatprep.subr.bf16.mxu0 %v2310_v29  ;;  %v2386_v25 = vld [vmem:[%s3232_s1 + $0x364] ss:$12 sps:$4 sm:$0xff]   ;;  %v2384_v27 = vld [vmem:[%s3232_s1 + $0x360] ss:$12 sps:$4 sm:$0xff]   ;;  %v2414_v54 = vld [vmem:[%s3232_s1 + $0x468] ss:$12 sps:$4 sm:$0xff]  }
  0x2c   : >> { %1569 = vmatprep.subr.bf16.mxu1 %v2312_v30  ;;  %v2389_v26 = vld [vmem:[%s3232_s1 + $0x4e4] ss:$12 sps:$4 sm:$0xff]   ;;  %v2387_v28 = vld [vmem:[%s3232_s1 + $0x4e0] ss:$12 sps:$4 sm:$0xff]   ;;  %v2441_v10 = vld [vmem:[%s3232_s1 + $0x588] ss:$12 sps:$4 sm:$0xff]  }
  0x2d   : >> { %v2392_v29 = vld [vmem:[%s3232_s1 + $0x34c] ss:$12 sps:$4 sm:$0xff]   ;;  %v2425_v57 = vld [vmem:[%s3232_s1 + $0x5d4] ss:$12 sps:$4 sm:$0xff]   ;;  %s2545_s25 = smov 64   ;;  %vm1844_vm0 = vcmask 261120  }
  0x2e   : >> { %1529 = vmatpush1.bf16.msra.mxu0 %v2314_v31  ;;  %v2395_v30 = vld [vmem:[%s3232_s1 + $0x4cc] ss:$12 sps:$4 sm:$0xff]   ;;  %v2390_v31 = vld [vmem:[%s3232_s1 + $0x348] ss:$12 sps:$4 sm:$0xff]   ;;  %vm1860_vm1 = vcmask 523264   ;;  %s2156_s26 = sshll.u32 %s2542_s24, 2 }
  0x2f   : >> { %1570 = vmatpush1.bf16.msra.mxu1 %v2315_v32  ;;  %1530 = vmatprep.subr.bf16.mxu0 %v2316_v33  ;;  %v2393_v32 = vld [vmem:[%s3232_s1 + $0x4c8] ss:$12 sps:$4 sm:$0xff]   ;;  %v2408_v47 = vld [vmem:[%s3232_s1 + $0x300] ss:$12 sps:$4 sm:$0xff]   ;;  %s1874_s27 = scalar_lea.vmem %s2587_s23, %s2156_s26  ;;  %vm1875_vm2 = vcmask 780288   ;;  %s178_s24 = sadd.s32 1, %s2542_s24  }
  0x30   : >> { %1571 = vmatprep.subr.bf16.mxu1 %v2318_v34  ;;  %v2398_v33 = vld [vmem:[%s3232_s1 + $0x334] ss:$12 sps:$4 sm:$0xff]   ;;  %vm1876_vm3 = vsmask.f32 2304  ;;  %p175_p4 = scmp.ge.s32.totalorder %s178_s24, 5  }
  0x31   : >> { %v2401_v34 = vld [vmem:[%s3232_s1 + $0x4b4] ss:$12 sps:$4 sm:$0xff]   ;;  %vm1877_vm4 = vmand %vm1875_vm2, %vm1876_vm3 }
  0x32   : >> { %1531 = vmatpush2.bf16.msra.mxu0 %v2320_v35  ;;  %v2396_v35 = vld [vmem:[%s3232_s1 + $0x330] ss:$12 sps:$4 sm:$0xff]   ;;  %v2432_v5 = vld [vmem:[%s3232_s1 + $0x420] ss:$12 sps:$4 sm:$0xff]  }
  0x33   : >> { %1572 = vmatpush2.bf16.msra.mxu1 %v2321_v36  ;;  %1532 = vmatprep.subr.bf16.mxu0 %v2322_v37  ;;  %v2399_v36 = vld [vmem:[%s3232_s1 + $0x4b0] ss:$12 sps:$4 sm:$0xff]   ;;  %v2446_v11 = vld [vmem:[%s3232_s1 + $0x3f4] ss:$12 sps:$4 sm:$0xff]  }
  0x34   : >> { %1573 = vmatprep.subr.bf16.mxu1 %v2324_v38  ;;  %v2404_v37 = vld [vmem:[%s3232_s1 + $0x31c] ss:$12 sps:$4 sm:$0xff]  }
  0x35   : >> { %v2407_v38 = vld [vmem:[%s3232_s1 + $0x49c] ss:$12 sps:$4 sm:$0xff]  }
  0x36   : >> { %1533 = vmatpush2.bf16.msra.mxu0 %v2326_v39  ;;  %v2402_v39 = vld [vmem:[%s3232_s1 + $0x318] ss:$12 sps:$4 sm:$0xff]  }
  0x37   : >> { %1574 = vmatpush2.bf16.msra.mxu1 %v2327_v40  ;;  %1534 = vmatprep.subr.bf16.mxu0 %v2328_v41  ;;  %v2889_v40 = vld [vmem:[%s2728_s19 + $0x8] sm:$0x77]  ;;  %v2405_v41 = vld [vmem:[%s3232_s1 + $0x498] ss:$12 sps:$4 sm:$0xff]  }
  0x38   : >> { %1575 = vmatprep.subr.bf16.mxu1 %v2330_v42  ;;  %v2896_v42 = vcombine.high %v2889_v40, %v2889_v40 }
  0x3a   : >> { %1535 = vmatpush2.bf16.msra.mxu0 %v2332_v43  ;;  %v2410_v43 = vld [vmem:[%s3232_s1 + $0x304] ss:$12 sps:$4 sm:$0xff]  }
  0x3b   : >> { %1576 = vmatpush2.bf16.msra.mxu1 %v2333_v44  ;;  %1536 = vmatprep.subr.bf16.mxu0 %v2334_v45  ;;  %v2413_v44 = vld [vmem:[%s3232_s1 + $0x484] ss:$12 sps:$4 sm:$0xff]   ;;  %v226_v45 = vshrl.u32 %v2896_v42, 16 }
  0x3c   : >> { %1577 = vmatprep.subr.bf16.mxu1 %v2336_v46  ;;  %v228_v46 = vshll.u32 %v2896_v42, 16 }
  0x3e   : >> { %1537 = vmatpush2.bf16.msra.mxu0 %v2338_v48  ;;  %v2411_v48 = vld [vmem:[%s3232_s1 + $0x480] ss:$12 sps:$4 sm:$0xff]  }
  0x3f   : >> { %1578 = vmatpush2.bf16.msra.mxu1 %v2339_v50  ;;  %1538 = vmatprep.subr.bf16.mxu0 %v2340_v51  ;;  %v230_v50 = vrot.slane %v228_v46, 1  ;;  %v2416_v51 = vld [vmem:[%s3232_s1 + $0x46c] ss:$12 sps:$4 sm:$0xff]   ;;  %v2482_v46 = vld [vmem:[%s3232_s1 + $0x50] ss:$12 sps:$4 sm:$0xff]  }
  0x40   : >> { %1579 = vmatprep.subr.bf16.mxu1 %v2342_v52  ;;  %v2419_v52 = vld [vmem:[%s3232_s1 + $0x5ec] ss:$12 sps:$4 sm:$0xff]  }
  0x41   : >> { %v2919_v53 = vor.u32 %v230_v50, %v226_v45  ;;  %v2481_v45 = vld [vmem:[%s3232_s1 + $0x290] ss:$12 sps:$4 sm:$0xff]   ;;  %v2485_v50 = vld [vmem:[%s3232_s1 + $0x278] ss:$12 sps:$4 sm:$0xff]  }
  0x42   : >> { %1539 = vmatpush2.bf16.msra.mxu0 %v2344_v55  ;;  %v2417_v55 = vld [vmem:[%s3232_s1 + $0x5e8] ss:$12 sps:$4 sm:$0xff]  }
  0x43   : >> { %1580 = vmatpush2.bf16.msra.mxu1 %v2345_v56  ;;  %1540 = vmatprep.subr.bf16.mxu0 %v2346_v58  ;;  %v2422_v56 = vld [vmem:[%s3232_s1 + $0x454] ss:$12 sps:$4 sm:$0xff]   ;;  %v2420_v58 = vld [vmem:[%s3232_s1 + $0x450] ss:$12 sps:$4 sm:$0xff]  }
  0x44   : >> { %1581 = vmatprep.subr.bf16.mxu1 %v2348_v59  ;;  %v2423_v59 = vld [vmem:[%s3232_s1 + $0x5d0] ss:$12 sps:$4 sm:$0xff]  }
  0x46   : >> { %1541 = vmatpush2.bf16.msra.mxu0 %v2350_v61  ;;  %v2428_v61 = vld [vmem:[%s3232_s1 + $0x43c] ss:$12 sps:$4 sm:$0xff]  }
  0x47   : >> { %1582 = vmatpush2.bf16.msra.mxu1 %v2351_v62  ;;  %1542 = vmatprep.subr.bf16.mxu0 %v2352_v1  ;;  %v2431_v62 = vld [vmem:[%s3232_s1 + $0x5bc] ss:$12 sps:$4 sm:$0xff]   ;;  %v2426_v1 = vld [vmem:[%s3232_s1 + $0x438] ss:$12 sps:$4 sm:$0xff]  }
  0x48   : >> { %1583 = vmatprep.subr.bf16.mxu1 %v2354_v2  ;;  %v2429_v2 = vld [vmem:[%s3232_s1 + $0x5b8] ss:$12 sps:$4 sm:$0xff]  }
  0x4a   : >> { %1543 = vmatpush2.bf16.msra.mxu0 %v2356_v3  ;;  %v2434_v3 = vld [vmem:[%s3232_s1 + $0x424] ss:$12 sps:$4 sm:$0xff]  }
  0x4b   : >> { %1584 = vmatpush2.bf16.msra.mxu1 %v2357_v4  ;;  %1544 = vmatprep.subr.bf16.mxu0 %v2358_v6  ;;  %v2437_v4 = vld [vmem:[%s3232_s1 + $0x5a4] ss:$12 sps:$4 sm:$0xff]   ;;  %v2435_v6 = vld [vmem:[%s3232_s1 + $0x5a0] ss:$12 sps:$4 sm:$0xff]  }
  0x4c   : >> { %1585 = vmatprep.subr.bf16.mxu1 %v2360_v7  ;;  %v2440_v7 = vld [vmem:[%s3232_s1 + $0x40c] ss:$12 sps:$4 sm:$0xff]  }
  0x4e   : >> { %1545 = vmatpush2.bf16.msra.mxu0 %v2362_v8  ;;  %v2443_v8 = vld [vmem:[%s3232_s1 + $0x58c] ss:$12 sps:$4 sm:$0xff]  }
  0x4f   : >> { %1586 = vmatpush2.bf16.msra.mxu1 %v2363_v9  ;;  %1596 = vmatprep.subr.bf16.mxu0 %v2368_v12  ;;  %v2438_v9 = vld [vmem:[%s3232_s1 + $0x408] ss:$12 sps:$4 sm:$0xff]  }
  0x50   : >> { %1637 = vmatprep.subr.bf16.mxu1 %v2371_v13  ;;  %v2449_v12 = vld [vmem:[%s3232_s1 + $0x574] ss:$12 sps:$4 sm:$0xff]   ;;  %v2444_v13 = vld [vmem:[%s3232_s1 + $0x3f0] ss:$12 sps:$4 sm:$0xff]  }
  0x51   : >> { %1547 = vmatmul.mubr.bf16.vlgmr.msra.gmra.mxu0 %v2775_v63 }
  0x52   : >> { %1588 = vmatmul.mubr.bf16.vlgmr.msra.gmra.mxu1 %v2809_v14  ;;  %1597 = vmatpush1.bf16.msra.mxu0 %v2366_v15  ;;  %v2447_v15 = vld [vmem:[%s3232_s1 + $0x570] ss:$12 sps:$4 sm:$0xff]  }
  0x53   : >> { %1638 = vmatpush1.bf16.msra.mxu1 %v2369_v16  ;;  %1598 = vmatprep.subr.bf16.mxu0 %v2374_v17  ;;  %v2990_v16 = vcombine.low %v2889_v40, %v2889_v40  ;;  %v2452_v17 = vld [vmem:[%s3232_s1 + $0x3dc] ss:$12 sps:$4 sm:$0xff]   ;;  %v2475_v40 = vld [vmem:[%s3232_s1 + $0x200] ss:$12 sps:$4 sm:$0xff]  }
  0x54   : >> { %1639 = vmatprep.subr.bf16.mxu1 %v2377_v18  ;;  %1628 = vmatprep.mubr.bf16.mxu0 %v2896_v42  ;;  %v2455_v18 = vld [vmem:[%s3232_s1 + $0x55c] ss:$12 sps:$4 sm:$0xff]  }
  0x55   : >> { %1669 = vmatprep.mubr.bf16.mxu1 %v2919_v53 }
  0x56   : >> { %1599 = vmatpush1.bf16.msra.mxu0 %v2372_v19  ;;  %v2450_v19 = vld [vmem:[%s3232_s1 + $0x3d8] ss:$12 sps:$4 sm:$0xff]  }
  0x57   : >> { %1640 = vmatpush1.bf16.msra.mxu1 %v2375_v20  ;;  %1600 = vmatprep.subr.bf16.mxu0 %v2380_v21  ;;  %v2453_v20 = vld [vmem:[%s3232_s1 + $0x558] ss:$12 sps:$4 sm:$0xff]   ;;  %v221_v21 = vshll.u32 %v2990_v16, 16 }
  0x58   : >> { %1641 = vmatprep.subr.bf16.mxu1 %v2383_v22  ;;  %v2458_v22 = vld [vmem:[%s3232_s1 + $0x3c4] ss:$12 sps:$4 sm:$0xff]  }
  0x5a   : >> { %1601 = vmatpush1.bf16.msra.mxu0 %v2378_v23  ;;  %v2461_v23 = vld [vmem:[%s3232_s1 + $0x544] ss:$12 sps:$4 sm:$0xff]  }
  0x5b   : >> { %1642 = vmatpush1.bf16.msra.mxu1 %v2381_v24  ;;  %1602 = vmatprep.subr.bf16.mxu0 %v2386_v25  ;;  %v2456_v24 = vld [vmem:[%s3232_s1 + $0x3c0] ss:$12 sps:$4 sm:$0xff]  }
  0x5c   : >> { %1643 = vmatprep.subr.bf16.mxu1 %v2389_v26  ;;  %v2459_v25 = vld [vmem:[%s3232_s1 + $0x540] ss:$12 sps:$4 sm:$0xff]   ;;  %v219_v26 = vshrl.u32 %v2990_v16, 16 }
  0x5e   : >> { %1603 = vmatpush1.bf16.msra.mxu0 %v2384_v27  ;;  %v223_v27 = vrot.slane %v221_v21, 1  ;;  %v2518_v21 = vld [vmem:[%s3232_s1 + $0x338] ss:$12 sps:$4 sm:$0xff]  }
  0x5f   : >> { %1644 = vmatpush1.bf16.msra.mxu1 %v2387_v28  ;;  %1604 = vmatprep.subr.bf16.mxu0 %v2392_v29  ;;  %v2464_v28 = vld [vmem:[%s3232_s1 + $0x170] ss:$12 sps:$4 sm:$0xff]  }
  0x60   : >> { %1645 = vmatprep.subr.bf16.mxu1 %v2395_v30  ;;  %v2465_v29 = vld [vmem:[%s3232_s1 + $0x2f0] ss:$12 sps:$4 sm:$0xff]  }
  0x61   : >> { %v2466_v30 = vld [vmem:[%s3232_s1 + $0xb0] ss:$12 sps:$4 sm:$0xff]  }
  0x62   : >> { %1605 = vmatpush1.bf16.msra.mxu0 %v2390_v31  ;;  %v3027_v31 = vor.u32 %v223_v27, %v219_v26  ;;  %v2523_v26 = vld [vmem:[%s3232_s1 + $0x4a0] ss:$12 sps:$4 sm:$0xff]   ;;  %v2524_v27 = vld [vmem:[%s3232_s1 + $0x3c8] ss:$12 sps:$4 sm:$0xff]  }
  0x63   : >> { %1646 = vmatpush1.bf16.msra.mxu1 %v2393_v32  ;;  %1606 = vmatprep.subr.bf16.mxu0 %v2398_v33  ;;  %v2467_v32 = vld [vmem:[%s3232_s1 + $0x230] ss:$12 sps:$4 sm:$0xff]   ;;  %v2468_v33 = vld [vmem:[%s3232_s1 + $0x158] ss:$12 sps:$4 sm:$0xff]  }
  0x64   : >> { %1647 = vmatprep.subr.bf16.mxu1 %v2401_v34  ;;  %v2469_v34 = vld [vmem:[%s3232_s1 + $0x2d8] ss:$12 sps:$4 sm:$0xff]  }
  0x66   : >> { %1607 = vmatpush1.bf16.msra.mxu0 %v2396_v35  ;;  %v2470_v35 = vld [vmem:[%s3232_s1 + $0x98] ss:$12 sps:$4 sm:$0xff]  }
  0x67   : >> { %1648 = vmatpush1.bf16.msra.mxu1 %v2399_v36  ;;  %1608 = vmatprep.subr.bf16.mxu0 %v2404_v37  ;;  %v2471_v36 = vld [vmem:[%s3232_s1 + $0x218] ss:$12 sps:$4 sm:$0xff]   ;;  %v2472_v37 = vld [vmem:[%s3232_s1 + $0x140] ss:$12 sps:$4 sm:$0xff]  }
  0x68   : >> { %1649 = vmatprep.subr.bf16.mxu1 %v2407_v38  ;;  %v2473_v38 = vld [vmem:[%s3232_s1 + $0x2c0] ss:$12 sps:$4 sm:$0xff]  }
  0x6a   : >> { %1609 = vmatpush1.bf16.msra.mxu0 %v2402_v39  ;;  %v2474_v39 = vld [vmem:[%s3232_s1 + $0x80] ss:$12 sps:$4 sm:$0xff]  }
  0x6b   : >> { %1650 = vmatpush1.bf16.msra.mxu1 %v2405_v41  ;;  %1610 = vmatprep.subr.bf16.mxu0 %v2410_v43  ;;  %v2476_v41 = vld [vmem:[%s3232_s1 + $0x128] ss:$12 sps:$4 sm:$0xff]  }
  0x6c   : >> { %1651 = vmatprep.subr.bf16.mxu1 %v2413_v44  ;;  %v2477_v43 = vld [vmem:[%s3232_s1 + $0x2a8] ss:$12 sps:$4 sm:$0xff]   ;;  %v2480_v44 = vld [vmem:[%s3232_s1 + $0x110] ss:$12 sps:$4 sm:$0xff]  }
  0x6e   : >> { %1611 = vmatpush1.bf16.msra.mxu0 %v2408_v47  ;;  %v2483_v47 = vld [vmem:[%s3232_s1 + $0x1d0] ss:$12 sps:$4 sm:$0xff]  }
  0x6f   : >> { %1652 = vmatpush1.bf16.msra.mxu1 %v2411_v48  ;;  %1612 = vmatprep.subr.bf16.mxu0 %v2416_v51  ;;  %v2484_v48 = vld [vmem:[%s3232_s1 + $0xf8] ss:$12 sps:$4 sm:$0xff]  }
  0x70   : >> { %1653 = vmatprep.subr.bf16.mxu1 %v2419_v52  ;;  %v2486_v51 = vld [vmem:[%s3232_s1 + $0x38] ss:$12 sps:$4 sm:$0xff]  }
  0x71   : >> { %v2487_v52 = vld [vmem:[%s3232_s1 + $0x1b8] ss:$12 sps:$4 sm:$0xff]  }
  0x72   : >> { %1613 = vmatpush2.bf16.msra.mxu0 %v2414_v54  ;;  %v2488_v54 = vld [vmem:[%s3232_s1 + $0xe0] ss:$12 sps:$4 sm:$0xff]  }
  0x73   : >> { %1654 = vmatpush2.bf16.msra.mxu1 %v2417_v55  ;;  %1614 = vmatprep.subr.bf16.mxu0 %v2422_v56  ;;  %v2489_v55 = vld [vmem:[%s3232_s1 + $0x260] ss:$12 sps:$4 sm:$0xff]  }
  0x74   : >> { %1655 = vmatprep.subr.bf16.mxu1 %v2425_v57  ;;  %v2490_v56 = vld [vmem:[%s3232_s1 + $0x20] ss:$12 sps:$4 sm:$0xff]  }
  0x75   : >> { %v2491_v57 = vld [vmem:[%s3232_s1 + $0x1a0] ss:$12 sps:$4 sm:$0xff]  }
  0x76   : >> { %1615 = vmatpush2.bf16.msra.mxu0 %v2420_v58  ;;  %v2492_v58 = vld [vmem:[%s3232_s1 + $0xc8] ss:$12 sps:$4 sm:$0xff]  }
  0x77   : >> { %1656 = vmatpush2.bf16.msra.mxu1 %v2423_v59  ;;  %1616 = vmatprep.subr.bf16.mxu0 %v2428_v61  ;;  %v2493_v59 = vld [vmem:[%s3232_s1 + $0x248] ss:$12 sps:$4 sm:$0xff]  }
  0x78   : >> { %1657 = vmatprep.subr.bf16.mxu1 %v2431_v62  ;;  %v2494_v61 = vld [vmem:[%s3232_s1 + $0x8] ss:$12 sps:$4 sm:$0xff]  }
  0x79   : >> { %v2495_v62 = vld [vmem:[%s3232_s1 + $0x188] ss:$12 sps:$4 sm:$0xff]  }
  0x7a   : >> { %1617 = vmatpush2.bf16.msra.mxu0 %v2426_v1  ;;  %v2496_v1 = vld [vmem:[%s3232_s1 + $0x470] ss:$12 sps:$4 sm:$0xff]  }
  0x7b   : >> { %1658 = vmatpush2.bf16.msra.mxu1 %v2429_v2  ;;  %1618 = vmatprep.subr.bf16.mxu0 %v2434_v3  ;;  %v2497_v2 = vld [vmem:[%s3232_s1 + $0x5f0] ss:$12 sps:$4 sm:$0xff]  }
  0x7c   : >> { %1659 = vmatprep.subr.bf16.mxu1 %v2437_v4  ;;  %v2498_v3 = vld [vmem:[%s3232_s1 + $0x3b0] ss:$12 sps:$4 sm:$0xff]  }
  0x7d   : >> { %v2499_v4 = vld [vmem:[%s3232_s1 + $0x530] ss:$12 sps:$4 sm:$0xff]  }
  0x7e   : >> { %1619 = vmatpush2.bf16.msra.mxu0 %v2432_v5  ;;  %v2500_v5 = vld [vmem:[%s3232_s1 + $0x458] ss:$12 sps:$4 sm:$0xff]  }
  0x7f   : >> { %1660 = vmatpush2.bf16.msra.mxu1 %v2435_v6  ;;  %1620 = vmatprep.subr.bf16.mxu0 %v2440_v7  ;;  %v2501_v6 = vld [vmem:[%s3232_s1 + $0x5d8] ss:$12 sps:$4 sm:$0xff]  }
  0x80   : >> { %1661 = vmatprep.subr.bf16.mxu1 %v2443_v8  ;;  %v2502_v7 = vld [vmem:[%s3232_s1 + $0x398] ss:$12 sps:$4 sm:$0xff]  }
  0x81   : >> { %v2503_v8 = vld [vmem:[%s3232_s1 + $0x518] ss:$12 sps:$4 sm:$0xff]  }
  0x82   : >> { %1621 = vmatpush2.bf16.msra.mxu0 %v2438_v9  ;;  %v2504_v9 = vld [vmem:[%s3232_s1 + $0x440] ss:$12 sps:$4 sm:$0xff]  }
  0x83   : >> { %1662 = vmatpush2.bf16.msra.mxu1 %v2441_v10  ;;  %1622 = vmatprep.subr.bf16.mxu0 %v2446_v11  ;;  %v2507_v10 = vld [vmem:[%s3232_s1 + $0x500] ss:$12 sps:$4 sm:$0xff]   ;;  %v2508_v11 = vld [vmem:[%s3232_s1 + $0x428] ss:$12 sps:$4 sm:$0xff]  }
  0x84   : >> { %1663 = vmatprep.subr.bf16.mxu1 %v2449_v12  ;;  %v2511_v12 = vld [vmem:[%s3232_s1 + $0x4e8] ss:$12 sps:$4 sm:$0xff]  }
  0x86   : >> { %1623 = vmatpush2.bf16.msra.mxu0 %v2444_v13  ;;  %v2512_v13 = vld [vmem:[%s3232_s1 + $0x410] ss:$12 sps:$4 sm:$0xff]  }
  0x87   : >> { %1664 = vmatpush2.bf16.msra.mxu1 %v2447_v15  ;;  %1624 = vmatprep.subr.bf16.mxu0 %v2452_v17  ;;  %v2513_v15 = vld [vmem:[%s3232_s1 + $0x590] ss:$12 sps:$4 sm:$0xff]  }
  0x88   : >> { %1665 = vmatprep.subr.bf16.mxu1 %v2455_v18  ;;  %v2514_v17 = vld [vmem:[%s3232_s1 + $0x350] ss:$12 sps:$4 sm:$0xff]  }
  0x89   : >> { %v2515_v18 = vld [vmem:[%s3232_s1 + $0x4d0] ss:$12 sps:$4 sm:$0xff]  }
  0x8a   : >> { %1625 = vmatpush2.bf16.msra.mxu0 %v2450_v19  ;;  %v2516_v19 = vld [vmem:[%s3232_s1 + $0x3f8] ss:$12 sps:$4 sm:$0xff]  }
  0x8b   : >> { %1666 = vmatpush2.bf16.msra.mxu1 %v2453_v20  ;;  %1626 = vmatprep.subr.bf16.mxu0 %v2458_v22  ;;  %v2517_v20 = vld [vmem:[%s3232_s1 + $0x578] ss:$12 sps:$4 sm:$0xff]  }
  0x8c   : >> { %1667 = vmatprep.subr.bf16.mxu1 %v2461_v23  ;;  %v2519_v22 = vld [vmem:[%s3232_s1 + $0x4b8] ss:$12 sps:$4 sm:$0xff]   ;;  %v2520_v23 = vld [vmem:[%s3232_s1 + $0x3e0] ss:$12 sps:$4 sm:$0xff]  }
  0x8e   : >> { %1627 = vmatpush2.bf16.msra.mxu0 %v2456_v24  ;;  %v2521_v24 = vld [vmem:[%s3232_s1 + $0x560] ss:$12 sps:$4 sm:$0xff]  }
  0x8f   : >> { %1668 = vmatpush2.bf16.msra.mxu1 %v2459_v25  ;;  %2160 = vmatprep.subr.bf16.mxu0 %v2464_v28  ;;  %v2522_v25 = vld [vmem:[%s3232_s1 + $0x320] ss:$12 sps:$4 sm:$0xff]   ;;  %v2525_v28 = vld [vmem:[%s3232_s1 + $0x548] ss:$12 sps:$4 sm:$0xff]  }
  0x90   : >> { %2182 = vmatprep.subr.bf16.mxu1 %v2465_v29  ;;  %v2526_v29 = vld [vmem:[%s3232_s1 + $0x308] ss:$12 sps:$4 sm:$0xff]  }
  0x91   : >> { %1629 = vmatmul.mubr.bf16.vlgmr.msra.gmra.mxu0 %v2990_v16 }
  0x92   : >> { %1670 = vmatmul.mubr.bf16.vlgmr.msra.gmra.mxu1 %v3027_v31  ;;  %2161 = vmatpush3.bf16.msra.mxu0 %v2466_v30  ;;  %v2527_v30 = vld [vmem:[%s3232_s1 + $0x488] ss:$12 sps:$4 sm:$0xff]  }
  0x93   : >> { %2183 = vmatpush3.bf16.msra.mxu1 %v2467_v32  ;;  %2162 = vmatprep.subr.bf16.mxu0 %v2468_v33 }
  0x94   : >> { %2184 = vmatprep.subr.bf16.mxu1 %v2469_v34  ;;  %1710 = vmatprep.mubr.bf16.mxu0 %v2740_v49  ;;  %v2478_v49 = vld [vmem:[%s3232_s1 + $0x68] ss:$12 sps:$4 sm:$0xff]  }
  0x95   : >> { %1750 = vmatprep.mubr.bf16.mxu1 %v2766_v60  ;;  %v2479_v60 = vld [vmem:[%s3232_s1 + $0x1e8] ss:$12 sps:$4 sm:$0xff]  }
  0x96   : >> { %2163 = vmatpush3.bf16.msra.mxu0 %v2470_v35 }
  0x97   : >> { %2185 = vmatpush3.bf16.msra.mxu1 %v2471_v36  ;;  %2164 = vmatprep.subr.bf16.mxu0 %v2472_v37 }
  0x98   : >> { %2186 = vmatprep.subr.bf16.mxu1 %v2473_v38 }
  0x9a   : >> { %2165 = vmatpush3.bf16.msra.mxu0 %v2474_v39 }
  0x9b   : >> { %2187 = vmatpush3.bf16.msra.mxu1 %v2475_v40  ;;  %2166 = vmatprep.subr.bf16.mxu0 %v2476_v41 }
  0x9c   : >> { %2188 = vmatprep.subr.bf16.mxu1 %v2477_v43 }
  0x9e   : >> { %2167 = vmatpush3.bf16.msra.mxu0 %v2478_v49 }
  0x9f   : >> { %2189 = vmatpush3.bf16.msra.mxu1 %v2479_v60  ;;  %2168 = vmatprep.subr.bf16.mxu0 %v2480_v44 }
  0xa0   : >> { %2190 = vmatprep.subr.bf16.mxu1 %v2481_v45 }
  0xa2   : >> { %2169 = vmatpush3.bf16.msra.mxu0 %v2482_v46 }
  0xa3   : >> { %2191 = vmatpush3.bf16.msra.mxu1 %v2483_v47  ;;  %2170 = vmatprep.subr.bf16.mxu0 %v2484_v48 }
  0xa4   : >> { %2192 = vmatprep.subr.bf16.mxu1 %v2485_v50 }
  0xa6   : >> { %2171 = vmatpush3.bf16.msra.mxu0 %v2486_v51 }
  0xa7   : >> { %2193 = vmatpush3.bf16.msra.mxu1 %v2487_v52  ;;  %2172 = vmatprep.subr.bf16.mxu0 %v2488_v54 }
  0xa8   : >> { %2194 = vmatprep.subr.bf16.mxu1 %v2489_v55 }
  0xaa   : >> { %2173 = vmatpush3.bf16.msra.mxu0 %v2490_v56 }
  0xab   : >> { %2195 = vmatpush3.bf16.msra.mxu1 %v2491_v57  ;;  %2174 = vmatprep.subr.bf16.mxu0 %v2492_v58 }
  0xac   : >> { %2196 = vmatprep.subr.bf16.mxu1 %v2493_v59 }
  0xae   : >> { %2175 = vmatpush3.bf16.msra.mxu0 %v2494_v61 }
  0xaf   : >> { %2197 = vmatpush3.bf16.msra.mxu1 %v2495_v62  ;;  %2204 = vmatprep.subr.bf16.mxu0 %v2496_v1 }
  0xb0   : >> { %2226 = vmatprep.subr.bf16.mxu1 %v2497_v2 }
  0xb1   : >> { %1711 = vmatmul.mubr.bf16.vlgmr.msra.gmra.mxu0 %v2775_v63  ;;  %v2505_v63 = vld [vmem:[%s3232_s1 + $0x5c0] ss:$12 sps:$4 sm:$0xff]  }
  0xb2   : >> { %1751 = vmatmul.mubr.bf16.vlgmr.msra.gmra.mxu1 %v2809_v14  ;;  %2205 = vmatpush3.bf16.msra.mxu0 %v2498_v3  ;;  %v2506_v14 = vld [vmem:[%s3232_s1 + $0x380] ss:$12 sps:$4 sm:$0xff]  }
  0xb3   : >> { %2227 = vmatpush3.bf16.msra.mxu1 %v2499_v4  ;;  %2206 = vmatprep.subr.bf16.mxu0 %v2500_v5 }
  0xb4   : >> { %2228 = vmatprep.subr.bf16.mxu1 %v2501_v6  ;;  %1790 = vmatprep.mubr.bf16.mxu0 %v2896_v42  ;;  %v2509_v42 = vld [vmem:[%s3232_s1 + $0x5a8] ss:$12 sps:$4 sm:$0xff]  }
  0xb5   : >> { %1830 = vmatprep.mubr.bf16.mxu1 %v2919_v53  ;;  %v2510_v53 = vld [vmem:[%s3232_s1 + $0x368] ss:$12 sps:$4 sm:$0xff]  }
  0xb6   : >> { %2207 = vmatpush3.bf16.msra.mxu0 %v2502_v7 }
  0xb7   : >> { %2229 = vmatpush3.bf16.msra.mxu1 %v2503_v8  ;;  %2208 = vmatprep.subr.bf16.mxu0 %v2504_v9 }
  0xb8   : >> { %2230 = vmatprep.subr.bf16.mxu1 %v2505_v63 }
  0xba   : >> { %2209 = vmatpush3.bf16.msra.mxu0 %v2506_v14 }
  0xbb   : >> { %2231 = vmatpush3.bf16.msra.mxu1 %v2507_v10  ;;  %2210 = vmatprep.subr.bf16.mxu0 %v2508_v11 }
  0xbc   : >> { %2232 = vmatprep.subr.bf16.mxu1 %v2509_v42 }
  0xbe   : >> { %2211 = vmatpush3.bf16.msra.mxu0 %v2510_v53 }
  0xbf   : >> { %2233 = vmatpush3.bf16.msra.mxu1 %v2511_v12  ;;  %2212 = vmatprep.subr.bf16.mxu0 %v2512_v13 }
  0xc0   : >> { %2234 = vmatprep.subr.bf16.mxu1 %v2513_v15 }
  0xc2   : >> { %2213 = vmatpush3.bf16.msra.mxu0 %v2514_v17 }
  0xc3   : >> { %2235 = vmatpush3.bf16.msra.mxu1 %v2515_v18  ;;  %2214 = vmatprep.subr.bf16.mxu0 %v2516_v19 }
  0xc4   : >> { %2236 = vmatprep.subr.bf16.mxu1 %v2517_v20 }
  0xc6   : >> { %2215 = vmatpush3.bf16.msra.mxu0 %v2518_v21 }
  0xc7   : >> { %2237 = vmatpush3.bf16.msra.mxu1 %v2519_v22  ;;  %2216 = vmatprep.subr.bf16.mxu0 %v2520_v23 }
  0xc8   : >> { %2238 = vmatprep.subr.bf16.mxu1 %v2521_v24 }
  0xca   : >> { %2217 = vmatpush3.bf16.msra.mxu0 %v2522_v25 }
  0xcb   : >> { %2239 = vmatpush3.bf16.msra.mxu1 %v2523_v26  ;;  %2218 = vmatprep.subr.bf16.mxu0 %v2524_v27  ;;  %v1878_v26 = vld [vmem:[%s1874_s27] sm:$0x7] }
  0xcc   : >> { %2240 = vmatprep.subr.bf16.mxu1 %v2525_v28 }
  0xce   : >> { %2219 = vmatpush3.bf16.msra.mxu0 %v2526_v29 }
  0xcf   : >> { %2241 = vmatpush3.bf16.msra.mxu1 %v2527_v30 }
  0xd1   : >> { %1791 = vmatmul.mubr.bf16.vlgmr.msra.gmra.mxu0 %v2990_v16 }
  0xd2   : >> { %1831 = vmatmul.mubr.bf16.vlgmr.msra.gmra.mxu1 %v3027_v31 }
 0x111   : >> { %v1548_v32 = vpop.f32.mrf.mxu0 }
 0x112   : >> { %v1589_v33 = vpop.f32.mrf.mxu1 }
 0x113   : >> { %v1590_v34 = vadd.f32 %v1589_v33, %v1548_v32  ;;  %v1550_v35 = vpop.f32.mrf.mxu0 }
 0x114   : >> { %v1591_v36 = vpop.f32.mrf.mxu1 }
 0x115   : >> { %v1552_v37 = vpop.f32.mrf.mxu0  ;;  %v1592_v49 = vadd.f32 %v1591_v36, %v1550_v35 }
 0x116   : >> { %v1593_v38 = vpop.f32.mrf.mxu1 }
 0x117   : >> { %v1553_v39 = vpop.f32.mrf.mxu0 }
 0x118   : >> { %v1594_v40 = vpop.f32.mrf.mxu1 }
 0x151   : >> { %v1630_v41 = vpop.f32.mrf.mxu0 }
 0x152   : >> { %v1671_v43 = vpop.f32.mrf.mxu1  ;;  %v1631_v60 = vadd.f32 %v1630_v41, %v1590_v34 }
 0x153   : >> { %v1632_v44 = vpop.f32.mrf.mxu0 }
 0x154   : >> { %v1673_v45 = vpop.f32.mrf.mxu1  ;;  %v1672_v46 = vadd.f32 %v1671_v43, %v1631_v60  ;;  %v1633_v47 = vadd.f32 %v1632_v44, %v1592_v49 }
 0x155   : >> { %v1634_v16 = vpop.f32.mrf.mxu0 }
 0x156   : >> { %v1675_v48 = vpop.f32.mrf.mxu1  ;;  %v1674_v31 = vadd.f32 %v1673_v45, %v1633_v47 }
 0x157   : >> { %v1635_v50 = vpop.f32.mrf.mxu0 }
 0x158   : >> { %v1676_v51 = vpop.f32.mrf.mxu1  ;;  %1842 = vrot.lane.b32.xlu1 %v1674_v31, %s2544_s22 }
 0x171   : >> { %v2176_v52 = vpop.f32.mrf.mxu0 }
 0x172   : >> { %v2198_v54 = vpop.f32.mrf.mxu1 }
 0x173   : >> { %v2177_v55 = vpop.f32.mrf.mxu0 }
 0x174   : >> { %v2199_v56 = vpop.f32.mrf.mxu1  ;;  %v2178_v62 = vadd.f32 %v2177_v55, %v2176_v52 }
 0x175   : >> { %v2179_v57 = vpop.f32.mrf.mxu0  ;;  %v2200_v1 = vadd.f32 %v2199_v56, %v2198_v54 }
 0x176   : >> { %v2201_v58 = vpop.f32.mrf.mxu1 }
 0x177   : >> { %v2180_v59 = vpop.f32.mrf.mxu0  ;;  %v1753_v6 = vadd.f32 %v2200_v1, %v2178_v62 }
 0x178   : >> { %v2202_v61 = vpop.f32.mrf.mxu1 }
 0x191   : >> { %v2220_v2 = vpop.f32.mrf.mxu0 }
 0x192   : >> { %v2242_v3 = vpop.f32.mrf.mxu1 }
 0x193   : >> { %v2221_v4 = vpop.f32.mrf.mxu0 }
 0x194   : >> { %v2243_v5 = vpop.f32.mrf.mxu1  ;;  %v2222_v7 = vadd.f32 %v2221_v4, %v2220_v2 }
 0x195   : >> { %v2223_v8 = vpop.f32.mrf.mxu0  ;;  %v2244_v14 = vadd.f32 %v2243_v5, %v2242_v3 }
 0x196   : >> { %v2245_v9 = vpop.f32.mrf.mxu1  ;;  %v1793_v63 = vadd.f32 %v2222_v7, %v1753_v6 }
 0x197   : >> { %v2224_v10 = vpop.f32.mrf.mxu0 }
 0x198   : >> { %v2246_v11 = vpop.f32.mrf.mxu1  ;;  %v1833_v42 = vadd.f32 %v2244_v14, %v1793_v63 }
 0x19a   : >> { %1849 = vrot.lane.b32.xlu0 %v1833_v42, %s2544_s22 }
 0x19e   : >> { %1840 = vrot.lane.b32.xlu0 %v1672_v46, %s2544_s22 }
 0x1ca   : >> { %v1843_v17 = vpop.permute.xlu1 %1842 }
 0x20c   : >> { %v1850_v53 = vpop.permute.xlu0 %1849 }
 0x20d   : >> { %v1852_v12 = vmax.f32 %v1674_v31, %v1850_v53  ;;  %v1853_v13 = vmax.f32 %v1833_v42, %v1850_v53 }
 0x20f   : >> { %1856 = vrot.lane.b32.xlu1 %v1852_v12, %s2545_s25  ;;  %1858 = vrot.lane.b32.xlu0 %v1853_v13, %s2545_s25 }
 0x210   : >> { %v1841_v15 = vpop.permute.xlu0 %1840 }
 0x211   : >> { %v1845_v18 = vsel %vm1844_vm0, %v1841_v15, %v1843_v17 }
 0x212   : >> { %v1847_v19 = vmax.f32 %v1672_v46, %v1845_v18 }
 0x281   : >> { %v1857_v20 = vpop.permute.xlu1 %1856  ;;  %v1859_v21 = vpop.permute.xlu0 %1858 }
 0x282   : >> { %v1861_v22 = vsel %vm1860_vm1, %v1857_v20, %v1859_v21 }
 0x283   : >> { %v1863_v23 = vmax.f32 %v1847_v19, %v1861_v22 }
 0x285   : >> { %v1870_v24 = vadd.f32 %v2577_v0, %v1863_v23 }
 0x287   : >> { %v1871_v25 = vmax.f32 %v1870_v24, 0.0 }
 0x288   : > { %177 = sbr.rel (!%p175_p4) target bundleno = 16 (0x10), region = 72 }
 0x289   : >> { %v1872_v27 = vpack.c.bf16 %v1871_v25, %v1871_v25 }
 0x28b   : >> { %v1879_v28 = vsel %vm1877_vm4, %v1872_v27, %v1878_v26 }
 0x28c   : >> { %1880 = vst [vmem:[%s1874_s27] sm:$0x7] %v1879_v28 }
 0x28d PF: > { %s13_s12 = sadd.s32 1, %s2538_s12  }
 0x28e   : > { %p10_p5 = scmp.ge.s32.totalorder %s13_s12, 4  }
 0x290   :  { %12 = sbr.rel (!%p10_p5) target bundleno = 1 (0x1), region = 83 }

</bundles_post_ra>
